<compile_context>
chip_gen: v6e
topology: v6e:2x2x1
jax: 0.10.0
libtpu: 0.0.40
codegen_flags: <defaults>
</compile_context>

<pallas_src>
import functools

import jax
import jax.numpy as jnp
from jax.experimental import pallas as pl
from jax.experimental.pallas import tpu as pltpu


def _round_up(x, m):
    return ((x + m - 1) // m) * m


# ------------------------------ fused kernel ------------------------------- #

def _derm_c_fused_kernel(C, B_pad,
                         # scalar prefetch (SMEM)
                         user_ref, item_ref, candi_ref,
                         # embedding tables left in HBM (manual row gather)
                         umf_hbm, imf_hbm, umlp_hbm, imlp_hbm,
                         # VMEM-resident small params
                         tag_tbl_ref,
                         w1u_ref, w1i_ref, b1_ref, w2_ref, b2_ref,
                         whmf_ref, whh_ref, bh_ref, wtag_ref,
                         # outputs
                         mid_ref, scores_ref,
                         # scratch
                         umf_buf, imf_buf, umlp_buf, imlp_buf, tag_scr,
                         row_sems):
    Emf = umf_buf.shape[1]

    # ---- 1. gather user/item embedding rows straight from HBM ------------- #
    # One small DMA per row; all issued before any wait so they overlap.
    tables = ((umf_hbm, umf_buf, user_ref),
              (imf_hbm, imf_buf, item_ref),
              (umlp_hbm, umlp_buf, user_ref),
              (imlp_hbm, imlp_buf, item_ref))
    copies = []
    for t, (tbl, buf, idx_ref) in enumerate(tables):
        for r in range(B_pad):
            cp = pltpu.make_async_copy(tbl.at[pl.ds(idx_ref[r], 1), :],
                                       buf.at[pl.ds(r, 1), :],
                                       row_sems.at[t, r])
            cp.start()
            copies.append(cp)

    # ---- 2. gather candidate tag rows from the VMEM-resident tag table ---- #
    # (tag vocab is small; for a huge tag table this would be a DMA gather too)
    for b in range(B_pad):
        for c in range(C):
            row = tag_tbl_ref[pl.ds(candi_ref[b, c], 1), :]          # (1, Emf)
            tag_scr[b, pl.ds(c, 1), :] = row

    for cp in copies:
        cp.wait()

    # ---- 3. mid_state = [mf | MLP(concat(u_mlp, i_mlp))] ------------------ #
    mf = umf_buf[...] * imf_buf[...]                                  # [Bp,Emf]
    # layer 1 without an in-kernel concat: split-weight dots
    h = (jnp.dot(umlp_buf[...], w1u_ref[...], preferred_element_type=jnp.float32)
         + jnp.dot(imlp_buf[...], w1i_ref[...], preferred_element_type=jnp.float32)
         + b1_ref[...])
    h = jnp.maximum(h, 0.0)
    h = jnp.maximum(jnp.dot(h, w2_ref[...], preferred_element_type=jnp.float32)
                    + b2_ref[...], 0.0)                               # [Bp,H2]

    # write mid_state with direct slice stores (no output concat)
    mid_ref[:, :Emf] = mf
    mid_ref[:, Emf:] = h

    # ---- 4. all four prediction heads from one stacked pair of dots ------- #
    head_logits = (jnp.dot(mf, whmf_ref[...], preferred_element_type=jnp.float32)
                   + jnp.dot(h, whh_ref[...], preferred_element_type=jnp.float32)
                   + bh_ref[...])                                     # [Bp, 4]

    # ---- 5. tag scores; one lane-dense [Bp, 1 + 3*C] output slab ---------- #
    # NOTE: the broadcast-multiply + last-axis reduce stays on the VPU/XLU; at
    # C<=8 / 3 heads an MXU contraction would only add minor-dim relayouts.
    tag3 = tag_scr[...]                                               # [Bp,C,Emf]
    pieces = [head_logits[:, 0:1]]                                    # rating
    for hd in range(3):
        tagp = jnp.sum(tag3 * wtag_ref[hd], axis=-1)                  # [Bp, C]
        pieces.append(jax.nn.sigmoid(head_logits[:, hd + 1:hd + 2] + tagp))
    scores_ref[...] = jnp.concatenate(pieces, axis=-1)                # [Bp,1+3C]


# ------------------------------ wrapper ------------------------------------ #

def _full_spec(shape):
    nd = len(shape)
    return pl.BlockSpec(shape, lambda i, *_prefetch: (0,) * nd)


def derm_c_forward(params, user, item, candi_tags):
    """Fused forward: returns (mid_state, rating, reason, video, interest)."""
    B = user.shape[0]
    C = candi_tags.shape[1]
    Emf = params['user_mf'].shape[1]
    Emlp = params['user_mlp'].shape[1]
    H1 = params['w1'].shape[1]
    H2 = params['w2'].shape[1]
    Dmid = Emf + H2
    tag_num = params['tag_emb'].shape[0]
    B_pad = max(8, _round_up(B, 8))
    S = 1 + 3 * C

    # pad index arrays to the sublane-aligned batch; pad rows gather row 0 and
    # are sliced off below.
    user_p = jnp.pad(user.astype(jnp.int32), (0, B_pad - B))
    item_p = jnp.pad(item.astype(jnp.int32), (0, B_pad - B))
    candi_p = jnp.pad(candi_tags.astype(jnp.int32), ((0, B_pad - B), (0, 0)))

    # split MLP layer-1 weights -> no in-kernel concat of (u_mlp, i_mlp)
    w1u = params['w1'][:Emlp]
    w1i = params['w1'][Emlp:]

    # stack the 4 prediction heads: mid-part weights -> [Emf,4] & [H2,4],
    # biases -> [1,4], tag-part weights -> [3, Emf]
    w_r, w_re, w_vi, w_in = (params['w_rating'], params['w_reason'],
                             params['w_video'], params['w_interest'])
    w_heads_mf = jnp.concatenate(
        [w_r[:Emf], w_re[:Emf], w_vi[:Emf], w_in[:Emf]], axis=1)
    w_heads_h = jnp.concatenate(
        [w_r[Emf:Dmid], w_re[Emf:Dmid], w_vi[Emf:Dmid], w_in[Emf:Dmid]], axis=1)
    b_heads = jnp.concatenate(
        [params['b_rating'], params['b_reason'],
         params['b_video'], params['b_interest']], axis=1)
    w_tag_stack = jnp.concatenate(
        [w_re[Dmid:], w_vi[Dmid:], w_in[Dmid:]], axis=1).T            # [3, Emf]

    kernel = functools.partial(_derm_c_fused_kernel, C, B_pad)
    grid_spec = pltpu.PrefetchScalarGridSpec(
        num_scalar_prefetch=3,
        grid=(1,),
        in_specs=[
            pl.BlockSpec(memory_space=pl.ANY),     # user_mf  table (HBM)
            pl.BlockSpec(memory_space=pl.ANY),     # item_mf  table (HBM)
            pl.BlockSpec(memory_space=pl.ANY),     # user_mlp table (HBM)
            pl.BlockSpec(memory_space=pl.ANY),     # item_mlp table (HBM)
            _full_spec((tag_num, Emf)),            # tag table resident in VMEM
            _full_spec((Emlp, H1)), _full_spec((Emlp, H1)), _full_spec((1, H1)),
            _full_spec((H1, H2)), _full_spec((1, H2)),
            _full_spec((Emf, 4)), _full_spec((H2, 4)), _full_spec((1, 4)),
            _full_spec((3, Emf)),
        ],
        out_specs=[_full_spec((B_pad, Dmid)), _full_spec((B_pad, S))],
        scratch_shapes=[
            pltpu.VMEM((B_pad, Emf), jnp.float32),     # gathered user_mf
            pltpu.VMEM((B_pad, Emf), jnp.float32),     # gathered item_mf
            pltpu.VMEM((B_pad, Emlp), jnp.float32),    # gathered user_mlp
            pltpu.VMEM((B_pad, Emlp), jnp.float32),    # gathered item_mlp
            pltpu.VMEM((B_pad, C, Emf), jnp.float32),  # gathered candidate tags
            pltpu.SemaphoreType.DMA((4, B_pad)),       # one sem per row DMA
        ],
    )

    mid_p, scores_p = pl.pallas_call(
        kernel,
        grid_spec=grid_spec,
        out_shape=(jax.ShapeDtypeStruct((B_pad, Dmid), jnp.float32),
                   jax.ShapeDtypeStruct((B_pad, S), jnp.float32)),
        compiler_params=pltpu.CompilerParams(
            dimension_semantics=("arbitrary",)),
    )(user_p, item_p, candi_p,
      params['user_mf'], params['item_mf'],
      params['user_mlp'], params['item_mlp'],
      params['tag_emb'],
      w1u, w1i, params['b1'], params['w2'], params['b2'],
      w_heads_mf, w_heads_h, b_heads, w_tag_stack)

    mid = mid_p[:B]
    rating = scores_p[:B, 0]
    reason = scores_p[:B, 1:1 + C]
    video = scores_p[:B, 1 + C:1 + 2 * C]
    interest = scores_p[:B, 1 + 2 * C:1 + 3 * C]
    return mid, rating, reason, video, interest


# API-parity convenience wrappers (all route through the single fused kernel).
def get_mid_state(params, user, item):
    dummy = jnp.zeros((user.shape[0], 1), jnp.int32)
    return derm_c_forward(params, user, item, dummy)[0]


def predict_rating(params, user, item):
    dummy = jnp.zeros((user.shape[0], 1), jnp.int32)
    return derm_c_forward(params, user, item, dummy)[1]


def predict_reason_score(params, user, item, candi_tags):
    return derm_c_forward(params, user, item, candi_tags)[2]


def predict_video_score(params, user, item, candi_tags):
    return derm_c_forward(params, user, item, candi_tags)[3]


def predict_interest_score(params, user, item, candi_tags):
    return derm_c_forward(params, user, item, candi_tags)[4]


# ------------------------------ pure-JAX reference ------------------------- #

def ref_mid_state(params, user, item):
    u_mf = params['user_mf'][user]
    i_mf = params['item_mf'][item]
    u_mlp = params['user_mlp'][user]
    i_mlp = params['item_mlp'][item]
    mf = u_mf * i_mf
    h = jnp.concatenate([u_mlp, i_mlp], -1)
    h = jnp.maximum(h @ params['w1'] + params['b1'], 0.0)
    h = jnp.maximum(h @ params['w2'] + params['b2'], 0.0)
    return jnp.concatenate([mf, h], -1)


def ref_rating(params, user, item):
    mid = ref_mid_state(params, user, item)
    return (mid @ params['w_rating'] + params['b_rating'])[:, 0]


def ref_tag_scores(params, user, item, candi_tags, head):
    mid = ref_mid_state(params, user, item)
    tag_emb = params['tag_emb'][candi_tags]
    Cn = candi_tags.shape[1]
    inp = jnp.concatenate(
        [jnp.repeat(mid[:, None, :], Cn, axis=1), tag_emb], axis=-1)
    logits = inp @ params[f'w_{head}'] + params[f'b_{head}']
    return jax.nn.sigmoid(logits)[..., 0]


# ------------------------------ main ---------------------------------------- #

if __name__ == "__main__":
    # small config consistent with the module's __init__
    user_num, item_num, tag_num = 32, 32, 16
    Emf, Emlp = 16, 16
    mlp_hidden = [32, 16]
    candidate_num = 8
    B = 4

    key = jax.random.PRNGKey(0)
    ks = jax.random.split(key, 16)

    def nrm(k, shape):
        return (0.01 * jax.random.normal(k, shape)).astype(jnp.float32)

    Dmid = Emf + mlp_hidden[-1]
    params = {
        'user_mf':  nrm(ks[0], (user_num, Emf)),
        'item_mf':  nrm(ks[1], (item_num, Emf)),
        'user_mlp': nrm(ks[2], (user_num, Emlp)),
        'item_mlp': nrm(ks[3], (item_num, Emlp)),
        'tag_emb':  nrm(ks[4], (tag_num, Emf)),
        # MLPLayers([2*Emlp] + mlp_hidden): weights stored pre-transposed (in, out)
        'w1': nrm(ks[5], (2 * Emlp, mlp_hidden[0])),
        'b1': jnp.zeros((1, mlp_hidden[0]), jnp.float32),
        'w2': nrm(ks[6], (mlp_hidden[0], mlp_hidden[1])),
        'b2': jnp.zeros((1, mlp_hidden[1]), jnp.float32),
        # prediction heads (Linear(in, 1) stored as (in, 1), zero bias)
        'w_rating':   nrm(ks[7],  (Dmid, 1)),
        'b_rating':   jnp.zeros((1, 1), jnp.float32),
        'w_reason':   nrm(ks[8],  (Dmid + Emf, 1)),
        'b_reason':   jnp.zeros((1, 1), jnp.float32),
        'w_video':    nrm(ks[9],  (Dmid + Emf, 1)),
        'b_video':    jnp.zeros((1, 1), jnp.float32),
        'w_interest': nrm(ks[10], (Dmid + Emf, 1)),
        'b_interest': jnp.zeros((1, 1), jnp.float32),
    }

    user = jax.random.randint(ks[11], (B,), 0, user_num, jnp.int32)
    item = jax.random.randint(ks[12], (B,), 0, item_num, jnp.int32)
    candi_tags = jax.random.randint(ks[13], (B, candidate_num), 0, tag_num, jnp.int32)

    # single fused kernel invocation for the whole forward
    mid, rating, reason, video, interest = jax.block_until_ready(
        derm_c_forward(params, user, item, candi_tags))

    # correctness check against pure-JAX reference
    assert jnp.allclose(mid, ref_mid_state(params, user, item), rtol=1e-3, atol=1e-5)
    assert jnp.allclose(rating, ref_rating(params, user, item), rtol=1e-3, atol=1e-5)
    assert jnp.allclose(reason, ref_tag_scores(params, user, item, candi_tags, 'reason'),
                        rtol=1e-3, atol=1e-5)
    assert jnp.allclose(video, ref_tag_scores(params, user, item, candi_tags, 'video'),
                        rtol=1e-3, atol=1e-5)
    assert jnp.allclose(interest, ref_tag_scores(params, user, item, candi_tags, 'interest'),
                        rtol=1e-3, atol=1e-5)

    print("KERNEL_OK")
</pallas_src>

<mosaic_0001>
module attributes {stable_mosaic.version = 11 : i64} {
  func.func @_derm_c_fused_kernel(%arg0: i32, %arg1: memref<8xi32, #tpu.memory_space<smem>>, %arg2: memref<8xi32, #tpu.memory_space<smem>>, %arg3: memref<8x8xi32, #tpu.memory_space<smem>>, %arg4: memref<32x16xf32, #tpu.memory_space<any>>, %arg5: memref<32x16xf32, #tpu.memory_space<any>>, %arg6: memref<32x16xf32, #tpu.memory_space<any>>, %arg7: memref<32x16xf32, #tpu.memory_space<any>>, %arg8: memref<16x16xf32, #tpu.memory_space<vmem>>, %arg9: memref<16x32xf32, #tpu.memory_space<vmem>>, %arg10: memref<16x32xf32, #tpu.memory_space<vmem>>, %arg11: memref<1x32xf32, #tpu.memory_space<vmem>>, %arg12: memref<32x16xf32, #tpu.memory_space<vmem>>, %arg13: memref<1x16xf32, #tpu.memory_space<vmem>>, %arg14: memref<16x4xf32, #tpu.memory_space<vmem>>, %arg15: memref<16x4xf32, #tpu.memory_space<vmem>>, %arg16: memref<1x4xf32, #tpu.memory_space<vmem>>, %arg17: memref<3x16xf32, #tpu.memory_space<vmem>>, %arg18: memref<8x32xf32, #tpu.memory_space<vmem>>, %arg19: memref<8x25xf32, #tpu.memory_space<vmem>>, %arg20: memref<8x16xf32, #tpu.memory_space<vmem>>, %arg21: memref<8x16xf32, #tpu.memory_space<vmem>>, %arg22: memref<8x16xf32, #tpu.memory_space<vmem>>, %arg23: memref<8x16xf32, #tpu.memory_space<vmem>>, %arg24: memref<8x8x16xf32, #tpu.memory_space<vmem>>, %arg25: memref<4x8x!tpu.dma_semaphore, #tpu.memory_space<semaphore_mem>>) attributes {dimension_semantics = [#tpu.dimension_semantics<arbitrary>], iteration_bounds = array<i64: 1>, scalar_prefetch = 3 : i64, scratch_operands = 6 : i64, tpu.core_type = #tpu.core_type<tc>, window_params = [{}, {}, {}, {}, {pipeline_mode = #tpu.pipeline_mode<synchronous>, transform_indices = @transform_4, window_bounds = array<i64: 16, 16>}, {pipeline_mode = #tpu.pipeline_mode<synchronous>, transform_indices = @transform_5, window_bounds = array<i64: 16, 32>}, {pipeline_mode = #tpu.pipeline_mode<synchronous>, transform_indices = @transform_6, window_bounds = array<i64: 16, 32>}, {pipeline_mode = #tpu.pipeline_mode<synchronous>, transform_indices = @transform_7, window_bounds = array<i64: 1, 32>}, {pipeline_mode = #tpu.pipeline_mode<synchronous>, transform_indices = @transform_8, window_bounds = array<i64: 32, 16>}, {pipeline_mode = #tpu.pipeline_mode<synchronous>, transform_indices = @transform_9, window_bounds = array<i64: 1, 16>}, {pipeline_mode = #tpu.pipeline_mode<synchronous>, transform_indices = @transform_10, window_bounds = array<i64: 16, 4>}, {pipeline_mode = #tpu.pipeline_mode<synchronous>, transform_indices = @transform_11, window_bounds = array<i64: 16, 4>}, {pipeline_mode = #tpu.pipeline_mode<synchronous>, transform_indices = @transform_12, window_bounds = array<i64: 1, 4>}, {pipeline_mode = #tpu.pipeline_mode<synchronous>, transform_indices = @transform_13, window_bounds = array<i64: 3, 16>}, {pipeline_mode = #tpu.pipeline_mode<synchronous>, transform_indices = @transform_14, window_bounds = array<i64: 8, 32>}, {pipeline_mode = #tpu.pipeline_mode<synchronous>, transform_indices = @transform_15, window_bounds = array<i64: 8, 25>}]} {
    %c0 = arith.constant 0 : index
    %0 = memref.load %arg1[%c0] : memref<8xi32, #tpu.memory_space<smem>>
    %c0_i32 = arith.constant 0 : i32
    %c0_i32_0 = arith.constant 0 : i32
    %c0_i32_1 = arith.constant 0 : i32
    %1 = tpu.memref_slice %arg4[%0, %c0_i32_1] : memref<32x16xf32, #tpu.memory_space<any>> -> memref<1x16xf32, #tpu.memory_space<any>>
    %c0_i32_2 = arith.constant 0 : i32
    %c0_i32_3 = arith.constant 0 : i32
    %2 = tpu.memref_slice %arg20[%c0_i32_2, %c0_i32_3] : memref<8x16xf32, #tpu.memory_space<vmem>> -> memref<1x16xf32, #tpu.memory_space<vmem>>
    %3 = tpu.memref_slice %arg25[%c0_i32, %c0_i32_0] : memref<4x8x!tpu.dma_semaphore, #tpu.memory_space<semaphore_mem>> -> memref<1x1x!tpu.dma_semaphore, #tpu.memory_space<semaphore_mem>>
    %4 = tpu.memref_squeeze %3 : memref<1x1x!tpu.dma_semaphore, #tpu.memory_space<semaphore_mem>> -> memref<!tpu.dma_semaphore, #tpu.memory_space<semaphore_mem>>
    tpu.enqueue_dma source(%1 : memref<1x16xf32, #tpu.memory_space<any>>) target(%2 : memref<1x16xf32, #tpu.memory_space<vmem>>) target_semaphore(%4 : memref<!tpu.dma_semaphore, #tpu.memory_space<semaphore_mem>>)
    %c1 = arith.constant 1 : index
    %5 = memref.load %arg1[%c1] : memref<8xi32, #tpu.memory_space<smem>>
    %c0_i32_4 = arith.constant 0 : i32
    %c1_i32 = arith.constant 1 : i32
    %c0_i32_5 = arith.constant 0 : i32
    %6 = tpu.memref_slice %arg4[%5, %c0_i32_5] : memref<32x16xf32, #tpu.memory_space<any>> -> memref<1x16xf32, #tpu.memory_space<any>>
    %c1_i32_6 = arith.constant 1 : i32
    %c0_i32_7 = arith.constant 0 : i32
    %7 = tpu.memref_slice %arg20[%c1_i32_6, %c0_i32_7] : memref<8x16xf32, #tpu.memory_space<vmem>> -> memref<1x16xf32, #tpu.memory_space<vmem>>
    %8 = tpu.memref_slice %arg25[%c0_i32_4, %c1_i32] : memref<4x8x!tpu.dma_semaphore, #tpu.memory_space<semaphore_mem>> -> memref<1x1x!tpu.dma_semaphore, #tpu.memory_space<semaphore_mem>>
    %9 = tpu.memref_squeeze %8 : memref<1x1x!tpu.dma_semaphore, #tpu.memory_space<semaphore_mem>> -> memref<!tpu.dma_semaphore, #tpu.memory_space<semaphore_mem>>
    tpu.enqueue_dma source(%6 : memref<1x16xf32, #tpu.memory_space<any>>) target(%7 : memref<1x16xf32, #tpu.memory_space<vmem>>) target_semaphore(%9 : memref<!tpu.dma_semaphore, #tpu.memory_space<semaphore_mem>>)
    %c2 = arith.constant 2 : index
    %10 = memref.load %arg1[%c2] : memref<8xi32, #tpu.memory_space<smem>>
    %c0_i32_8 = arith.constant 0 : i32
    %c2_i32 = arith.constant 2 : i32
    %c0_i32_9 = arith.constant 0 : i32
    %11 = tpu.memref_slice %arg4[%10, %c0_i32_9] : memref<32x16xf32, #tpu.memory_space<any>> -> memref<1x16xf32, #tpu.memory_space<any>>
    %c2_i32_10 = arith.constant 2 : i32
    %c0_i32_11 = arith.constant 0 : i32
    %12 = tpu.memref_slice %arg20[%c2_i32_10, %c0_i32_11] : memref<8x16xf32, #tpu.memory_space<vmem>> -> memref<1x16xf32, #tpu.memory_space<vmem>>
    %13 = tpu.memref_slice %arg25[%c0_i32_8, %c2_i32] : memref<4x8x!tpu.dma_semaphore, #tpu.memory_space<semaphore_mem>> -> memref<1x1x!tpu.dma_semaphore, #tpu.memory_space<semaphore_mem>>
    %14 = tpu.memref_squeeze %13 : memref<1x1x!tpu.dma_semaphore, #tpu.memory_space<semaphore_mem>> -> memref<!tpu.dma_semaphore, #tpu.memory_space<semaphore_mem>>
    tpu.enqueue_dma source(%11 : memref<1x16xf32, #tpu.memory_space<any>>) target(%12 : memref<1x16xf32, #tpu.memory_space<vmem>>) target_semaphore(%14 : memref<!tpu.dma_semaphore, #tpu.memory_space<semaphore_mem>>)
    %c3 = arith.constant 3 : index
    %15 = memref.load %arg1[%c3] : memref<8xi32, #tpu.memory_space<smem>>
    %c0_i32_12 = arith.constant 0 : i32
    %c3_i32 = arith.constant 3 : i32
    %c0_i32_13 = arith.constant 0 : i32
    %16 = tpu.memref_slice %arg4[%15, %c0_i32_13] : memref<32x16xf32, #tpu.memory_space<any>> -> memref<1x16xf32, #tpu.memory_space<any>>
    %c3_i32_14 = arith.constant 3 : i32
    %c0_i32_15 = arith.constant 0 : i32
    %17 = tpu.memref_slice %arg20[%c3_i32_14, %c0_i32_15] : memref<8x16xf32, #tpu.memory_space<vmem>> -> memref<1x16xf32, #tpu.memory_space<vmem>>
    %18 = tpu.memref_slice %arg25[%c0_i32_12, %c3_i32] : memref<4x8x!tpu.dma_semaphore, #tpu.memory_space<semaphore_mem>> -> memref<1x1x!tpu.dma_semaphore, #tpu.memory_space<semaphore_mem>>
    %19 = tpu.memref_squeeze %18 : memref<1x1x!tpu.dma_semaphore, #tpu.memory_space<semaphore_mem>> -> memref<!tpu.dma_semaphore, #tpu.memory_space<semaphore_mem>>
    tpu.enqueue_dma source(%16 : memref<1x16xf32, #tpu.memory_space<any>>) target(%17 : memref<1x16xf32, #tpu.memory_space<vmem>>) target_semaphore(%19 : memref<!tpu.dma_semaphore, #tpu.memory_space<semaphore_mem>>)
    %c4 = arith.constant 4 : index
    %20 = memref.load %arg1[%c4] : memref<8xi32, #tpu.memory_space<smem>>
    %c0_i32_16 = arith.constant 0 : i32
    %c4_i32 = arith.constant 4 : i32
    %c0_i32_17 = arith.constant 0 : i32
    %21 = tpu.memref_slice %arg4[%20, %c0_i32_17] : memref<32x16xf32, #tpu.memory_space<any>> -> memref<1x16xf32, #tpu.memory_space<any>>
    %c4_i32_18 = arith.constant 4 : i32
    %c0_i32_19 = arith.constant 0 : i32
    %22 = tpu.memref_slice %arg20[%c4_i32_18, %c0_i32_19] : memref<8x16xf32, #tpu.memory_space<vmem>> -> memref<1x16xf32, #tpu.memory_space<vmem>>
    %23 = tpu.memref_slice %arg25[%c0_i32_16, %c4_i32] : memref<4x8x!tpu.dma_semaphore, #tpu.memory_space<semaphore_mem>> -> memref<1x1x!tpu.dma_semaphore, #tpu.memory_space<semaphore_mem>>
    %24 = tpu.memref_squeeze %23 : memref<1x1x!tpu.dma_semaphore, #tpu.memory_space<semaphore_mem>> -> memref<!tpu.dma_semaphore, #tpu.memory_space<semaphore_mem>>
    tpu.enqueue_dma source(%21 : memref<1x16xf32, #tpu.memory_space<any>>) target(%22 : memref<1x16xf32, #tpu.memory_space<vmem>>) target_semaphore(%24 : memref<!tpu.dma_semaphore, #tpu.memory_space<semaphore_mem>>)
    %c5 = arith.constant 5 : index
    %25 = memref.load %arg1[%c5] : memref<8xi32, #tpu.memory_space<smem>>
    %c0_i32_20 = arith.constant 0 : i32
    %c5_i32 = arith.constant 5 : i32
    %c0_i32_21 = arith.constant 0 : i32
    %26 = tpu.memref_slice %arg4[%25, %c0_i32_21] : memref<32x16xf32, #tpu.memory_space<any>> -> memref<1x16xf32, #tpu.memory_space<any>>
    %c5_i32_22 = arith.constant 5 : i32
    %c0_i32_23 = arith.constant 0 : i32
    %27 = tpu.memref_slice %arg20[%c5_i32_22, %c0_i32_23] : memref<8x16xf32, #tpu.memory_space<vmem>> -> memref<1x16xf32, #tpu.memory_space<vmem>>
    %28 = tpu.memref_slice %arg25[%c0_i32_20, %c5_i32] : memref<4x8x!tpu.dma_semaphore, #tpu.memory_space<semaphore_mem>> -> memref<1x1x!tpu.dma_semaphore, #tpu.memory_space<semaphore_mem>>
    %29 = tpu.memref_squeeze %28 : memref<1x1x!tpu.dma_semaphore, #tpu.memory_space<semaphore_mem>> -> memref<!tpu.dma_semaphore, #tpu.memory_space<semaphore_mem>>
    tpu.enqueue_dma source(%26 : memref<1x16xf32, #tpu.memory_space<any>>) target(%27 : memref<1x16xf32, #tpu.memory_space<vmem>>) target_semaphore(%29 : memref<!tpu.dma_semaphore, #tpu.memory_space<semaphore_mem>>)
    %c6 = arith.constant 6 : index
    %30 = memref.load %arg1[%c6] : memref<8xi32, #tpu.memory_space<smem>>
    %c0_i32_24 = arith.constant 0 : i32
    %c6_i32 = arith.constant 6 : i32
    %c0_i32_25 = arith.constant 0 : i32
    %31 = tpu.memref_slice %arg4[%30, %c0_i32_25] : memref<32x16xf32, #tpu.memory_space<any>> -> memref<1x16xf32, #tpu.memory_space<any>>
    %c6_i32_26 = arith.constant 6 : i32
    %c0_i32_27 = arith.constant 0 : i32
    %32 = tpu.memref_slice %arg20[%c6_i32_26, %c0_i32_27] : memref<8x16xf32, #tpu.memory_space<vmem>> -> memref<1x16xf32, #tpu.memory_space<vmem>>
    %33 = tpu.memref_slice %arg25[%c0_i32_24, %c6_i32] : memref<4x8x!tpu.dma_semaphore, #tpu.memory_space<semaphore_mem>> -> memref<1x1x!tpu.dma_semaphore, #tpu.memory_space<semaphore_mem>>
    %34 = tpu.memref_squeeze %33 : memref<1x1x!tpu.dma_semaphore, #tpu.memory_space<semaphore_mem>> -> memref<!tpu.dma_semaphore, #tpu.memory_space<semaphore_mem>>
    tpu.enqueue_dma source(%31 : memref<1x16xf32, #tpu.memory_space<any>>) target(%32 : memref<1x16xf32, #tpu.memory_space<vmem>>) target_semaphore(%34 : memref<!tpu.dma_semaphore, #tpu.memory_space<semaphore_mem>>)
    %c7 = arith.constant 7 : index
    %35 = memref.load %arg1[%c7] : memref<8xi32, #tpu.memory_space<smem>>
    %c0_i32_28 = arith.constant 0 : i32
    %c7_i32 = arith.constant 7 : i32
    %c0_i32_29 = arith.constant 0 : i32
    %36 = tpu.memref_slice %arg4[%35, %c0_i32_29] : memref<32x16xf32, #tpu.memory_space<any>> -> memref<1x16xf32, #tpu.memory_space<any>>
    %c7_i32_30 = arith.constant 7 : i32
    %c0_i32_31 = arith.constant 0 : i32
    %37 = tpu.memref_slice %arg20[%c7_i32_30, %c0_i32_31] : memref<8x16xf32, #tpu.memory_space<vmem>> -> memref<1x16xf32, #tpu.memory_space<vmem>>
    %38 = tpu.memref_slice %arg25[%c0_i32_28, %c7_i32] : memref<4x8x!tpu.dma_semaphore, #tpu.memory_space<semaphore_mem>> -> memref<1x1x!tpu.dma_semaphore, #tpu.memory_space<semaphore_mem>>
    %39 = tpu.memref_squeeze %38 : memref<1x1x!tpu.dma_semaphore, #tpu.memory_space<semaphore_mem>> -> memref<!tpu.dma_semaphore, #tpu.memory_space<semaphore_mem>>
    tpu.enqueue_dma source(%36 : memref<1x16xf32, #tpu.memory_space<any>>) target(%37 : memref<1x16xf32, #tpu.memory_space<vmem>>) target_semaphore(%39 : memref<!tpu.dma_semaphore, #tpu.memory_space<semaphore_mem>>)
    %c0_32 = arith.constant 0 : index
    %40 = memref.load %arg2[%c0_32] : memref<8xi32, #tpu.memory_space<smem>>
    %c1_i32_33 = arith.constant 1 : i32
    %c0_i32_34 = arith.constant 0 : i32
    %c0_i32_35 = arith.constant 0 : i32
    %41 = tpu.memref_slice %arg5[%40, %c0_i32_35] : memref<32x16xf32, #tpu.memory_space<any>> -> memref<1x16xf32, #tpu.memory_space<any>>
    %c0_i32_36 = arith.constant 0 : i32
    %c0_i32_37 = arith.constant 0 : i32
    %42 = tpu.memref_slice %arg21[%c0_i32_36, %c0_i32_37] : memref<8x16xf32, #tpu.memory_space<vmem>> -> memref<1x16xf32, #tpu.memory_space<vmem>>
    %43 = tpu.memref_slice %arg25[%c1_i32_33, %c0_i32_34] : memref<4x8x!tpu.dma_semaphore, #tpu.memory_space<semaphore_mem>> -> memref<1x1x!tpu.dma_semaphore, #tpu.memory_space<semaphore_mem>>
    %44 = tpu.memref_squeeze %43 : memref<1x1x!tpu.dma_semaphore, #tpu.memory_space<semaphore_mem>> -> memref<!tpu.dma_semaphore, #tpu.memory_space<semaphore_mem>>
    tpu.enqueue_dma source(%41 : memref<1x16xf32, #tpu.memory_space<any>>) target(%42 : memref<1x16xf32, #tpu.memory_space<vmem>>) target_semaphore(%44 : memref<!tpu.dma_semaphore, #tpu.memory_space<semaphore_mem>>)
    %c1_38 = arith.constant 1 : index
    %45 = memref.load %arg2[%c1_38] : memref<8xi32, #tpu.memory_space<smem>>
    %c1_i32_39 = arith.constant 1 : i32
    %c1_i32_40 = arith.constant 1 : i32
    %c0_i32_41 = arith.constant 0 : i32
    %46 = tpu.memref_slice %arg5[%45, %c0_i32_41] : memref<32x16xf32, #tpu.memory_space<any>> -> memref<1x16xf32, #tpu.memory_space<any>>
    %c1_i32_42 = arith.constant 1 : i32
    %c0_i32_43 = arith.constant 0 : i32
    %47 = tpu.memref_slice %arg21[%c1_i32_42, %c0_i32_43] : memref<8x16xf32, #tpu.memory_space<vmem>> -> memref<1x16xf32, #tpu.memory_space<vmem>>
    %48 = tpu.memref_slice %arg25[%c1_i32_39, %c1_i32_40] : memref<4x8x!tpu.dma_semaphore, #tpu.memory_space<semaphore_mem>> -> memref<1x1x!tpu.dma_semaphore, #tpu.memory_space<semaphore_mem>>
    %49 = tpu.memref_squeeze %48 : memref<1x1x!tpu.dma_semaphore, #tpu.memory_space<semaphore_mem>> -> memref<!tpu.dma_semaphore, #tpu.memory_space<semaphore_mem>>
    tpu.enqueue_dma source(%46 : memref<1x16xf32, #tpu.memory_space<any>>) target(%47 : memref<1x16xf32, #tpu.memory_space<vmem>>) target_semaphore(%49 : memref<!tpu.dma_semaphore, #tpu.memory_space<semaphore_mem>>)
    %c2_44 = arith.constant 2 : index
    %50 = memref.load %arg2[%c2_44] : memref<8xi32, #tpu.memory_space<smem>>
    %c1_i32_45 = arith.constant 1 : i32
    %c2_i32_46 = arith.constant 2 : i32
    %c0_i32_47 = arith.constant 0 : i32
    %51 = tpu.memref_slice %arg5[%50, %c0_i32_47] : memref<32x16xf32, #tpu.memory_space<any>> -> memref<1x16xf32, #tpu.memory_space<any>>
    %c2_i32_48 = arith.constant 2 : i32
    %c0_i32_49 = arith.constant 0 : i32
    %52 = tpu.memref_slice %arg21[%c2_i32_48, %c0_i32_49] : memref<8x16xf32, #tpu.memory_space<vmem>> -> memref<1x16xf32, #tpu.memory_space<vmem>>
    %53 = tpu.memref_slice %arg25[%c1_i32_45, %c2_i32_46] : memref<4x8x!tpu.dma_semaphore, #tpu.memory_space<semaphore_mem>> -> memref<1x1x!tpu.dma_semaphore, #tpu.memory_space<semaphore_mem>>
    %54 = tpu.memref_squeeze %53 : memref<1x1x!tpu.dma_semaphore, #tpu.memory_space<semaphore_mem>> -> memref<!tpu.dma_semaphore, #tpu.memory_space<semaphore_mem>>
    tpu.enqueue_dma source(%51 : memref<1x16xf32, #tpu.memory_space<any>>) target(%52 : memref<1x16xf32, #tpu.memory_space<vmem>>) target_semaphore(%54 : memref<!tpu.dma_semaphore, #tpu.memory_space<semaphore_mem>>)
    %c3_50 = arith.constant 3 : index
    %55 = memref.load %arg2[%c3_50] : memref<8xi32, #tpu.memory_space<smem>>
    %c1_i32_51 = arith.constant 1 : i32
    %c3_i32_52 = arith.constant 3 : i32
    %c0_i32_53 = arith.constant 0 : i32
    %56 = tpu.memref_slice %arg5[%55, %c0_i32_53] : memref<32x16xf32, #tpu.memory_space<any>> -> memref<1x16xf32, #tpu.memory_space<any>>
    %c3_i32_54 = arith.constant 3 : i32
    %c0_i32_55 = arith.constant 0 : i32
    %57 = tpu.memref_slice %arg21[%c3_i32_54, %c0_i32_55] : memref<8x16xf32, #tpu.memory_space<vmem>> -> memref<1x16xf32, #tpu.memory_space<vmem>>
    %58 = tpu.memref_slice %arg25[%c1_i32_51, %c3_i32_52] : memref<4x8x!tpu.dma_semaphore, #tpu.memory_space<semaphore_mem>> -> memref<1x1x!tpu.dma_semaphore, #tpu.memory_space<semaphore_mem>>
    %59 = tpu.memref_squeeze %58 : memref<1x1x!tpu.dma_semaphore, #tpu.memory_space<semaphore_mem>> -> memref<!tpu.dma_semaphore, #tpu.memory_space<semaphore_mem>>
    tpu.enqueue_dma source(%56 : memref<1x16xf32, #tpu.memory_space<any>>) target(%57 : memref<1x16xf32, #tpu.memory_space<vmem>>) target_semaphore(%59 : memref<!tpu.dma_semaphore, #tpu.memory_space<semaphore_mem>>)
    %c4_56 = arith.constant 4 : index
    %60 = memref.load %arg2[%c4_56] : memref<8xi32, #tpu.memory_space<smem>>
    %c1_i32_57 = arith.constant 1 : i32
    %c4_i32_58 = arith.constant 4 : i32
    %c0_i32_59 = arith.constant 0 : i32
    %61 = tpu.memref_slice %arg5[%60, %c0_i32_59] : memref<32x16xf32, #tpu.memory_space<any>> -> memref<1x16xf32, #tpu.memory_space<any>>
    %c4_i32_60 = arith.constant 4 : i32
    %c0_i32_61 = arith.constant 0 : i32
    %62 = tpu.memref_slice %arg21[%c4_i32_60, %c0_i32_61] : memref<8x16xf32, #tpu.memory_space<vmem>> -> memref<1x16xf32, #tpu.memory_space<vmem>>
    %63 = tpu.memref_slice %arg25[%c1_i32_57, %c4_i32_58] : memref<4x8x!tpu.dma_semaphore, #tpu.memory_space<semaphore_mem>> -> memref<1x1x!tpu.dma_semaphore, #tpu.memory_space<semaphore_mem>>
    %64 = tpu.memref_squeeze %63 : memref<1x1x!tpu.dma_semaphore, #tpu.memory_space<semaphore_mem>> -> memref<!tpu.dma_semaphore, #tpu.memory_space<semaphore_mem>>
    tpu.enqueue_dma source(%61 : memref<1x16xf32, #tpu.memory_space<any>>) target(%62 : memref<1x16xf32, #tpu.memory_space<vmem>>) target_semaphore(%64 : memref<!tpu.dma_semaphore, #tpu.memory_space<semaphore_mem>>)
    %c5_62 = arith.constant 5 : index
    %65 = memref.load %arg2[%c5_62] : memref<8xi32, #tpu.memory_space<smem>>
    %c1_i32_63 = arith.constant 1 : i32
    %c5_i32_64 = arith.constant 5 : i32
    %c0_i32_65 = arith.constant 0 : i32
    %66 = tpu.memref_slice %arg5[%65, %c0_i32_65] : memref<32x16xf32, #tpu.memory_space<any>> -> memref<1x16xf32, #tpu.memory_space<any>>
    %c5_i32_66 = arith.constant 5 : i32
    %c0_i32_67 = arith.constant 0 : i32
    %67 = tpu.memref_slice %arg21[%c5_i32_66, %c0_i32_67] : memref<8x16xf32, #tpu.memory_space<vmem>> -> memref<1x16xf32, #tpu.memory_space<vmem>>
    %68 = tpu.memref_slice %arg25[%c1_i32_63, %c5_i32_64] : memref<4x8x!tpu.dma_semaphore, #tpu.memory_space<semaphore_mem>> -> memref<1x1x!tpu.dma_semaphore, #tpu.memory_space<semaphore_mem>>
    %69 = tpu.memref_squeeze %68 : memref<1x1x!tpu.dma_semaphore, #tpu.memory_space<semaphore_mem>> -> memref<!tpu.dma_semaphore, #tpu.memory_space<semaphore_mem>>
    tpu.enqueue_dma source(%66 : memref<1x16xf32, #tpu.memory_space<any>>) target(%67 : memref<1x16xf32, #tpu.memory_space<vmem>>) target_semaphore(%69 : memref<!tpu.dma_semaphore, #tpu.memory_space<semaphore_mem>>)
    %c6_68 = arith.constant 6 : index
    %70 = memref.load %arg2[%c6_68] : memref<8xi32, #tpu.memory_space<smem>>
    %c1_i32_69 = arith.constant 1 : i32
    %c6_i32_70 = arith.constant 6 : i32
    %c0_i32_71 = arith.constant 0 : i32
    %71 = tpu.memref_slice %arg5[%70, %c0_i32_71] : memref<32x16xf32, #tpu.memory_space<any>> -> memref<1x16xf32, #tpu.memory_space<any>>
    %c6_i32_72 = arith.constant 6 : i32
    %c0_i32_73 = arith.constant 0 : i32
    %72 = tpu.memref_slice %arg21[%c6_i32_72, %c0_i32_73] : memref<8x16xf32, #tpu.memory_space<vmem>> -> memref<1x16xf32, #tpu.memory_space<vmem>>
    %73 = tpu.memref_slice %arg25[%c1_i32_69, %c6_i32_70] : memref<4x8x!tpu.dma_semaphore, #tpu.memory_space<semaphore_mem>> -> memref<1x1x!tpu.dma_semaphore, #tpu.memory_space<semaphore_mem>>
    %74 = tpu.memref_squeeze %73 : memref<1x1x!tpu.dma_semaphore, #tpu.memory_space<semaphore_mem>> -> memref<!tpu.dma_semaphore, #tpu.memory_space<semaphore_mem>>
    tpu.enqueue_dma source(%71 : memref<1x16xf32, #tpu.memory_space<any>>) target(%72 : memref<1x16xf32, #tpu.memory_space<vmem>>) target_semaphore(%74 : memref<!tpu.dma_semaphore, #tpu.memory_space<semaphore_mem>>)
    %c7_74 = arith.constant 7 : index
    %75 = memref.load %arg2[%c7_74] : memref<8xi32, #tpu.memory_space<smem>>
    %c1_i32_75 = arith.constant 1 : i32
    %c7_i32_76 = arith.constant 7 : i32
    %c0_i32_77 = arith.constant 0 : i32
    %76 = tpu.memref_slice %arg5[%75, %c0_i32_77] : memref<32x16xf32, #tpu.memory_space<any>> -> memref<1x16xf32, #tpu.memory_space<any>>
    %c7_i32_78 = arith.constant 7 : i32
    %c0_i32_79 = arith.constant 0 : i32
    %77 = tpu.memref_slice %arg21[%c7_i32_78, %c0_i32_79] : memref<8x16xf32, #tpu.memory_space<vmem>> -> memref<1x16xf32, #tpu.memory_space<vmem>>
    %78 = tpu.memref_slice %arg25[%c1_i32_75, %c7_i32_76] : memref<4x8x!tpu.dma_semaphore, #tpu.memory_space<semaphore_mem>> -> memref<1x1x!tpu.dma_semaphore, #tpu.memory_space<semaphore_mem>>
    %79 = tpu.memref_squeeze %78 : memref<1x1x!tpu.dma_semaphore, #tpu.memory_space<semaphore_mem>> -> memref<!tpu.dma_semaphore, #tpu.memory_space<semaphore_mem>>
    tpu.enqueue_dma source(%76 : memref<1x16xf32, #tpu.memory_space<any>>) target(%77 : memref<1x16xf32, #tpu.memory_space<vmem>>) target_semaphore(%79 : memref<!tpu.dma_semaphore, #tpu.memory_space<semaphore_mem>>)
    %c0_80 = arith.constant 0 : index
    %80 = memref.load %arg1[%c0_80] : memref<8xi32, #tpu.memory_space<smem>>
    %c2_i32_81 = arith.constant 2 : i32
    %c0_i32_82 = arith.constant 0 : i32
    %c0_i32_83 = arith.constant 0 : i32
    %81 = tpu.memref_slice %arg6[%80, %c0_i32_83] : memref<32x16xf32, #tpu.memory_space<any>> -> memref<1x16xf32, #tpu.memory_space<any>>
    %c0_i32_84 = arith.constant 0 : i32
    %c0_i32_85 = arith.constant 0 : i32
    %82 = tpu.memref_slice %arg22[%c0_i32_84, %c0_i32_85] : memref<8x16xf32, #tpu.memory_space<vmem>> -> memref<1x16xf32, #tpu.memory_space<vmem>>
    %83 = tpu.memref_slice %arg25[%c2_i32_81, %c0_i32_82] : memref<4x8x!tpu.dma_semaphore, #tpu.memory_space<semaphore_mem>> -> memref<1x1x!tpu.dma_semaphore, #tpu.memory_space<semaphore_mem>>
    %84 = tpu.memref_squeeze %83 : memref<1x1x!tpu.dma_semaphore, #tpu.memory_space<semaphore_mem>> -> memref<!tpu.dma_semaphore, #tpu.memory_space<semaphore_mem>>
    tpu.enqueue_dma source(%81 : memref<1x16xf32, #tpu.memory_space<any>>) target(%82 : memref<1x16xf32, #tpu.memory_space<vmem>>) target_semaphore(%84 : memref<!tpu.dma_semaphore, #tpu.memory_space<semaphore_mem>>)
    %c1_86 = arith.constant 1 : index
    %85 = memref.load %arg1[%c1_86] : memref<8xi32, #tpu.memory_space<smem>>
    %c2_i32_87 = arith.constant 2 : i32
    %c1_i32_88 = arith.constant 1 : i32
    %c0_i32_89 = arith.constant 0 : i32
    %86 = tpu.memref_slice %arg6[%85, %c0_i32_89] : memref<32x16xf32, #tpu.memory_space<any>> -> memref<1x16xf32, #tpu.memory_space<any>>
    %c1_i32_90 = arith.constant 1 : i32
    %c0_i32_91 = arith.constant 0 : i32
    %87 = tpu.memref_slice %arg22[%c1_i32_90, %c0_i32_91] : memref<8x16xf32, #tpu.memory_space<vmem>> -> memref<1x16xf32, #tpu.memory_space<vmem>>
    %88 = tpu.memref_slice %arg25[%c2_i32_87, %c1_i32_88] : memref<4x8x!tpu.dma_semaphore, #tpu.memory_space<semaphore_mem>> -> memref<1x1x!tpu.dma_semaphore, #tpu.memory_space<semaphore_mem>>
    %89 = tpu.memref_squeeze %88 : memref<1x1x!tpu.dma_semaphore, #tpu.memory_space<semaphore_mem>> -> memref<!tpu.dma_semaphore, #tpu.memory_space<semaphore_mem>>
    tpu.enqueue_dma source(%86 : memref<1x16xf32, #tpu.memory_space<any>>) target(%87 : memref<1x16xf32, #tpu.memory_space<vmem>>) target_semaphore(%89 : memref<!tpu.dma_semaphore, #tpu.memory_space<semaphore_mem>>)
    %c2_92 = arith.constant 2 : index
    %90 = memref.load %arg1[%c2_92] : memref<8xi32, #tpu.memory_space<smem>>
    %c2_i32_93 = arith.constant 2 : i32
    %c2_i32_94 = arith.constant 2 : i32
    %c0_i32_95 = arith.constant 0 : i32
    %91 = tpu.memref_slice %arg6[%90, %c0_i32_95] : memref<32x16xf32, #tpu.memory_space<any>> -> memref<1x16xf32, #tpu.memory_space<any>>
    %c2_i32_96 = arith.constant 2 : i32
    %c0_i32_97 = arith.constant 0 : i32
    %92 = tpu.memref_slice %arg22[%c2_i32_96, %c0_i32_97] : memref<8x16xf32, #tpu.memory_space<vmem>> -> memref<1x16xf32, #tpu.memory_space<vmem>>
    %93 = tpu.memref_slice %arg25[%c2_i32_93, %c2_i32_94] : memref<4x8x!tpu.dma_semaphore, #tpu.memory_space<semaphore_mem>> -> memref<1x1x!tpu.dma_semaphore, #tpu.memory_space<semaphore_mem>>
    %94 = tpu.memref_squeeze %93 : memref<1x1x!tpu.dma_semaphore, #tpu.memory_space<semaphore_mem>> -> memref<!tpu.dma_semaphore, #tpu.memory_space<semaphore_mem>>
    tpu.enqueue_dma source(%91 : memref<1x16xf32, #tpu.memory_space<any>>) target(%92 : memref<1x16xf32, #tpu.memory_space<vmem>>) target_semaphore(%94 : memref<!tpu.dma_semaphore, #tpu.memory_space<semaphore_mem>>)
    %c3_98 = arith.constant 3 : index
    %95 = memref.load %arg1[%c3_98] : memref<8xi32, #tpu.memory_space<smem>>
    %c2_i32_99 = arith.constant 2 : i32
    %c3_i32_100 = arith.constant 3 : i32
    %c0_i32_101 = arith.constant 0 : i32
    %96 = tpu.memref_slice %arg6[%95, %c0_i32_101] : memref<32x16xf32, #tpu.memory_space<any>> -> memref<1x16xf32, #tpu.memory_space<any>>
    %c3_i32_102 = arith.constant 3 : i32
    %c0_i32_103 = arith.constant 0 : i32
    %97 = tpu.memref_slice %arg22[%c3_i32_102, %c0_i32_103] : memref<8x16xf32, #tpu.memory_space<vmem>> -> memref<1x16xf32, #tpu.memory_space<vmem>>
    %98 = tpu.memref_slice %arg25[%c2_i32_99, %c3_i32_100] : memref<4x8x!tpu.dma_semaphore, #tpu.memory_space<semaphore_mem>> -> memref<1x1x!tpu.dma_semaphore, #tpu.memory_space<semaphore_mem>>
    %99 = tpu.memref_squeeze %98 : memref<1x1x!tpu.dma_semaphore, #tpu.memory_space<semaphore_mem>> -> memref<!tpu.dma_semaphore, #tpu.memory_space<semaphore_mem>>
    tpu.enqueue_dma source(%96 : memref<1x16xf32, #tpu.memory_space<any>>) target(%97 : memref<1x16xf32, #tpu.memory_space<vmem>>) target_semaphore(%99 : memref<!tpu.dma_semaphore, #tpu.memory_space<semaphore_mem>>)
    %c4_104 = arith.constant 4 : index
    %100 = memref.load %arg1[%c4_104] : memref<8xi32, #tpu.memory_space<smem>>
    %c2_i32_105 = arith.constant 2 : i32
    %c4_i32_106 = arith.constant 4 : i32
    %c0_i32_107 = arith.constant 0 : i32
    %101 = tpu.memref_slice %arg6[%100, %c0_i32_107] : memref<32x16xf32, #tpu.memory_space<any>> -> memref<1x16xf32, #tpu.memory_space<any>>
    %c4_i32_108 = arith.constant 4 : i32
    %c0_i32_109 = arith.constant 0 : i32
    %102 = tpu.memref_slice %arg22[%c4_i32_108, %c0_i32_109] : memref<8x16xf32, #tpu.memory_space<vmem>> -> memref<1x16xf32, #tpu.memory_space<vmem>>
    %103 = tpu.memref_slice %arg25[%c2_i32_105, %c4_i32_106] : memref<4x8x!tpu.dma_semaphore, #tpu.memory_space<semaphore_mem>> -> memref<1x1x!tpu.dma_semaphore, #tpu.memory_space<semaphore_mem>>
    %104 = tpu.memref_squeeze %103 : memref<1x1x!tpu.dma_semaphore, #tpu.memory_space<semaphore_mem>> -> memref<!tpu.dma_semaphore, #tpu.memory_space<semaphore_mem>>
    tpu.enqueue_dma source(%101 : memref<1x16xf32, #tpu.memory_space<any>>) target(%102 : memref<1x16xf32, #tpu.memory_space<vmem>>) target_semaphore(%104 : memref<!tpu.dma_semaphore, #tpu.memory_space<semaphore_mem>>)
    %c5_110 = arith.constant 5 : index
    %105 = memref.load %arg1[%c5_110] : memref<8xi32, #tpu.memory_space<smem>>
    %c2_i32_111 = arith.constant 2 : i32
    %c5_i32_112 = arith.constant 5 : i32
    %c0_i32_113 = arith.constant 0 : i32
    %106 = tpu.memref_slice %arg6[%105, %c0_i32_113] : memref<32x16xf32, #tpu.memory_space<any>> -> memref<1x16xf32, #tpu.memory_space<any>>
    %c5_i32_114 = arith.constant 5 : i32
    %c0_i32_115 = arith.constant 0 : i32
    %107 = tpu.memref_slice %arg22[%c5_i32_114, %c0_i32_115] : memref<8x16xf32, #tpu.memory_space<vmem>> -> memref<1x16xf32, #tpu.memory_space<vmem>>
    %108 = tpu.memref_slice %arg25[%c2_i32_111, %c5_i32_112] : memref<4x8x!tpu.dma_semaphore, #tpu.memory_space<semaphore_mem>> -> memref<1x1x!tpu.dma_semaphore, #tpu.memory_space<semaphore_mem>>
    %109 = tpu.memref_squeeze %108 : memref<1x1x!tpu.dma_semaphore, #tpu.memory_space<semaphore_mem>> -> memref<!tpu.dma_semaphore, #tpu.memory_space<semaphore_mem>>
    tpu.enqueue_dma source(%106 : memref<1x16xf32, #tpu.memory_space<any>>) target(%107 : memref<1x16xf32, #tpu.memory_space<vmem>>) target_semaphore(%109 : memref<!tpu.dma_semaphore, #tpu.memory_space<semaphore_mem>>)
    %c6_116 = arith.constant 6 : index
    %110 = memref.load %arg1[%c6_116] : memref<8xi32, #tpu.memory_space<smem>>
    %c2_i32_117 = arith.constant 2 : i32
    %c6_i32_118 = arith.constant 6 : i32
    %c0_i32_119 = arith.constant 0 : i32
    %111 = tpu.memref_slice %arg6[%110, %c0_i32_119] : memref<32x16xf32, #tpu.memory_space<any>> -> memref<1x16xf32, #tpu.memory_space<any>>
    %c6_i32_120 = arith.constant 6 : i32
    %c0_i32_121 = arith.constant 0 : i32
    %112 = tpu.memref_slice %arg22[%c6_i32_120, %c0_i32_121] : memref<8x16xf32, #tpu.memory_space<vmem>> -> memref<1x16xf32, #tpu.memory_space<vmem>>
    %113 = tpu.memref_slice %arg25[%c2_i32_117, %c6_i32_118] : memref<4x8x!tpu.dma_semaphore, #tpu.memory_space<semaphore_mem>> -> memref<1x1x!tpu.dma_semaphore, #tpu.memory_space<semaphore_mem>>
    %114 = tpu.memref_squeeze %113 : memref<1x1x!tpu.dma_semaphore, #tpu.memory_space<semaphore_mem>> -> memref<!tpu.dma_semaphore, #tpu.memory_space<semaphore_mem>>
    tpu.enqueue_dma source(%111 : memref<1x16xf32, #tpu.memory_space<any>>) target(%112 : memref<1x16xf32, #tpu.memory_space<vmem>>) target_semaphore(%114 : memref<!tpu.dma_semaphore, #tpu.memory_space<semaphore_mem>>)
    %c7_122 = arith.constant 7 : index
    %115 = memref.load %arg1[%c7_122] : memref<8xi32, #tpu.memory_space<smem>>
    %c2_i32_123 = arith.constant 2 : i32
    %c7_i32_124 = arith.constant 7 : i32
    %c0_i32_125 = arith.constant 0 : i32
    %116 = tpu.memref_slice %arg6[%115, %c0_i32_125] : memref<32x16xf32, #tpu.memory_space<any>> -> memref<1x16xf32, #tpu.memory_space<any>>
    %c7_i32_126 = arith.constant 7 : i32
    %c0_i32_127 = arith.constant 0 : i32
    %117 = tpu.memref_slice %arg22[%c7_i32_126, %c0_i32_127] : memref<8x16xf32, #tpu.memory_space<vmem>> -> memref<1x16xf32, #tpu.memory_space<vmem>>
    %118 = tpu.memref_slice %arg25[%c2_i32_123, %c7_i32_124] : memref<4x8x!tpu.dma_semaphore, #tpu.memory_space<semaphore_mem>> -> memref<1x1x!tpu.dma_semaphore, #tpu.memory_space<semaphore_mem>>
    %119 = tpu.memref_squeeze %118 : memref<1x1x!tpu.dma_semaphore, #tpu.memory_space<semaphore_mem>> -> memref<!tpu.dma_semaphore, #tpu.memory_space<semaphore_mem>>
    tpu.enqueue_dma source(%116 : memref<1x16xf32, #tpu.memory_space<any>>) target(%117 : memref<1x16xf32, #tpu.memory_space<vmem>>) target_semaphore(%119 : memref<!tpu.dma_semaphore, #tpu.memory_space<semaphore_mem>>)
    %c0_128 = arith.constant 0 : index
    %120 = memref.load %arg2[%c0_128] : memref<8xi32, #tpu.memory_space<smem>>
    %c3_i32_129 = arith.constant 3 : i32
    %c0_i32_130 = arith.constant 0 : i32
    %c0_i32_131 = arith.constant 0 : i32
    %121 = tpu.memref_slice %arg7[%120, %c0_i32_131] : memref<32x16xf32, #tpu.memory_space<any>> -> memref<1x16xf32, #tpu.memory_space<any>>
    %c0_i32_132 = arith.constant 0 : i32
    %c0_i32_133 = arith.constant 0 : i32
    %122 = tpu.memref_slice %arg23[%c0_i32_132, %c0_i32_133] : memref<8x16xf32, #tpu.memory_space<vmem>> -> memref<1x16xf32, #tpu.memory_space<vmem>>
    %123 = tpu.memref_slice %arg25[%c3_i32_129, %c0_i32_130] : memref<4x8x!tpu.dma_semaphore, #tpu.memory_space<semaphore_mem>> -> memref<1x1x!tpu.dma_semaphore, #tpu.memory_space<semaphore_mem>>
    %124 = tpu.memref_squeeze %123 : memref<1x1x!tpu.dma_semaphore, #tpu.memory_space<semaphore_mem>> -> memref<!tpu.dma_semaphore, #tpu.memory_space<semaphore_mem>>
    tpu.enqueue_dma source(%121 : memref<1x16xf32, #tpu.memory_space<any>>) target(%122 : memref<1x16xf32, #tpu.memory_space<vmem>>) target_semaphore(%124 : memref<!tpu.dma_semaphore, #tpu.memory_space<semaphore_mem>>)
    %c1_134 = arith.constant 1 : index
    %125 = memref.load %arg2[%c1_134] : memref<8xi32, #tpu.memory_space<smem>>
    %c3_i32_135 = arith.constant 3 : i32
    %c1_i32_136 = arith.constant 1 : i32
    %c0_i32_137 = arith.constant 0 : i32
    %126 = tpu.memref_slice %arg7[%125, %c0_i32_137] : memref<32x16xf32, #tpu.memory_space<any>> -> memref<1x16xf32, #tpu.memory_space<any>>
    %c1_i32_138 = arith.constant 1 : i32
    %c0_i32_139 = arith.constant 0 : i32
    %127 = tpu.memref_slice %arg23[%c1_i32_138, %c0_i32_139] : memref<8x16xf32, #tpu.memory_space<vmem>> -> memref<1x16xf32, #tpu.memory_space<vmem>>
    %128 = tpu.memref_slice %arg25[%c3_i32_135, %c1_i32_136] : memref<4x8x!tpu.dma_semaphore, #tpu.memory_space<semaphore_mem>> -> memref<1x1x!tpu.dma_semaphore, #tpu.memory_space<semaphore_mem>>
    %129 = tpu.memref_squeeze %128 : memref<1x1x!tpu.dma_semaphore, #tpu.memory_space<semaphore_mem>> -> memref<!tpu.dma_semaphore, #tpu.memory_space<semaphore_mem>>
    tpu.enqueue_dma source(%126 : memref<1x16xf32, #tpu.memory_space<any>>) target(%127 : memref<1x16xf32, #tpu.memory_space<vmem>>) target_semaphore(%129 : memref<!tpu.dma_semaphore, #tpu.memory_space<semaphore_mem>>)
    %c2_140 = arith.constant 2 : index
    %130 = memref.load %arg2[%c2_140] : memref<8xi32, #tpu.memory_space<smem>>
    %c3_i32_141 = arith.constant 3 : i32
    %c2_i32_142 = arith.constant 2 : i32
    %c0_i32_143 = arith.constant 0 : i32
    %131 = tpu.memref_slice %arg7[%130, %c0_i32_143] : memref<32x16xf32, #tpu.memory_space<any>> -> memref<1x16xf32, #tpu.memory_space<any>>
    %c2_i32_144 = arith.constant 2 : i32
    %c0_i32_145 = arith.constant 0 : i32
    %132 = tpu.memref_slice %arg23[%c2_i32_144, %c0_i32_145] : memref<8x16xf32, #tpu.memory_space<vmem>> -> memref<1x16xf32, #tpu.memory_space<vmem>>
    %133 = tpu.memref_slice %arg25[%c3_i32_141, %c2_i32_142] : memref<4x8x!tpu.dma_semaphore, #tpu.memory_space<semaphore_mem>> -> memref<1x1x!tpu.dma_semaphore, #tpu.memory_space<semaphore_mem>>
    %134 = tpu.memref_squeeze %133 : memref<1x1x!tpu.dma_semaphore, #tpu.memory_space<semaphore_mem>> -> memref<!tpu.dma_semaphore, #tpu.memory_space<semaphore_mem>>
    tpu.enqueue_dma source(%131 : memref<1x16xf32, #tpu.memory_space<any>>) target(%132 : memref<1x16xf32, #tpu.memory_space<vmem>>) target_semaphore(%134 : memref<!tpu.dma_semaphore, #tpu.memory_space<semaphore_mem>>)
    %c3_146 = arith.constant 3 : index
    %135 = memref.load %arg2[%c3_146] : memref<8xi32, #tpu.memory_space<smem>>
    %c3_i32_147 = arith.constant 3 : i32
    %c3_i32_148 = arith.constant 3 : i32
    %c0_i32_149 = arith.constant 0 : i32
    %136 = tpu.memref_slice %arg7[%135, %c0_i32_149] : memref<32x16xf32, #tpu.memory_space<any>> -> memref<1x16xf32, #tpu.memory_space<any>>
    %c3_i32_150 = arith.constant 3 : i32
    %c0_i32_151 = arith.constant 0 : i32
    %137 = tpu.memref_slice %arg23[%c3_i32_150, %c0_i32_151] : memref<8x16xf32, #tpu.memory_space<vmem>> -> memref<1x16xf32, #tpu.memory_space<vmem>>
    %138 = tpu.memref_slice %arg25[%c3_i32_147, %c3_i32_148] : memref<4x8x!tpu.dma_semaphore, #tpu.memory_space<semaphore_mem>> -> memref<1x1x!tpu.dma_semaphore, #tpu.memory_space<semaphore_mem>>
    %139 = tpu.memref_squeeze %138 : memref<1x1x!tpu.dma_semaphore, #tpu.memory_space<semaphore_mem>> -> memref<!tpu.dma_semaphore, #tpu.memory_space<semaphore_mem>>
    tpu.enqueue_dma source(%136 : memref<1x16xf32, #tpu.memory_space<any>>) target(%137 : memref<1x16xf32, #tpu.memory_space<vmem>>) target_semaphore(%139 : memref<!tpu.dma_semaphore, #tpu.memory_space<semaphore_mem>>)
    %c4_152 = arith.constant 4 : index
    %140 = memref.load %arg2[%c4_152] : memref<8xi32, #tpu.memory_space<smem>>
    %c3_i32_153 = arith.constant 3 : i32
    %c4_i32_154 = arith.constant 4 : i32
    %c0_i32_155 = arith.constant 0 : i32
    %141 = tpu.memref_slice %arg7[%140, %c0_i32_155] : memref<32x16xf32, #tpu.memory_space<any>> -> memref<1x16xf32, #tpu.memory_space<any>>
    %c4_i32_156 = arith.constant 4 : i32
    %c0_i32_157 = arith.constant 0 : i32
    %142 = tpu.memref_slice %arg23[%c4_i32_156, %c0_i32_157] : memref<8x16xf32, #tpu.memory_space<vmem>> -> memref<1x16xf32, #tpu.memory_space<vmem>>
    %143 = tpu.memref_slice %arg25[%c3_i32_153, %c4_i32_154] : memref<4x8x!tpu.dma_semaphore, #tpu.memory_space<semaphore_mem>> -> memref<1x1x!tpu.dma_semaphore, #tpu.memory_space<semaphore_mem>>
    %144 = tpu.memref_squeeze %143 : memref<1x1x!tpu.dma_semaphore, #tpu.memory_space<semaphore_mem>> -> memref<!tpu.dma_semaphore, #tpu.memory_space<semaphore_mem>>
    tpu.enqueue_dma source(%141 : memref<1x16xf32, #tpu.memory_space<any>>) target(%142 : memref<1x16xf32, #tpu.memory_space<vmem>>) target_semaphore(%144 : memref<!tpu.dma_semaphore, #tpu.memory_space<semaphore_mem>>)
    %c5_158 = arith.constant 5 : index
    %145 = memref.load %arg2[%c5_158] : memref<8xi32, #tpu.memory_space<smem>>
    %c3_i32_159 = arith.constant 3 : i32
    %c5_i32_160 = arith.constant 5 : i32
    %c0_i32_161 = arith.constant 0 : i32
    %146 = tpu.memref_slice %arg7[%145, %c0_i32_161] : memref<32x16xf32, #tpu.memory_space<any>> -> memref<1x16xf32, #tpu.memory_space<any>>
    %c5_i32_162 = arith.constant 5 : i32
    %c0_i32_163 = arith.constant 0 : i32
    %147 = tpu.memref_slice %arg23[%c5_i32_162, %c0_i32_163] : memref<8x16xf32, #tpu.memory_space<vmem>> -> memref<1x16xf32, #tpu.memory_space<vmem>>
    %148 = tpu.memref_slice %arg25[%c3_i32_159, %c5_i32_160] : memref<4x8x!tpu.dma_semaphore, #tpu.memory_space<semaphore_mem>> -> memref<1x1x!tpu.dma_semaphore, #tpu.memory_space<semaphore_mem>>
    %149 = tpu.memref_squeeze %148 : memref<1x1x!tpu.dma_semaphore, #tpu.memory_space<semaphore_mem>> -> memref<!tpu.dma_semaphore, #tpu.memory_space<semaphore_mem>>
    tpu.enqueue_dma source(%146 : memref<1x16xf32, #tpu.memory_space<any>>) target(%147 : memref<1x16xf32, #tpu.memory_space<vmem>>) target_semaphore(%149 : memref<!tpu.dma_semaphore, #tpu.memory_space<semaphore_mem>>)
    %c6_164 = arith.constant 6 : index
    %150 = memref.load %arg2[%c6_164] : memref<8xi32, #tpu.memory_space<smem>>
    %c3_i32_165 = arith.constant 3 : i32
    %c6_i32_166 = arith.constant 6 : i32
    %c0_i32_167 = arith.constant 0 : i32
    %151 = tpu.memref_slice %arg7[%150, %c0_i32_167] : memref<32x16xf32, #tpu.memory_space<any>> -> memref<1x16xf32, #tpu.memory_space<any>>
    %c6_i32_168 = arith.constant 6 : i32
    %c0_i32_169 = arith.constant 0 : i32
    %152 = tpu.memref_slice %arg23[%c6_i32_168, %c0_i32_169] : memref<8x16xf32, #tpu.memory_space<vmem>> -> memref<1x16xf32, #tpu.memory_space<vmem>>
    %153 = tpu.memref_slice %arg25[%c3_i32_165, %c6_i32_166] : memref<4x8x!tpu.dma_semaphore, #tpu.memory_space<semaphore_mem>> -> memref<1x1x!tpu.dma_semaphore, #tpu.memory_space<semaphore_mem>>
    %154 = tpu.memref_squeeze %153 : memref<1x1x!tpu.dma_semaphore, #tpu.memory_space<semaphore_mem>> -> memref<!tpu.dma_semaphore, #tpu.memory_space<semaphore_mem>>
    tpu.enqueue_dma source(%151 : memref<1x16xf32, #tpu.memory_space<any>>) target(%152 : memref<1x16xf32, #tpu.memory_space<vmem>>) target_semaphore(%154 : memref<!tpu.dma_semaphore, #tpu.memory_space<semaphore_mem>>)
    %c7_170 = arith.constant 7 : index
    %155 = memref.load %arg2[%c7_170] : memref<8xi32, #tpu.memory_space<smem>>
    %c3_i32_171 = arith.constant 3 : i32
    %c7_i32_172 = arith.constant 7 : i32
    %c0_i32_173 = arith.constant 0 : i32
    %156 = tpu.memref_slice %arg7[%155, %c0_i32_173] : memref<32x16xf32, #tpu.memory_space<any>> -> memref<1x16xf32, #tpu.memory_space<any>>
    %c7_i32_174 = arith.constant 7 : i32
    %c0_i32_175 = arith.constant 0 : i32
    %157 = tpu.memref_slice %arg23[%c7_i32_174, %c0_i32_175] : memref<8x16xf32, #tpu.memory_space<vmem>> -> memref<1x16xf32, #tpu.memory_space<vmem>>
    %158 = tpu.memref_slice %arg25[%c3_i32_171, %c7_i32_172] : memref<4x8x!tpu.dma_semaphore, #tpu.memory_space<semaphore_mem>> -> memref<1x1x!tpu.dma_semaphore, #tpu.memory_space<semaphore_mem>>
    %159 = tpu.memref_squeeze %158 : memref<1x1x!tpu.dma_semaphore, #tpu.memory_space<semaphore_mem>> -> memref<!tpu.dma_semaphore, #tpu.memory_space<semaphore_mem>>
    tpu.enqueue_dma source(%156 : memref<1x16xf32, #tpu.memory_space<any>>) target(%157 : memref<1x16xf32, #tpu.memory_space<vmem>>) target_semaphore(%159 : memref<!tpu.dma_semaphore, #tpu.memory_space<semaphore_mem>>)
    %c0_176 = arith.constant 0 : index
    %c0_177 = arith.constant 0 : index
    %160 = memref.load %arg3[%c0_176, %c0_177] : memref<8x8xi32, #tpu.memory_space<smem>>
    %161 = arith.index_cast %160 : i32 to index
    %c0_178 = arith.constant 0 : index
    %162 = vector.load %arg8[%161, %c0_178] : memref<16x16xf32, #tpu.memory_space<vmem>>, vector<1x16xf32>
    %c0_179 = arith.constant 0 : index
    %c0_180 = arith.constant 0 : index
    %c0_181 = arith.constant 0 : index
    %163 = vector.load %arg24[%c0_179, %c0_180, %c0_181] : memref<8x8x16xf32, #tpu.memory_space<vmem>>, vector<1x1x16xf32>
    %164 = vector.shape_cast %163 : vector<1x1x16xf32> to vector<1x16xf32>
    %165 = vector.shape_cast %162 : vector<1x16xf32> to vector<1x1x16xf32>
    tpu.vector_store %arg24[%c0_179, %c0_180, %c0_181], %165 {strides = array<i32>} : memref<8x8x16xf32, #tpu.memory_space<vmem>>, vector<1x1x16xf32>,
    %c0_182 = arith.constant 0 : index
    %c1_183 = arith.constant 1 : index
    %166 = memref.load %arg3[%c0_182, %c1_183] : memref<8x8xi32, #tpu.memory_space<smem>>
    %167 = arith.index_cast %166 : i32 to index
    %c0_184 = arith.constant 0 : index
    %168 = vector.load %arg8[%167, %c0_184] : memref<16x16xf32, #tpu.memory_space<vmem>>, vector<1x16xf32>
    %c0_185 = arith.constant 0 : index
    %c1_186 = arith.constant 1 : index
    %c0_187 = arith.constant 0 : index
    %169 = vector.load %arg24[%c0_185, %c1_186, %c0_187] : memref<8x8x16xf32, #tpu.memory_space<vmem>>, vector<1x1x16xf32>
    %170 = vector.shape_cast %169 : vector<1x1x16xf32> to vector<1x16xf32>
    %171 = vector.shape_cast %168 : vector<1x16xf32> to vector<1x1x16xf32>
    tpu.vector_store %arg24[%c0_185, %c1_186, %c0_187], %171 {strides = array<i32>} : memref<8x8x16xf32, #tpu.memory_space<vmem>>, vector<1x1x16xf32>,
    %c0_188 = arith.constant 0 : index
    %c2_189 = arith.constant 2 : index
    %172 = memref.load %arg3[%c0_188, %c2_189] : memref<8x8xi32, #tpu.memory_space<smem>>
    %173 = arith.index_cast %172 : i32 to index
    %c0_190 = arith.constant 0 : index
    %174 = vector.load %arg8[%173, %c0_190] : memref<16x16xf32, #tpu.memory_space<vmem>>, vector<1x16xf32>
    %c0_191 = arith.constant 0 : index
    %c2_192 = arith.constant 2 : index
    %c0_193 = arith.constant 0 : index
    %175 = vector.load %arg24[%c0_191, %c2_192, %c0_193] : memref<8x8x16xf32, #tpu.memory_space<vmem>>, vector<1x1x16xf32>
    %176 = vector.shape_cast %175 : vector<1x1x16xf32> to vector<1x16xf32>
    %177 = vector.shape_cast %174 : vector<1x16xf32> to vector<1x1x16xf32>
    tpu.vector_store %arg24[%c0_191, %c2_192, %c0_193], %177 {strides = array<i32>} : memref<8x8x16xf32, #tpu.memory_space<vmem>>, vector<1x1x16xf32>,
    %c0_194 = arith.constant 0 : index
    %c3_195 = arith.constant 3 : index
    %178 = memref.load %arg3[%c0_194, %c3_195] : memref<8x8xi32, #tpu.memory_space<smem>>
    %179 = arith.index_cast %178 : i32 to index
    %c0_196 = arith.constant 0 : index
    %180 = vector.load %arg8[%179, %c0_196] : memref<16x16xf32, #tpu.memory_space<vmem>>, vector<1x16xf32>
    %c0_197 = arith.constant 0 : index
    %c3_198 = arith.constant 3 : index
    %c0_199 = arith.constant 0 : index
    %181 = vector.load %arg24[%c0_197, %c3_198, %c0_199] : memref<8x8x16xf32, #tpu.memory_space<vmem>>, vector<1x1x16xf32>
    %182 = vector.shape_cast %181 : vector<1x1x16xf32> to vector<1x16xf32>
    %183 = vector.shape_cast %180 : vector<1x16xf32> to vector<1x1x16xf32>
    tpu.vector_store %arg24[%c0_197, %c3_198, %c0_199], %183 {strides = array<i32>} : memref<8x8x16xf32, #tpu.memory_space<vmem>>, vector<1x1x16xf32>,
    %c0_200 = arith.constant 0 : index
    %c4_201 = arith.constant 4 : index
    %184 = memref.load %arg3[%c0_200, %c4_201] : memref<8x8xi32, #tpu.memory_space<smem>>
    %185 = arith.index_cast %184 : i32 to index
    %c0_202 = arith.constant 0 : index
    %186 = vector.load %arg8[%185, %c0_202] : memref<16x16xf32, #tpu.memory_space<vmem>>, vector<1x16xf32>
    %c0_203 = arith.constant 0 : index
    %c4_204 = arith.constant 4 : index
    %c0_205 = arith.constant 0 : index
    %187 = vector.load %arg24[%c0_203, %c4_204, %c0_205] : memref<8x8x16xf32, #tpu.memory_space<vmem>>, vector<1x1x16xf32>
    %188 = vector.shape_cast %187 : vector<1x1x16xf32> to vector<1x16xf32>
    %189 = vector.shape_cast %186 : vector<1x16xf32> to vector<1x1x16xf32>
    tpu.vector_store %arg24[%c0_203, %c4_204, %c0_205], %189 {strides = array<i32>} : memref<8x8x16xf32, #tpu.memory_space<vmem>>, vector<1x1x16xf32>,
    %c0_206 = arith.constant 0 : index
    %c5_207 = arith.constant 5 : index
    %190 = memref.load %arg3[%c0_206, %c5_207] : memref<8x8xi32, #tpu.memory_space<smem>>
    %191 = arith.index_cast %190 : i32 to index
    %c0_208 = arith.constant 0 : index
    %192 = vector.load %arg8[%191, %c0_208] : memref<16x16xf32, #tpu.memory_space<vmem>>, vector<1x16xf32>
    %c0_209 = arith.constant 0 : index
    %c5_210 = arith.constant 5 : index
    %c0_211 = arith.constant 0 : index
    %193 = vector.load %arg24[%c0_209, %c5_210, %c0_211] : memref<8x8x16xf32, #tpu.memory_space<vmem>>, vector<1x1x16xf32>
    %194 = vector.shape_cast %193 : vector<1x1x16xf32> to vector<1x16xf32>
    %195 = vector.shape_cast %192 : vector<1x16xf32> to vector<1x1x16xf32>
    tpu.vector_store %arg24[%c0_209, %c5_210, %c0_211], %195 {strides = array<i32>} : memref<8x8x16xf32, #tpu.memory_space<vmem>>, vector<1x1x16xf32>,
    %c0_212 = arith.constant 0 : index
    %c6_213 = arith.constant 6 : index
    %196 = memref.load %arg3[%c0_212, %c6_213] : memref<8x8xi32, #tpu.memory_space<smem>>
    %197 = arith.index_cast %196 : i32 to index
    %c0_214 = arith.constant 0 : index
    %198 = vector.load %arg8[%197, %c0_214] : memref<16x16xf32, #tpu.memory_space<vmem>>, vector<1x16xf32>
    %c0_215 = arith.constant 0 : index
    %c6_216 = arith.constant 6 : index
    %c0_217 = arith.constant 0 : index
    %199 = vector.load %arg24[%c0_215, %c6_216, %c0_217] : memref<8x8x16xf32, #tpu.memory_space<vmem>>, vector<1x1x16xf32>
    %200 = vector.shape_cast %199 : vector<1x1x16xf32> to vector<1x16xf32>
    %201 = vector.shape_cast %198 : vector<1x16xf32> to vector<1x1x16xf32>
    tpu.vector_store %arg24[%c0_215, %c6_216, %c0_217], %201 {strides = array<i32>} : memref<8x8x16xf32, #tpu.memory_space<vmem>>, vector<1x1x16xf32>,
    %c0_218 = arith.constant 0 : index
    %c7_219 = arith.constant 7 : index
    %202 = memref.load %arg3[%c0_218, %c7_219] : memref<8x8xi32, #tpu.memory_space<smem>>
    %203 = arith.index_cast %202 : i32 to index
    %c0_220 = arith.constant 0 : index
    %204 = vector.load %arg8[%203, %c0_220] : memref<16x16xf32, #tpu.memory_space<vmem>>, vector<1x16xf32>
    %c0_221 = arith.constant 0 : index
    %c7_222 = arith.constant 7 : index
    %c0_223 = arith.constant 0 : index
    %205 = vector.load %arg24[%c0_221, %c7_222, %c0_223] : memref<8x8x16xf32, #tpu.memory_space<vmem>>, vector<1x1x16xf32>
    %206 = vector.shape_cast %205 : vector<1x1x16xf32> to vector<1x16xf32>
    %207 = vector.shape_cast %204 : vector<1x16xf32> to vector<1x1x16xf32>
    tpu.vector_store %arg24[%c0_221, %c7_222, %c0_223], %207 {strides = array<i32>} : memref<8x8x16xf32, #tpu.memory_space<vmem>>, vector<1x1x16xf32>,
    %c1_224 = arith.constant 1 : index
    %c0_225 = arith.constant 0 : index
    %208 = memref.load %arg3[%c1_224, %c0_225] : memref<8x8xi32, #tpu.memory_space<smem>>
    %209 = arith.index_cast %208 : i32 to index
    %c0_226 = arith.constant 0 : index
    %210 = vector.load %arg8[%209, %c0_226] : memref<16x16xf32, #tpu.memory_space<vmem>>, vector<1x16xf32>
    %c1_227 = arith.constant 1 : index
    %c0_228 = arith.constant 0 : index
    %c0_229 = arith.constant 0 : index
    %211 = vector.load %arg24[%c1_227, %c0_228, %c0_229] : memref<8x8x16xf32, #tpu.memory_space<vmem>>, vector<1x1x16xf32>
    %212 = vector.shape_cast %211 : vector<1x1x16xf32> to vector<1x16xf32>
    %213 = vector.shape_cast %210 : vector<1x16xf32> to vector<1x1x16xf32>
    tpu.vector_store %arg24[%c1_227, %c0_228, %c0_229], %213 {strides = array<i32>} : memref<8x8x16xf32, #tpu.memory_space<vmem>>, vector<1x1x16xf32>,
    %c1_230 = arith.constant 1 : index
    %c1_231 = arith.constant 1 : index
    %214 = memref.load %arg3[%c1_230, %c1_231] : memref<8x8xi32, #tpu.memory_space<smem>>
    %215 = arith.index_cast %214 : i32 to index
    %c0_232 = arith.constant 0 : index
    %216 = vector.load %arg8[%215, %c0_232] : memref<16x16xf32, #tpu.memory_space<vmem>>, vector<1x16xf32>
    %c1_233 = arith.constant 1 : index
    %c1_234 = arith.constant 1 : index
    %c0_235 = arith.constant 0 : index
    %217 = vector.load %arg24[%c1_233, %c1_234, %c0_235] : memref<8x8x16xf32, #tpu.memory_space<vmem>>, vector<1x1x16xf32>
    %218 = vector.shape_cast %217 : vector<1x1x16xf32> to vector<1x16xf32>
    %219 = vector.shape_cast %216 : vector<1x16xf32> to vector<1x1x16xf32>
    tpu.vector_store %arg24[%c1_233, %c1_234, %c0_235], %219 {strides = array<i32>} : memref<8x8x16xf32, #tpu.memory_space<vmem>>, vector<1x1x16xf32>,
    %c1_236 = arith.constant 1 : index
    %c2_237 = arith.constant 2 : index
    %220 = memref.load %arg3[%c1_236, %c2_237] : memref<8x8xi32, #tpu.memory_space<smem>>
    %221 = arith.index_cast %220 : i32 to index
    %c0_238 = arith.constant 0 : index
    %222 = vector.load %arg8[%221, %c0_238] : memref<16x16xf32, #tpu.memory_space<vmem>>, vector<1x16xf32>
    %c1_239 = arith.constant 1 : index
    %c2_240 = arith.constant 2 : index
    %c0_241 = arith.constant 0 : index
    %223 = vector.load %arg24[%c1_239, %c2_240, %c0_241] : memref<8x8x16xf32, #tpu.memory_space<vmem>>, vector<1x1x16xf32>
    %224 = vector.shape_cast %223 : vector<1x1x16xf32> to vector<1x16xf32>
    %225 = vector.shape_cast %222 : vector<1x16xf32> to vector<1x1x16xf32>
    tpu.vector_store %arg24[%c1_239, %c2_240, %c0_241], %225 {strides = array<i32>} : memref<8x8x16xf32, #tpu.memory_space<vmem>>, vector<1x1x16xf32>,
    %c1_242 = arith.constant 1 : index
    %c3_243 = arith.constant 3 : index
    %226 = memref.load %arg3[%c1_242, %c3_243] : memref<8x8xi32, #tpu.memory_space<smem>>
    %227 = arith.index_cast %226 : i32 to index
    %c0_244 = arith.constant 0 : index
    %228 = vector.load %arg8[%227, %c0_244] : memref<16x16xf32, #tpu.memory_space<vmem>>, vector<1x16xf32>
    %c1_245 = arith.constant 1 : index
    %c3_246 = arith.constant 3 : index
    %c0_247 = arith.constant 0 : index
    %229 = vector.load %arg24[%c1_245, %c3_246, %c0_247] : memref<8x8x16xf32, #tpu.memory_space<vmem>>, vector<1x1x16xf32>
    %230 = vector.shape_cast %229 : vector<1x1x16xf32> to vector<1x16xf32>
    %231 = vector.shape_cast %228 : vector<1x16xf32> to vector<1x1x16xf32>
    tpu.vector_store %arg24[%c1_245, %c3_246, %c0_247], %231 {strides = array<i32>} : memref<8x8x16xf32, #tpu.memory_space<vmem>>, vector<1x1x16xf32>,
    %c1_248 = arith.constant 1 : index
    %c4_249 = arith.constant 4 : index
    %232 = memref.load %arg3[%c1_248, %c4_249] : memref<8x8xi32, #tpu.memory_space<smem>>
    %233 = arith.index_cast %232 : i32 to index
    %c0_250 = arith.constant 0 : index
    %234 = vector.load %arg8[%233, %c0_250] : memref<16x16xf32, #tpu.memory_space<vmem>>, vector<1x16xf32>
    %c1_251 = arith.constant 1 : index
    %c4_252 = arith.constant 4 : index
    %c0_253 = arith.constant 0 : index
    %235 = vector.load %arg24[%c1_251, %c4_252, %c0_253] : memref<8x8x16xf32, #tpu.memory_space<vmem>>, vector<1x1x16xf32>
    %236 = vector.shape_cast %235 : vector<1x1x16xf32> to vector<1x16xf32>
    %237 = vector.shape_cast %234 : vector<1x16xf32> to vector<1x1x16xf32>
    tpu.vector_store %arg24[%c1_251, %c4_252, %c0_253], %237 {strides = array<i32>} : memref<8x8x16xf32, #tpu.memory_space<vmem>>, vector<1x1x16xf32>,
    %c1_254 = arith.constant 1 : index
    %c5_255 = arith.constant 5 : index
    %238 = memref.load %arg3[%c1_254, %c5_255] : memref<8x8xi32, #tpu.memory_space<smem>>
    %239 = arith.index_cast %238 : i32 to index
    %c0_256 = arith.constant 0 : index
    %240 = vector.load %arg8[%239, %c0_256] : memref<16x16xf32, #tpu.memory_space<vmem>>, vector<1x16xf32>
    %c1_257 = arith.constant 1 : index
    %c5_258 = arith.constant 5 : index
    %c0_259 = arith.constant 0 : index
    %241 = vector.load %arg24[%c1_257, %c5_258, %c0_259] : memref<8x8x16xf32, #tpu.memory_space<vmem>>, vector<1x1x16xf32>
    %242 = vector.shape_cast %241 : vector<1x1x16xf32> to vector<1x16xf32>
    %243 = vector.shape_cast %240 : vector<1x16xf32> to vector<1x1x16xf32>
    tpu.vector_store %arg24[%c1_257, %c5_258, %c0_259], %243 {strides = array<i32>} : memref<8x8x16xf32, #tpu.memory_space<vmem>>, vector<1x1x16xf32>,
    %c1_260 = arith.constant 1 : index
    %c6_261 = arith.constant 6 : index
    %244 = memref.load %arg3[%c1_260, %c6_261] : memref<8x8xi32, #tpu.memory_space<smem>>
    %245 = arith.index_cast %244 : i32 to index
    %c0_262 = arith.constant 0 : index
    %246 = vector.load %arg8[%245, %c0_262] : memref<16x16xf32, #tpu.memory_space<vmem>>, vector<1x16xf32>
    %c1_263 = arith.constant 1 : index
    %c6_264 = arith.constant 6 : index
    %c0_265 = arith.constant 0 : index
    %247 = vector.load %arg24[%c1_263, %c6_264, %c0_265] : memref<8x8x16xf32, #tpu.memory_space<vmem>>, vector<1x1x16xf32>
    %248 = vector.shape_cast %247 : vector<1x1x16xf32> to vector<1x16xf32>
    %249 = vector.shape_cast %246 : vector<1x16xf32> to vector<1x1x16xf32>
    tpu.vector_store %arg24[%c1_263, %c6_264, %c0_265], %249 {strides = array<i32>} : memref<8x8x16xf32, #tpu.memory_space<vmem>>, vector<1x1x16xf32>,
    %c1_266 = arith.constant 1 : index
    %c7_267 = arith.constant 7 : index
    %250 = memref.load %arg3[%c1_266, %c7_267] : memref<8x8xi32, #tpu.memory_space<smem>>
    %251 = arith.index_cast %250 : i32 to index
    %c0_268 = arith.constant 0 : index
    %252 = vector.load %arg8[%251, %c0_268] : memref<16x16xf32, #tpu.memory_space<vmem>>, vector<1x16xf32>
    %c1_269 = arith.constant 1 : index
    %c7_270 = arith.constant 7 : index
    %c0_271 = arith.constant 0 : index
    %253 = vector.load %arg24[%c1_269, %c7_270, %c0_271] : memref<8x8x16xf32, #tpu.memory_space<vmem>>, vector<1x1x16xf32>
    %254 = vector.shape_cast %253 : vector<1x1x16xf32> to vector<1x16xf32>
    %255 = vector.shape_cast %252 : vector<1x16xf32> to vector<1x1x16xf32>
    tpu.vector_store %arg24[%c1_269, %c7_270, %c0_271], %255 {strides = array<i32>} : memref<8x8x16xf32, #tpu.memory_space<vmem>>, vector<1x1x16xf32>,
    %c2_272 = arith.constant 2 : index
    %c0_273 = arith.constant 0 : index
    %256 = memref.load %arg3[%c2_272, %c0_273] : memref<8x8xi32, #tpu.memory_space<smem>>
    %257 = arith.index_cast %256 : i32 to index
    %c0_274 = arith.constant 0 : index
    %258 = vector.load %arg8[%257, %c0_274] : memref<16x16xf32, #tpu.memory_space<vmem>>, vector<1x16xf32>
    %c2_275 = arith.constant 2 : index
    %c0_276 = arith.constant 0 : index
    %c0_277 = arith.constant 0 : index
    %259 = vector.load %arg24[%c2_275, %c0_276, %c0_277] : memref<8x8x16xf32, #tpu.memory_space<vmem>>, vector<1x1x16xf32>
    %260 = vector.shape_cast %259 : vector<1x1x16xf32> to vector<1x16xf32>
    %261 = vector.shape_cast %258 : vector<1x16xf32> to vector<1x1x16xf32>
    tpu.vector_store %arg24[%c2_275, %c0_276, %c0_277], %261 {strides = array<i32>} : memref<8x8x16xf32, #tpu.memory_space<vmem>>, vector<1x1x16xf32>,
    %c2_278 = arith.constant 2 : index
    %c1_279 = arith.constant 1 : index
    %262 = memref.load %arg3[%c2_278, %c1_279] : memref<8x8xi32, #tpu.memory_space<smem>>
    %263 = arith.index_cast %262 : i32 to index
    %c0_280 = arith.constant 0 : index
    %264 = vector.load %arg8[%263, %c0_280] : memref<16x16xf32, #tpu.memory_space<vmem>>, vector<1x16xf32>
    %c2_281 = arith.constant 2 : index
    %c1_282 = arith.constant 1 : index
    %c0_283 = arith.constant 0 : index
    %265 = vector.load %arg24[%c2_281, %c1_282, %c0_283] : memref<8x8x16xf32, #tpu.memory_space<vmem>>, vector<1x1x16xf32>
    %266 = vector.shape_cast %265 : vector<1x1x16xf32> to vector<1x16xf32>
    %267 = vector.shape_cast %264 : vector<1x16xf32> to vector<1x1x16xf32>
    tpu.vector_store %arg24[%c2_281, %c1_282, %c0_283], %267 {strides = array<i32>} : memref<8x8x16xf32, #tpu.memory_space<vmem>>, vector<1x1x16xf32>,
    %c2_284 = arith.constant 2 : index
    %c2_285 = arith.constant 2 : index
    %268 = memref.load %arg3[%c2_284, %c2_285] : memref<8x8xi32, #tpu.memory_space<smem>>
    %269 = arith.index_cast %268 : i32 to index
    %c0_286 = arith.constant 0 : index
    %270 = vector.load %arg8[%269, %c0_286] : memref<16x16xf32, #tpu.memory_space<vmem>>, vector<1x16xf32>
    %c2_287 = arith.constant 2 : index
    %c2_288 = arith.constant 2 : index
    %c0_289 = arith.constant 0 : index
    %271 = vector.load %arg24[%c2_287, %c2_288, %c0_289] : memref<8x8x16xf32, #tpu.memory_space<vmem>>, vector<1x1x16xf32>
    %272 = vector.shape_cast %271 : vector<1x1x16xf32> to vector<1x16xf32>
    %273 = vector.shape_cast %270 : vector<1x16xf32> to vector<1x1x16xf32>
    tpu.vector_store %arg24[%c2_287, %c2_288, %c0_289], %273 {strides = array<i32>} : memref<8x8x16xf32, #tpu.memory_space<vmem>>, vector<1x1x16xf32>,
    %c2_290 = arith.constant 2 : index
    %c3_291 = arith.constant 3 : index
    %274 = memref.load %arg3[%c2_290, %c3_291] : memref<8x8xi32, #tpu.memory_space<smem>>
    %275 = arith.index_cast %274 : i32 to index
    %c0_292 = arith.constant 0 : index
    %276 = vector.load %arg8[%275, %c0_292] : memref<16x16xf32, #tpu.memory_space<vmem>>, vector<1x16xf32>
    %c2_293 = arith.constant 2 : index
    %c3_294 = arith.constant 3 : index
    %c0_295 = arith.constant 0 : index
    %277 = vector.load %arg24[%c2_293, %c3_294, %c0_295] : memref<8x8x16xf32, #tpu.memory_space<vmem>>, vector<1x1x16xf32>
    %278 = vector.shape_cast %277 : vector<1x1x16xf32> to vector<1x16xf32>
    %279 = vector.shape_cast %276 : vector<1x16xf32> to vector<1x1x16xf32>
    tpu.vector_store %arg24[%c2_293, %c3_294, %c0_295], %279 {strides = array<i32>} : memref<8x8x16xf32, #tpu.memory_space<vmem>>, vector<1x1x16xf32>,
    %c2_296 = arith.constant 2 : index
    %c4_297 = arith.constant 4 : index
    %280 = memref.load %arg3[%c2_296, %c4_297] : memref<8x8xi32, #tpu.memory_space<smem>>
    %281 = arith.index_cast %280 : i32 to index
    %c0_298 = arith.constant 0 : index
    %282 = vector.load %arg8[%281, %c0_298] : memref<16x16xf32, #tpu.memory_space<vmem>>, vector<1x16xf32>
    %c2_299 = arith.constant 2 : index
    %c4_300 = arith.constant 4 : index
    %c0_301 = arith.constant 0 : index
    %283 = vector.load %arg24[%c2_299, %c4_300, %c0_301] : memref<8x8x16xf32, #tpu.memory_space<vmem>>, vector<1x1x16xf32>
    %284 = vector.shape_cast %283 : vector<1x1x16xf32> to vector<1x16xf32>
    %285 = vector.shape_cast %282 : vector<1x16xf32> to vector<1x1x16xf32>
    tpu.vector_store %arg24[%c2_299, %c4_300, %c0_301], %285 {strides = array<i32>} : memref<8x8x16xf32, #tpu.memory_space<vmem>>, vector<1x1x16xf32>,
    %c2_302 = arith.constant 2 : index
    %c5_303 = arith.constant 5 : index
    %286 = memref.load %arg3[%c2_302, %c5_303] : memref<8x8xi32, #tpu.memory_space<smem>>
    %287 = arith.index_cast %286 : i32 to index
    %c0_304 = arith.constant 0 : index
    %288 = vector.load %arg8[%287, %c0_304] : memref<16x16xf32, #tpu.memory_space<vmem>>, vector<1x16xf32>
    %c2_305 = arith.constant 2 : index
    %c5_306 = arith.constant 5 : index
    %c0_307 = arith.constant 0 : index
    %289 = vector.load %arg24[%c2_305, %c5_306, %c0_307] : memref<8x8x16xf32, #tpu.memory_space<vmem>>, vector<1x1x16xf32>
    %290 = vector.shape_cast %289 : vector<1x1x16xf32> to vector<1x16xf32>
    %291 = vector.shape_cast %288 : vector<1x16xf32> to vector<1x1x16xf32>
    tpu.vector_store %arg24[%c2_305, %c5_306, %c0_307], %291 {strides = array<i32>} : memref<8x8x16xf32, #tpu.memory_space<vmem>>, vector<1x1x16xf32>,
    %c2_308 = arith.constant 2 : index
    %c6_309 = arith.constant 6 : index
    %292 = memref.load %arg3[%c2_308, %c6_309] : memref<8x8xi32, #tpu.memory_space<smem>>
    %293 = arith.index_cast %292 : i32 to index
    %c0_310 = arith.constant 0 : index
    %294 = vector.load %arg8[%293, %c0_310] : memref<16x16xf32, #tpu.memory_space<vmem>>, vector<1x16xf32>
    %c2_311 = arith.constant 2 : index
    %c6_312 = arith.constant 6 : index
    %c0_313 = arith.constant 0 : index
    %295 = vector.load %arg24[%c2_311, %c6_312, %c0_313] : memref<8x8x16xf32, #tpu.memory_space<vmem>>, vector<1x1x16xf32>
    %296 = vector.shape_cast %295 : vector<1x1x16xf32> to vector<1x16xf32>
    %297 = vector.shape_cast %294 : vector<1x16xf32> to vector<1x1x16xf32>
    tpu.vector_store %arg24[%c2_311, %c6_312, %c0_313], %297 {strides = array<i32>} : memref<8x8x16xf32, #tpu.memory_space<vmem>>, vector<1x1x16xf32>,
    %c2_314 = arith.constant 2 : index
    %c7_315 = arith.constant 7 : index
    %298 = memref.load %arg3[%c2_314, %c7_315] : memref<8x8xi32, #tpu.memory_space<smem>>
    %299 = arith.index_cast %298 : i32 to index
    %c0_316 = arith.constant 0 : index
    %300 = vector.load %arg8[%299, %c0_316] : memref<16x16xf32, #tpu.memory_space<vmem>>, vector<1x16xf32>
    %c2_317 = arith.constant 2 : index
    %c7_318 = arith.constant 7 : index
    %c0_319 = arith.constant 0 : index
    %301 = vector.load %arg24[%c2_317, %c7_318, %c0_319] : memref<8x8x16xf32, #tpu.memory_space<vmem>>, vector<1x1x16xf32>
    %302 = vector.shape_cast %301 : vector<1x1x16xf32> to vector<1x16xf32>
    %303 = vector.shape_cast %300 : vector<1x16xf32> to vector<1x1x16xf32>
    tpu.vector_store %arg24[%c2_317, %c7_318, %c0_319], %303 {strides = array<i32>} : memref<8x8x16xf32, #tpu.memory_space<vmem>>, vector<1x1x16xf32>,
    %c3_320 = arith.constant 3 : index
    %c0_321 = arith.constant 0 : index
    %304 = memref.load %arg3[%c3_320, %c0_321] : memref<8x8xi32, #tpu.memory_space<smem>>
    %305 = arith.index_cast %304 : i32 to index
    %c0_322 = arith.constant 0 : index
    %306 = vector.load %arg8[%305, %c0_322] : memref<16x16xf32, #tpu.memory_space<vmem>>, vector<1x16xf32>
    %c3_323 = arith.constant 3 : index
    %c0_324 = arith.constant 0 : index
    %c0_325 = arith.constant 0 : index
    %307 = vector.load %arg24[%c3_323, %c0_324, %c0_325] : memref<8x8x16xf32, #tpu.memory_space<vmem>>, vector<1x1x16xf32>
    %308 = vector.shape_cast %307 : vector<1x1x16xf32> to vector<1x16xf32>
    %309 = vector.shape_cast %306 : vector<1x16xf32> to vector<1x1x16xf32>
    tpu.vector_store %arg24[%c3_323, %c0_324, %c0_325], %309 {strides = array<i32>} : memref<8x8x16xf32, #tpu.memory_space<vmem>>, vector<1x1x16xf32>,
    %c3_326 = arith.constant 3 : index
    %c1_327 = arith.constant 1 : index
    %310 = memref.load %arg3[%c3_326, %c1_327] : memref<8x8xi32, #tpu.memory_space<smem>>
    %311 = arith.index_cast %310 : i32 to index
    %c0_328 = arith.constant 0 : index
    %312 = vector.load %arg8[%311, %c0_328] : memref<16x16xf32, #tpu.memory_space<vmem>>, vector<1x16xf32>
    %c3_329 = arith.constant 3 : index
    %c1_330 = arith.constant 1 : index
    %c0_331 = arith.constant 0 : index
    %313 = vector.load %arg24[%c3_329, %c1_330, %c0_331] : memref<8x8x16xf32, #tpu.memory_space<vmem>>, vector<1x1x16xf32>
    %314 = vector.shape_cast %313 : vector<1x1x16xf32> to vector<1x16xf32>
    %315 = vector.shape_cast %312 : vector<1x16xf32> to vector<1x1x16xf32>
    tpu.vector_store %arg24[%c3_329, %c1_330, %c0_331], %315 {strides = array<i32>} : memref<8x8x16xf32, #tpu.memory_space<vmem>>, vector<1x1x16xf32>,
    %c3_332 = arith.constant 3 : index
    %c2_333 = arith.constant 2 : index
    %316 = memref.load %arg3[%c3_332, %c2_333] : memref<8x8xi32, #tpu.memory_space<smem>>
    %317 = arith.index_cast %316 : i32 to index
    %c0_334 = arith.constant 0 : index
    %318 = vector.load %arg8[%317, %c0_334] : memref<16x16xf32, #tpu.memory_space<vmem>>, vector<1x16xf32>
    %c3_335 = arith.constant 3 : index
    %c2_336 = arith.constant 2 : index
    %c0_337 = arith.constant 0 : index
    %319 = vector.load %arg24[%c3_335, %c2_336, %c0_337] : memref<8x8x16xf32, #tpu.memory_space<vmem>>, vector<1x1x16xf32>
    %320 = vector.shape_cast %319 : vector<1x1x16xf32> to vector<1x16xf32>
    %321 = vector.shape_cast %318 : vector<1x16xf32> to vector<1x1x16xf32>
    tpu.vector_store %arg24[%c3_335, %c2_336, %c0_337], %321 {strides = array<i32>} : memref<8x8x16xf32, #tpu.memory_space<vmem>>, vector<1x1x16xf32>,
    %c3_338 = arith.constant 3 : index
    %c3_339 = arith.constant 3 : index
    %322 = memref.load %arg3[%c3_338, %c3_339] : memref<8x8xi32, #tpu.memory_space<smem>>
    %323 = arith.index_cast %322 : i32 to index
    %c0_340 = arith.constant 0 : index
    %324 = vector.load %arg8[%323, %c0_340] : memref<16x16xf32, #tpu.memory_space<vmem>>, vector<1x16xf32>
    %c3_341 = arith.constant 3 : index
    %c3_342 = arith.constant 3 : index
    %c0_343 = arith.constant 0 : index
    %325 = vector.load %arg24[%c3_341, %c3_342, %c0_343] : memref<8x8x16xf32, #tpu.memory_space<vmem>>, vector<1x1x16xf32>
    %326 = vector.shape_cast %325 : vector<1x1x16xf32> to vector<1x16xf32>
    %327 = vector.shape_cast %324 : vector<1x16xf32> to vector<1x1x16xf32>
    tpu.vector_store %arg24[%c3_341, %c3_342, %c0_343], %327 {strides = array<i32>} : memref<8x8x16xf32, #tpu.memory_space<vmem>>, vector<1x1x16xf32>,
    %c3_344 = arith.constant 3 : index
    %c4_345 = arith.constant 4 : index
    %328 = memref.load %arg3[%c3_344, %c4_345] : memref<8x8xi32, #tpu.memory_space<smem>>
    %329 = arith.index_cast %328 : i32 to index
    %c0_346 = arith.constant 0 : index
    %330 = vector.load %arg8[%329, %c0_346] : memref<16x16xf32, #tpu.memory_space<vmem>>, vector<1x16xf32>
    %c3_347 = arith.constant 3 : index
    %c4_348 = arith.constant 4 : index
    %c0_349 = arith.constant 0 : index
    %331 = vector.load %arg24[%c3_347, %c4_348, %c0_349] : memref<8x8x16xf32, #tpu.memory_space<vmem>>, vector<1x1x16xf32>
    %332 = vector.shape_cast %331 : vector<1x1x16xf32> to vector<1x16xf32>
    %333 = vector.shape_cast %330 : vector<1x16xf32> to vector<1x1x16xf32>
    tpu.vector_store %arg24[%c3_347, %c4_348, %c0_349], %333 {strides = array<i32>} : memref<8x8x16xf32, #tpu.memory_space<vmem>>, vector<1x1x16xf32>,
    %c3_350 = arith.constant 3 : index
    %c5_351 = arith.constant 5 : index
    %334 = memref.load %arg3[%c3_350, %c5_351] : memref<8x8xi32, #tpu.memory_space<smem>>
    %335 = arith.index_cast %334 : i32 to index
    %c0_352 = arith.constant 0 : index
    %336 = vector.load %arg8[%335, %c0_352] : memref<16x16xf32, #tpu.memory_space<vmem>>, vector<1x16xf32>
    %c3_353 = arith.constant 3 : index
    %c5_354 = arith.constant 5 : index
    %c0_355 = arith.constant 0 : index
    %337 = vector.load %arg24[%c3_353, %c5_354, %c0_355] : memref<8x8x16xf32, #tpu.memory_space<vmem>>, vector<1x1x16xf32>
    %338 = vector.shape_cast %337 : vector<1x1x16xf32> to vector<1x16xf32>
    %339 = vector.shape_cast %336 : vector<1x16xf32> to vector<1x1x16xf32>
    tpu.vector_store %arg24[%c3_353, %c5_354, %c0_355], %339 {strides = array<i32>} : memref<8x8x16xf32, #tpu.memory_space<vmem>>, vector<1x1x16xf32>,
    %c3_356 = arith.constant 3 : index
    %c6_357 = arith.constant 6 : index
    %340 = memref.load %arg3[%c3_356, %c6_357] : memref<8x8xi32, #tpu.memory_space<smem>>
    %341 = arith.index_cast %340 : i32 to index
    %c0_358 = arith.constant 0 : index
    %342 = vector.load %arg8[%341, %c0_358] : memref<16x16xf32, #tpu.memory_space<vmem>>, vector<1x16xf32>
    %c3_359 = arith.constant 3 : index
    %c6_360 = arith.constant 6 : index
    %c0_361 = arith.constant 0 : index
    %343 = vector.load %arg24[%c3_359, %c6_360, %c0_361] : memref<8x8x16xf32, #tpu.memory_space<vmem>>, vector<1x1x16xf32>
    %344 = vector.shape_cast %343 : vector<1x1x16xf32> to vector<1x16xf32>
    %345 = vector.shape_cast %342 : vector<1x16xf32> to vector<1x1x16xf32>
    tpu.vector_store %arg24[%c3_359, %c6_360, %c0_361], %345 {strides = array<i32>} : memref<8x8x16xf32, #tpu.memory_space<vmem>>, vector<1x1x16xf32>,
    %c3_362 = arith.constant 3 : index
    %c7_363 = arith.constant 7 : index
    %346 = memref.load %arg3[%c3_362, %c7_363] : memref<8x8xi32, #tpu.memory_space<smem>>
    %347 = arith.index_cast %346 : i32 to index
    %c0_364 = arith.constant 0 : index
    %348 = vector.load %arg8[%347, %c0_364] : memref<16x16xf32, #tpu.memory_space<vmem>>, vector<1x16xf32>
    %c3_365 = arith.constant 3 : index
    %c7_366 = arith.constant 7 : index
    %c0_367 = arith.constant 0 : index
    %349 = vector.load %arg24[%c3_365, %c7_366, %c0_367] : memref<8x8x16xf32, #tpu.memory_space<vmem>>, vector<1x1x16xf32>
    %350 = vector.shape_cast %349 : vector<1x1x16xf32> to vector<1x16xf32>
    %351 = vector.shape_cast %348 : vector<1x16xf32> to vector<1x1x16xf32>
    tpu.vector_store %arg24[%c3_365, %c7_366, %c0_367], %351 {strides = array<i32>} : memref<8x8x16xf32, #tpu.memory_space<vmem>>, vector<1x1x16xf32>,
    %c4_368 = arith.constant 4 : index
    %c0_369 = arith.constant 0 : index
    %352 = memref.load %arg3[%c4_368, %c0_369] : memref<8x8xi32, #tpu.memory_space<smem>>
    %353 = arith.index_cast %352 : i32 to index
    %c0_370 = arith.constant 0 : index
    %354 = vector.load %arg8[%353, %c0_370] : memref<16x16xf32, #tpu.memory_space<vmem>>, vector<1x16xf32>
    %c4_371 = arith.constant 4 : index
    %c0_372 = arith.constant 0 : index
    %c0_373 = arith.constant 0 : index
    %355 = vector.load %arg24[%c4_371, %c0_372, %c0_373] : memref<8x8x16xf32, #tpu.memory_space<vmem>>, vector<1x1x16xf32>
    %356 = vector.shape_cast %355 : vector<1x1x16xf32> to vector<1x16xf32>
    %357 = vector.shape_cast %354 : vector<1x16xf32> to vector<1x1x16xf32>
    tpu.vector_store %arg24[%c4_371, %c0_372, %c0_373], %357 {strides = array<i32>} : memref<8x8x16xf32, #tpu.memory_space<vmem>>, vector<1x1x16xf32>,
    %c4_374 = arith.constant 4 : index
    %c1_375 = arith.constant 1 : index
    %358 = memref.load %arg3[%c4_374, %c1_375] : memref<8x8xi32, #tpu.memory_space<smem>>
    %359 = arith.index_cast %358 : i32 to index
    %c0_376 = arith.constant 0 : index
    %360 = vector.load %arg8[%359, %c0_376] : memref<16x16xf32, #tpu.memory_space<vmem>>, vector<1x16xf32>
    %c4_377 = arith.constant 4 : index
    %c1_378 = arith.constant 1 : index
    %c0_379 = arith.constant 0 : index
    %361 = vector.load %arg24[%c4_377, %c1_378, %c0_379] : memref<8x8x16xf32, #tpu.memory_space<vmem>>, vector<1x1x16xf32>
    %362 = vector.shape_cast %361 : vector<1x1x16xf32> to vector<1x16xf32>
    %363 = vector.shape_cast %360 : vector<1x16xf32> to vector<1x1x16xf32>
    tpu.vector_store %arg24[%c4_377, %c1_378, %c0_379], %363 {strides = array<i32>} : memref<8x8x16xf32, #tpu.memory_space<vmem>>, vector<1x1x16xf32>,
    %c4_380 = arith.constant 4 : index
    %c2_381 = arith.constant 2 : index
    %364 = memref.load %arg3[%c4_380, %c2_381] : memref<8x8xi32, #tpu.memory_space<smem>>
    %365 = arith.index_cast %364 : i32 to index
    %c0_382 = arith.constant 0 : index
    %366 = vector.load %arg8[%365, %c0_382] : memref<16x16xf32, #tpu.memory_space<vmem>>, vector<1x16xf32>
    %c4_383 = arith.constant 4 : index
    %c2_384 = arith.constant 2 : index
    %c0_385 = arith.constant 0 : index
    %367 = vector.load %arg24[%c4_383, %c2_384, %c0_385] : memref<8x8x16xf32, #tpu.memory_space<vmem>>, vector<1x1x16xf32>
    %368 = vector.shape_cast %367 : vector<1x1x16xf32> to vector<1x16xf32>
    %369 = vector.shape_cast %366 : vector<1x16xf32> to vector<1x1x16xf32>
    tpu.vector_store %arg24[%c4_383, %c2_384, %c0_385], %369 {strides = array<i32>} : memref<8x8x16xf32, #tpu.memory_space<vmem>>, vector<1x1x16xf32>,
    %c4_386 = arith.constant 4 : index
    %c3_387 = arith.constant 3 : index
    %370 = memref.load %arg3[%c4_386, %c3_387] : memref<8x8xi32, #tpu.memory_space<smem>>
    %371 = arith.index_cast %370 : i32 to index
    %c0_388 = arith.constant 0 : index
    %372 = vector.load %arg8[%371, %c0_388] : memref<16x16xf32, #tpu.memory_space<vmem>>, vector<1x16xf32>
    %c4_389 = arith.constant 4 : index
    %c3_390 = arith.constant 3 : index
    %c0_391 = arith.constant 0 : index
    %373 = vector.load %arg24[%c4_389, %c3_390, %c0_391] : memref<8x8x16xf32, #tpu.memory_space<vmem>>, vector<1x1x16xf32>
    %374 = vector.shape_cast %373 : vector<1x1x16xf32> to vector<1x16xf32>
    %375 = vector.shape_cast %372 : vector<1x16xf32> to vector<1x1x16xf32>
    tpu.vector_store %arg24[%c4_389, %c3_390, %c0_391], %375 {strides = array<i32>} : memref<8x8x16xf32, #tpu.memory_space<vmem>>, vector<1x1x16xf32>,
    %c4_392 = arith.constant 4 : index
    %c4_393 = arith.constant 4 : index
    %376 = memref.load %arg3[%c4_392, %c4_393] : memref<8x8xi32, #tpu.memory_space<smem>>
    %377 = arith.index_cast %376 : i32 to index
    %c0_394 = arith.constant 0 : index
    %378 = vector.load %arg8[%377, %c0_394] : memref<16x16xf32, #tpu.memory_space<vmem>>, vector<1x16xf32>
    %c4_395 = arith.constant 4 : index
    %c4_396 = arith.constant 4 : index
    %c0_397 = arith.constant 0 : index
    %379 = vector.load %arg24[%c4_395, %c4_396, %c0_397] : memref<8x8x16xf32, #tpu.memory_space<vmem>>, vector<1x1x16xf32>
    %380 = vector.shape_cast %379 : vector<1x1x16xf32> to vector<1x16xf32>
    %381 = vector.shape_cast %378 : vector<1x16xf32> to vector<1x1x16xf32>
    tpu.vector_store %arg24[%c4_395, %c4_396, %c0_397], %381 {strides = array<i32>} : memref<8x8x16xf32, #tpu.memory_space<vmem>>, vector<1x1x16xf32>,
    %c4_398 = arith.constant 4 : index
    %c5_399 = arith.constant 5 : index
    %382 = memref.load %arg3[%c4_398, %c5_399] : memref<8x8xi32, #tpu.memory_space<smem>>
    %383 = arith.index_cast %382 : i32 to index
    %c0_400 = arith.constant 0 : index
    %384 = vector.load %arg8[%383, %c0_400] : memref<16x16xf32, #tpu.memory_space<vmem>>, vector<1x16xf32>
    %c4_401 = arith.constant 4 : index
    %c5_402 = arith.constant 5 : index
    %c0_403 = arith.constant 0 : index
    %385 = vector.load %arg24[%c4_401, %c5_402, %c0_403] : memref<8x8x16xf32, #tpu.memory_space<vmem>>, vector<1x1x16xf32>
    %386 = vector.shape_cast %385 : vector<1x1x16xf32> to vector<1x16xf32>
    %387 = vector.shape_cast %384 : vector<1x16xf32> to vector<1x1x16xf32>
    tpu.vector_store %arg24[%c4_401, %c5_402, %c0_403], %387 {strides = array<i32>} : memref<8x8x16xf32, #tpu.memory_space<vmem>>, vector<1x1x16xf32>,
    %c4_404 = arith.constant 4 : index
    %c6_405 = arith.constant 6 : index
    %388 = memref.load %arg3[%c4_404, %c6_405] : memref<8x8xi32, #tpu.memory_space<smem>>
    %389 = arith.index_cast %388 : i32 to index
    %c0_406 = arith.constant 0 : index
    %390 = vector.load %arg8[%389, %c0_406] : memref<16x16xf32, #tpu.memory_space<vmem>>, vector<1x16xf32>
    %c4_407 = arith.constant 4 : index
    %c6_408 = arith.constant 6 : index
    %c0_409 = arith.constant 0 : index
    %391 = vector.load %arg24[%c4_407, %c6_408, %c0_409] : memref<8x8x16xf32, #tpu.memory_space<vmem>>, vector<1x1x16xf32>
    %392 = vector.shape_cast %391 : vector<1x1x16xf32> to vector<1x16xf32>
    %393 = vector.shape_cast %390 : vector<1x16xf32> to vector<1x1x16xf32>
    tpu.vector_store %arg24[%c4_407, %c6_408, %c0_409], %393 {strides = array<i32>} : memref<8x8x16xf32, #tpu.memory_space<vmem>>, vector<1x1x16xf32>,
    %c4_410 = arith.constant 4 : index
    %c7_411 = arith.constant 7 : index
    %394 = memref.load %arg3[%c4_410, %c7_411] : memref<8x8xi32, #tpu.memory_space<smem>>
    %395 = arith.index_cast %394 : i32 to index
    %c0_412 = arith.constant 0 : index
    %396 = vector.load %arg8[%395, %c0_412] : memref<16x16xf32, #tpu.memory_space<vmem>>, vector<1x16xf32>
    %c4_413 = arith.constant 4 : index
    %c7_414 = arith.constant 7 : index
    %c0_415 = arith.constant 0 : index
    %397 = vector.load %arg24[%c4_413, %c7_414, %c0_415] : memref<8x8x16xf32, #tpu.memory_space<vmem>>, vector<1x1x16xf32>
    %398 = vector.shape_cast %397 : vector<1x1x16xf32> to vector<1x16xf32>
    %399 = vector.shape_cast %396 : vector<1x16xf32> to vector<1x1x16xf32>
    tpu.vector_store %arg24[%c4_413, %c7_414, %c0_415], %399 {strides = array<i32>} : memref<8x8x16xf32, #tpu.memory_space<vmem>>, vector<1x1x16xf32>,
    %c5_416 = arith.constant 5 : index
    %c0_417 = arith.constant 0 : index
    %400 = memref.load %arg3[%c5_416, %c0_417] : memref<8x8xi32, #tpu.memory_space<smem>>
    %401 = arith.index_cast %400 : i32 to index
    %c0_418 = arith.constant 0 : index
    %402 = vector.load %arg8[%401, %c0_418] : memref<16x16xf32, #tpu.memory_space<vmem>>, vector<1x16xf32>
    %c5_419 = arith.constant 5 : index
    %c0_420 = arith.constant 0 : index
    %c0_421 = arith.constant 0 : index
    %403 = vector.load %arg24[%c5_419, %c0_420, %c0_421] : memref<8x8x16xf32, #tpu.memory_space<vmem>>, vector<1x1x16xf32>
    %404 = vector.shape_cast %403 : vector<1x1x16xf32> to vector<1x16xf32>
    %405 = vector.shape_cast %402 : vector<1x16xf32> to vector<1x1x16xf32>
    tpu.vector_store %arg24[%c5_419, %c0_420, %c0_421], %405 {strides = array<i32>} : memref<8x8x16xf32, #tpu.memory_space<vmem>>, vector<1x1x16xf32>,
    %c5_422 = arith.constant 5 : index
    %c1_423 = arith.constant 1 : index
    %406 = memref.load %arg3[%c5_422, %c1_423] : memref<8x8xi32, #tpu.memory_space<smem>>
    %407 = arith.index_cast %406 : i32 to index
    %c0_424 = arith.constant 0 : index
    %408 = vector.load %arg8[%407, %c0_424] : memref<16x16xf32, #tpu.memory_space<vmem>>, vector<1x16xf32>
    %c5_425 = arith.constant 5 : index
    %c1_426 = arith.constant 1 : index
    %c0_427 = arith.constant 0 : index
    %409 = vector.load %arg24[%c5_425, %c1_426, %c0_427] : memref<8x8x16xf32, #tpu.memory_space<vmem>>, vector<1x1x16xf32>
    %410 = vector.shape_cast %409 : vector<1x1x16xf32> to vector<1x16xf32>
    %411 = vector.shape_cast %408 : vector<1x16xf32> to vector<1x1x16xf32>
    tpu.vector_store %arg24[%c5_425, %c1_426, %c0_427], %411 {strides = array<i32>} : memref<8x8x16xf32, #tpu.memory_space<vmem>>, vector<1x1x16xf32>,
    %c5_428 = arith.constant 5 : index
    %c2_429 = arith.constant 2 : index
    %412 = memref.load %arg3[%c5_428, %c2_429] : memref<8x8xi32, #tpu.memory_space<smem>>
    %413 = arith.index_cast %412 : i32 to index
    %c0_430 = arith.constant 0 : index
    %414 = vector.load %arg8[%413, %c0_430] : memref<16x16xf32, #tpu.memory_space<vmem>>, vector<1x16xf32>
    %c5_431 = arith.constant 5 : index
    %c2_432 = arith.constant 2 : index
    %c0_433 = arith.constant 0 : index
    %415 = vector.load %arg24[%c5_431, %c2_432, %c0_433] : memref<8x8x16xf32, #tpu.memory_space<vmem>>, vector<1x1x16xf32>
    %416 = vector.shape_cast %415 : vector<1x1x16xf32> to vector<1x16xf32>
    %417 = vector.shape_cast %414 : vector<1x16xf32> to vector<1x1x16xf32>
    tpu.vector_store %arg24[%c5_431, %c2_432, %c0_433], %417 {strides = array<i32>} : memref<8x8x16xf32, #tpu.memory_space<vmem>>, vector<1x1x16xf32>,
    %c5_434 = arith.constant 5 : index
    %c3_435 = arith.constant 3 : index
    %418 = memref.load %arg3[%c5_434, %c3_435] : memref<8x8xi32, #tpu.memory_space<smem>>
    %419 = arith.index_cast %418 : i32 to index
    %c0_436 = arith.constant 0 : index
    %420 = vector.load %arg8[%419, %c0_436] : memref<16x16xf32, #tpu.memory_space<vmem>>, vector<1x16xf32>
    %c5_437 = arith.constant 5 : index
    %c3_438 = arith.constant 3 : index
    %c0_439 = arith.constant 0 : index
    %421 = vector.load %arg24[%c5_437, %c3_438, %c0_439] : memref<8x8x16xf32, #tpu.memory_space<vmem>>, vector<1x1x16xf32>
    %422 = vector.shape_cast %421 : vector<1x1x16xf32> to vector<1x16xf32>
    %423 = vector.shape_cast %420 : vector<1x16xf32> to vector<1x1x16xf32>
    tpu.vector_store %arg24[%c5_437, %c3_438, %c0_439], %423 {strides = array<i32>} : memref<8x8x16xf32, #tpu.memory_space<vmem>>, vector<1x1x16xf32>,
    %c5_440 = arith.constant 5 : index
    %c4_441 = arith.constant 4 : index
    %424 = memref.load %arg3[%c5_440, %c4_441] : memref<8x8xi32, #tpu.memory_space<smem>>
    %425 = arith.index_cast %424 : i32 to index
    %c0_442 = arith.constant 0 : index
    %426 = vector.load %arg8[%425, %c0_442] : memref<16x16xf32, #tpu.memory_space<vmem>>, vector<1x16xf32>
    %c5_443 = arith.constant 5 : index
    %c4_444 = arith.constant 4 : index
    %c0_445 = arith.constant 0 : index
    %427 = vector.load %arg24[%c5_443, %c4_444, %c0_445] : memref<8x8x16xf32, #tpu.memory_space<vmem>>, vector<1x1x16xf32>
    %428 = vector.shape_cast %427 : vector<1x1x16xf32> to vector<1x16xf32>
    %429 = vector.shape_cast %426 : vector<1x16xf32> to vector<1x1x16xf32>
    tpu.vector_store %arg24[%c5_443, %c4_444, %c0_445], %429 {strides = array<i32>} : memref<8x8x16xf32, #tpu.memory_space<vmem>>, vector<1x1x16xf32>,
    %c5_446 = arith.constant 5 : index
    %c5_447 = arith.constant 5 : index
    %430 = memref.load %arg3[%c5_446, %c5_447] : memref<8x8xi32, #tpu.memory_space<smem>>
    %431 = arith.index_cast %430 : i32 to index
    %c0_448 = arith.constant 0 : index
    %432 = vector.load %arg8[%431, %c0_448] : memref<16x16xf32, #tpu.memory_space<vmem>>, vector<1x16xf32>
    %c5_449 = arith.constant 5 : index
    %c5_450 = arith.constant 5 : index
    %c0_451 = arith.constant 0 : index
    %433 = vector.load %arg24[%c5_449, %c5_450, %c0_451] : memref<8x8x16xf32, #tpu.memory_space<vmem>>, vector<1x1x16xf32>
    %434 = vector.shape_cast %433 : vector<1x1x16xf32> to vector<1x16xf32>
    %435 = vector.shape_cast %432 : vector<1x16xf32> to vector<1x1x16xf32>
    tpu.vector_store %arg24[%c5_449, %c5_450, %c0_451], %435 {strides = array<i32>} : memref<8x8x16xf32, #tpu.memory_space<vmem>>, vector<1x1x16xf32>,
    %c5_452 = arith.constant 5 : index
    %c6_453 = arith.constant 6 : index
    %436 = memref.load %arg3[%c5_452, %c6_453] : memref<8x8xi32, #tpu.memory_space<smem>>
    %437 = arith.index_cast %436 : i32 to index
    %c0_454 = arith.constant 0 : index
    %438 = vector.load %arg8[%437, %c0_454] : memref<16x16xf32, #tpu.memory_space<vmem>>, vector<1x16xf32>
    %c5_455 = arith.constant 5 : index
    %c6_456 = arith.constant 6 : index
    %c0_457 = arith.constant 0 : index
    %439 = vector.load %arg24[%c5_455, %c6_456, %c0_457] : memref<8x8x16xf32, #tpu.memory_space<vmem>>, vector<1x1x16xf32>
    %440 = vector.shape_cast %439 : vector<1x1x16xf32> to vector<1x16xf32>
    %441 = vector.shape_cast %438 : vector<1x16xf32> to vector<1x1x16xf32>
    tpu.vector_store %arg24[%c5_455, %c6_456, %c0_457], %441 {strides = array<i32>} : memref<8x8x16xf32, #tpu.memory_space<vmem>>, vector<1x1x16xf32>,
    %c5_458 = arith.constant 5 : index
    %c7_459 = arith.constant 7 : index
    %442 = memref.load %arg3[%c5_458, %c7_459] : memref<8x8xi32, #tpu.memory_space<smem>>
    %443 = arith.index_cast %442 : i32 to index
    %c0_460 = arith.constant 0 : index
    %444 = vector.load %arg8[%443, %c0_460] : memref<16x16xf32, #tpu.memory_space<vmem>>, vector<1x16xf32>
    %c5_461 = arith.constant 5 : index
    %c7_462 = arith.constant 7 : index
    %c0_463 = arith.constant 0 : index
    %445 = vector.load %arg24[%c5_461, %c7_462, %c0_463] : memref<8x8x16xf32, #tpu.memory_space<vmem>>, vector<1x1x16xf32>
    %446 = vector.shape_cast %445 : vector<1x1x16xf32> to vector<1x16xf32>
    %447 = vector.shape_cast %444 : vector<1x16xf32> to vector<1x1x16xf32>
    tpu.vector_store %arg24[%c5_461, %c7_462, %c0_463], %447 {strides = array<i32>} : memref<8x8x16xf32, #tpu.memory_space<vmem>>, vector<1x1x16xf32>,
    %c6_464 = arith.constant 6 : index
    %c0_465 = arith.constant 0 : index
    %448 = memref.load %arg3[%c6_464, %c0_465] : memref<8x8xi32, #tpu.memory_space<smem>>
    %449 = arith.index_cast %448 : i32 to index
    %c0_466 = arith.constant 0 : index
    %450 = vector.load %arg8[%449, %c0_466] : memref<16x16xf32, #tpu.memory_space<vmem>>, vector<1x16xf32>
    %c6_467 = arith.constant 6 : index
    %c0_468 = arith.constant 0 : index
    %c0_469 = arith.constant 0 : index
    %451 = vector.load %arg24[%c6_467, %c0_468, %c0_469] : memref<8x8x16xf32, #tpu.memory_space<vmem>>, vector<1x1x16xf32>
    %452 = vector.shape_cast %451 : vector<1x1x16xf32> to vector<1x16xf32>
    %453 = vector.shape_cast %450 : vector<1x16xf32> to vector<1x1x16xf32>
    tpu.vector_store %arg24[%c6_467, %c0_468, %c0_469], %453 {strides = array<i32>} : memref<8x8x16xf32, #tpu.memory_space<vmem>>, vector<1x1x16xf32>,
    %c6_470 = arith.constant 6 : index
    %c1_471 = arith.constant 1 : index
    %454 = memref.load %arg3[%c6_470, %c1_471] : memref<8x8xi32, #tpu.memory_space<smem>>
    %455 = arith.index_cast %454 : i32 to index
    %c0_472 = arith.constant 0 : index
    %456 = vector.load %arg8[%455, %c0_472] : memref<16x16xf32, #tpu.memory_space<vmem>>, vector<1x16xf32>
    %c6_473 = arith.constant 6 : index
    %c1_474 = arith.constant 1 : index
    %c0_475 = arith.constant 0 : index
    %457 = vector.load %arg24[%c6_473, %c1_474, %c0_475] : memref<8x8x16xf32, #tpu.memory_space<vmem>>, vector<1x1x16xf32>
    %458 = vector.shape_cast %457 : vector<1x1x16xf32> to vector<1x16xf32>
    %459 = vector.shape_cast %456 : vector<1x16xf32> to vector<1x1x16xf32>
    tpu.vector_store %arg24[%c6_473, %c1_474, %c0_475], %459 {strides = array<i32>} : memref<8x8x16xf32, #tpu.memory_space<vmem>>, vector<1x1x16xf32>,
    %c6_476 = arith.constant 6 : index
    %c2_477 = arith.constant 2 : index
    %460 = memref.load %arg3[%c6_476, %c2_477] : memref<8x8xi32, #tpu.memory_space<smem>>
    %461 = arith.index_cast %460 : i32 to index
    %c0_478 = arith.constant 0 : index
    %462 = vector.load %arg8[%461, %c0_478] : memref<16x16xf32, #tpu.memory_space<vmem>>, vector<1x16xf32>
    %c6_479 = arith.constant 6 : index
    %c2_480 = arith.constant 2 : index
    %c0_481 = arith.constant 0 : index
    %463 = vector.load %arg24[%c6_479, %c2_480, %c0_481] : memref<8x8x16xf32, #tpu.memory_space<vmem>>, vector<1x1x16xf32>
    %464 = vector.shape_cast %463 : vector<1x1x16xf32> to vector<1x16xf32>
    %465 = vector.shape_cast %462 : vector<1x16xf32> to vector<1x1x16xf32>
    tpu.vector_store %arg24[%c6_479, %c2_480, %c0_481], %465 {strides = array<i32>} : memref<8x8x16xf32, #tpu.memory_space<vmem>>, vector<1x1x16xf32>,
    %c6_482 = arith.constant 6 : index
    %c3_483 = arith.constant 3 : index
    %466 = memref.load %arg3[%c6_482, %c3_483] : memref<8x8xi32, #tpu.memory_space<smem>>
    %467 = arith.index_cast %466 : i32 to index
    %c0_484 = arith.constant 0 : index
    %468 = vector.load %arg8[%467, %c0_484] : memref<16x16xf32, #tpu.memory_space<vmem>>, vector<1x16xf32>
    %c6_485 = arith.constant 6 : index
    %c3_486 = arith.constant 3 : index
    %c0_487 = arith.constant 0 : index
    %469 = vector.load %arg24[%c6_485, %c3_486, %c0_487] : memref<8x8x16xf32, #tpu.memory_space<vmem>>, vector<1x1x16xf32>
    %470 = vector.shape_cast %469 : vector<1x1x16xf32> to vector<1x16xf32>
    %471 = vector.shape_cast %468 : vector<1x16xf32> to vector<1x1x16xf32>
    tpu.vector_store %arg24[%c6_485, %c3_486, %c0_487], %471 {strides = array<i32>} : memref<8x8x16xf32, #tpu.memory_space<vmem>>, vector<1x1x16xf32>,
    %c6_488 = arith.constant 6 : index
    %c4_489 = arith.constant 4 : index
    %472 = memref.load %arg3[%c6_488, %c4_489] : memref<8x8xi32, #tpu.memory_space<smem>>
    %473 = arith.index_cast %472 : i32 to index
    %c0_490 = arith.constant 0 : index
    %474 = vector.load %arg8[%473, %c0_490] : memref<16x16xf32, #tpu.memory_space<vmem>>, vector<1x16xf32>
    %c6_491 = arith.constant 6 : index
    %c4_492 = arith.constant 4 : index
    %c0_493 = arith.constant 0 : index
    %475 = vector.load %arg24[%c6_491, %c4_492, %c0_493] : memref<8x8x16xf32, #tpu.memory_space<vmem>>, vector<1x1x16xf32>
    %476 = vector.shape_cast %475 : vector<1x1x16xf32> to vector<1x16xf32>
    %477 = vector.shape_cast %474 : vector<1x16xf32> to vector<1x1x16xf32>
    tpu.vector_store %arg24[%c6_491, %c4_492, %c0_493], %477 {strides = array<i32>} : memref<8x8x16xf32, #tpu.memory_space<vmem>>, vector<1x1x16xf32>,
    %c6_494 = arith.constant 6 : index
    %c5_495 = arith.constant 5 : index
    %478 = memref.load %arg3[%c6_494, %c5_495] : memref<8x8xi32, #tpu.memory_space<smem>>
    %479 = arith.index_cast %478 : i32 to index
    %c0_496 = arith.constant 0 : index
    %480 = vector.load %arg8[%479, %c0_496] : memref<16x16xf32, #tpu.memory_space<vmem>>, vector<1x16xf32>
    %c6_497 = arith.constant 6 : index
    %c5_498 = arith.constant 5 : index
    %c0_499 = arith.constant 0 : index
    %481 = vector.load %arg24[%c6_497, %c5_498, %c0_499] : memref<8x8x16xf32, #tpu.memory_space<vmem>>, vector<1x1x16xf32>
    %482 = vector.shape_cast %481 : vector<1x1x16xf32> to vector<1x16xf32>
    %483 = vector.shape_cast %480 : vector<1x16xf32> to vector<1x1x16xf32>
    tpu.vector_store %arg24[%c6_497, %c5_498, %c0_499], %483 {strides = array<i32>} : memref<8x8x16xf32, #tpu.memory_space<vmem>>, vector<1x1x16xf32>,
    %c6_500 = arith.constant 6 : index
    %c6_501 = arith.constant 6 : index
    %484 = memref.load %arg3[%c6_500, %c6_501] : memref<8x8xi32, #tpu.memory_space<smem>>
    %485 = arith.index_cast %484 : i32 to index
    %c0_502 = arith.constant 0 : index
    %486 = vector.load %arg8[%485, %c0_502] : memref<16x16xf32, #tpu.memory_space<vmem>>, vector<1x16xf32>
    %c6_503 = arith.constant 6 : index
    %c6_504 = arith.constant 6 : index
    %c0_505 = arith.constant 0 : index
    %487 = vector.load %arg24[%c6_503, %c6_504, %c0_505] : memref<8x8x16xf32, #tpu.memory_space<vmem>>, vector<1x1x16xf32>
    %488 = vector.shape_cast %487 : vector<1x1x16xf32> to vector<1x16xf32>
    %489 = vector.shape_cast %486 : vector<1x16xf32> to vector<1x1x16xf32>
    tpu.vector_store %arg24[%c6_503, %c6_504, %c0_505], %489 {strides = array<i32>} : memref<8x8x16xf32, #tpu.memory_space<vmem>>, vector<1x1x16xf32>,
    %c6_506 = arith.constant 6 : index
    %c7_507 = arith.constant 7 : index
    %490 = memref.load %arg3[%c6_506, %c7_507] : memref<8x8xi32, #tpu.memory_space<smem>>
    %491 = arith.index_cast %490 : i32 to index
    %c0_508 = arith.constant 0 : index
    %492 = vector.load %arg8[%491, %c0_508] : memref<16x16xf32, #tpu.memory_space<vmem>>, vector<1x16xf32>
    %c6_509 = arith.constant 6 : index
    %c7_510 = arith.constant 7 : index
    %c0_511 = arith.constant 0 : index
    %493 = vector.load %arg24[%c6_509, %c7_510, %c0_511] : memref<8x8x16xf32, #tpu.memory_space<vmem>>, vector<1x1x16xf32>
    %494 = vector.shape_cast %493 : vector<1x1x16xf32> to vector<1x16xf32>
    %495 = vector.shape_cast %492 : vector<1x16xf32> to vector<1x1x16xf32>
    tpu.vector_store %arg24[%c6_509, %c7_510, %c0_511], %495 {strides = array<i32>} : memref<8x8x16xf32, #tpu.memory_space<vmem>>, vector<1x1x16xf32>,
    %c7_512 = arith.constant 7 : index
    %c0_513 = arith.constant 0 : index
    %496 = memref.load %arg3[%c7_512, %c0_513] : memref<8x8xi32, #tpu.memory_space<smem>>
    %497 = arith.index_cast %496 : i32 to index
    %c0_514 = arith.constant 0 : index
    %498 = vector.load %arg8[%497, %c0_514] : memref<16x16xf32, #tpu.memory_space<vmem>>, vector<1x16xf32>
    %c7_515 = arith.constant 7 : index
    %c0_516 = arith.constant 0 : index
    %c0_517 = arith.constant 0 : index
    %499 = vector.load %arg24[%c7_515, %c0_516, %c0_517] : memref<8x8x16xf32, #tpu.memory_space<vmem>>, vector<1x1x16xf32>
    %500 = vector.shape_cast %499 : vector<1x1x16xf32> to vector<1x16xf32>
    %501 = vector.shape_cast %498 : vector<1x16xf32> to vector<1x1x16xf32>
    tpu.vector_store %arg24[%c7_515, %c0_516, %c0_517], %501 {strides = array<i32>} : memref<8x8x16xf32, #tpu.memory_space<vmem>>, vector<1x1x16xf32>,
    %c7_518 = arith.constant 7 : index
    %c1_519 = arith.constant 1 : index
    %502 = memref.load %arg3[%c7_518, %c1_519] : memref<8x8xi32, #tpu.memory_space<smem>>
    %503 = arith.index_cast %502 : i32 to index
    %c0_520 = arith.constant 0 : index
    %504 = vector.load %arg8[%503, %c0_520] : memref<16x16xf32, #tpu.memory_space<vmem>>, vector<1x16xf32>
    %c7_521 = arith.constant 7 : index
    %c1_522 = arith.constant 1 : index
    %c0_523 = arith.constant 0 : index
    %505 = vector.load %arg24[%c7_521, %c1_522, %c0_523] : memref<8x8x16xf32, #tpu.memory_space<vmem>>, vector<1x1x16xf32>
    %506 = vector.shape_cast %505 : vector<1x1x16xf32> to vector<1x16xf32>
    %507 = vector.shape_cast %504 : vector<1x16xf32> to vector<1x1x16xf32>
    tpu.vector_store %arg24[%c7_521, %c1_522, %c0_523], %507 {strides = array<i32>} : memref<8x8x16xf32, #tpu.memory_space<vmem>>, vector<1x1x16xf32>,
    %c7_524 = arith.constant 7 : index
    %c2_525 = arith.constant 2 : index
    %508 = memref.load %arg3[%c7_524, %c2_525] : memref<8x8xi32, #tpu.memory_space<smem>>
    %509 = arith.index_cast %508 : i32 to index
    %c0_526 = arith.constant 0 : index
    %510 = vector.load %arg8[%509, %c0_526] : memref<16x16xf32, #tpu.memory_space<vmem>>, vector<1x16xf32>
    %c7_527 = arith.constant 7 : index
    %c2_528 = arith.constant 2 : index
    %c0_529 = arith.constant 0 : index
    %511 = vector.load %arg24[%c7_527, %c2_528, %c0_529] : memref<8x8x16xf32, #tpu.memory_space<vmem>>, vector<1x1x16xf32>
    %512 = vector.shape_cast %511 : vector<1x1x16xf32> to vector<1x16xf32>
    %513 = vector.shape_cast %510 : vector<1x16xf32> to vector<1x1x16xf32>
    tpu.vector_store %arg24[%c7_527, %c2_528, %c0_529], %513 {strides = array<i32>} : memref<8x8x16xf32, #tpu.memory_space<vmem>>, vector<1x1x16xf32>,
    %c7_530 = arith.constant 7 : index
    %c3_531 = arith.constant 3 : index
    %514 = memref.load %arg3[%c7_530, %c3_531] : memref<8x8xi32, #tpu.memory_space<smem>>
    %515 = arith.index_cast %514 : i32 to index
    %c0_532 = arith.constant 0 : index
    %516 = vector.load %arg8[%515, %c0_532] : memref<16x16xf32, #tpu.memory_space<vmem>>, vector<1x16xf32>
    %c7_533 = arith.constant 7 : index
    %c3_534 = arith.constant 3 : index
    %c0_535 = arith.constant 0 : index
    %517 = vector.load %arg24[%c7_533, %c3_534, %c0_535] : memref<8x8x16xf32, #tpu.memory_space<vmem>>, vector<1x1x16xf32>
    %518 = vector.shape_cast %517 : vector<1x1x16xf32> to vector<1x16xf32>
    %519 = vector.shape_cast %516 : vector<1x16xf32> to vector<1x1x16xf32>
    tpu.vector_store %arg24[%c7_533, %c3_534, %c0_535], %519 {strides = array<i32>} : memref<8x8x16xf32, #tpu.memory_space<vmem>>, vector<1x1x16xf32>,
    %c7_536 = arith.constant 7 : index
    %c4_537 = arith.constant 4 : index
    %520 = memref.load %arg3[%c7_536, %c4_537] : memref<8x8xi32, #tpu.memory_space<smem>>
    %521 = arith.index_cast %520 : i32 to index
    %c0_538 = arith.constant 0 : index
    %522 = vector.load %arg8[%521, %c0_538] : memref<16x16xf32, #tpu.memory_space<vmem>>, vector<1x16xf32>
    %c7_539 = arith.constant 7 : index
    %c4_540 = arith.constant 4 : index
    %c0_541 = arith.constant 0 : index
    %523 = vector.load %arg24[%c7_539, %c4_540, %c0_541] : memref<8x8x16xf32, #tpu.memory_space<vmem>>, vector<1x1x16xf32>
    %524 = vector.shape_cast %523 : vector<1x1x16xf32> to vector<1x16xf32>
    %525 = vector.shape_cast %522 : vector<1x16xf32> to vector<1x1x16xf32>
    tpu.vector_store %arg24[%c7_539, %c4_540, %c0_541], %525 {strides = array<i32>} : memref<8x8x16xf32, #tpu.memory_space<vmem>>, vector<1x1x16xf32>,
    %c7_542 = arith.constant 7 : index
    %c5_543 = arith.constant 5 : index
    %526 = memref.load %arg3[%c7_542, %c5_543] : memref<8x8xi32, #tpu.memory_space<smem>>
    %527 = arith.index_cast %526 : i32 to index
    %c0_544 = arith.constant 0 : index
    %528 = vector.load %arg8[%527, %c0_544] : memref<16x16xf32, #tpu.memory_space<vmem>>, vector<1x16xf32>
    %c7_545 = arith.constant 7 : index
    %c5_546 = arith.constant 5 : index
    %c0_547 = arith.constant 0 : index
    %529 = vector.load %arg24[%c7_545, %c5_546, %c0_547] : memref<8x8x16xf32, #tpu.memory_space<vmem>>, vector<1x1x16xf32>
    %530 = vector.shape_cast %529 : vector<1x1x16xf32> to vector<1x16xf32>
    %531 = vector.shape_cast %528 : vector<1x16xf32> to vector<1x1x16xf32>
    tpu.vector_store %arg24[%c7_545, %c5_546, %c0_547], %531 {strides = array<i32>} : memref<8x8x16xf32, #tpu.memory_space<vmem>>, vector<1x1x16xf32>,
    %c7_548 = arith.constant 7 : index
    %c6_549 = arith.constant 6 : index
    %532 = memref.load %arg3[%c7_548, %c6_549] : memref<8x8xi32, #tpu.memory_space<smem>>
    %533 = arith.index_cast %532 : i32 to index
    %c0_550 = arith.constant 0 : index
    %534 = vector.load %arg8[%533, %c0_550] : memref<16x16xf32, #tpu.memory_space<vmem>>, vector<1x16xf32>
    %c7_551 = arith.constant 7 : index
    %c6_552 = arith.constant 6 : index
    %c0_553 = arith.constant 0 : index
    %535 = vector.load %arg24[%c7_551, %c6_552, %c0_553] : memref<8x8x16xf32, #tpu.memory_space<vmem>>, vector<1x1x16xf32>
    %536 = vector.shape_cast %535 : vector<1x1x16xf32> to vector<1x16xf32>
    %537 = vector.shape_cast %534 : vector<1x16xf32> to vector<1x1x16xf32>
    tpu.vector_store %arg24[%c7_551, %c6_552, %c0_553], %537 {strides = array<i32>} : memref<8x8x16xf32, #tpu.memory_space<vmem>>, vector<1x1x16xf32>,
    %c7_554 = arith.constant 7 : index
    %c7_555 = arith.constant 7 : index
    %538 = memref.load %arg3[%c7_554, %c7_555] : memref<8x8xi32, #tpu.memory_space<smem>>
    %539 = arith.index_cast %538 : i32 to index
    %c0_556 = arith.constant 0 : index
    %540 = vector.load %arg8[%539, %c0_556] : memref<16x16xf32, #tpu.memory_space<vmem>>, vector<1x16xf32>
    %c7_557 = arith.constant 7 : index
    %c7_558 = arith.constant 7 : index
    %c0_559 = arith.constant 0 : index
    %541 = vector.load %arg24[%c7_557, %c7_558, %c0_559] : memref<8x8x16xf32, #tpu.memory_space<vmem>>, vector<1x1x16xf32>
    %542 = vector.shape_cast %541 : vector<1x1x16xf32> to vector<1x16xf32>
    %543 = vector.shape_cast %540 : vector<1x16xf32> to vector<1x1x16xf32>
    tpu.vector_store %arg24[%c7_557, %c7_558, %c0_559], %543 {strides = array<i32>} : memref<8x8x16xf32, #tpu.memory_space<vmem>>, vector<1x1x16xf32>,
    %c0_i32_560 = arith.constant 0 : i32
    %c0_i32_561 = arith.constant 0 : i32
    %c0_i32_562 = arith.constant 0 : i32
    %544 = tpu.memref_slice %arg4[%0, %c0_i32_562] : memref<32x16xf32, #tpu.memory_space<any>> -> memref<1x16xf32, #tpu.memory_space<any>>
    %c0_i32_563 = arith.constant 0 : i32
    %c0_i32_564 = arith.constant 0 : i32
    %545 = tpu.memref_slice %arg20[%c0_i32_563, %c0_i32_564] : memref<8x16xf32, #tpu.memory_space<vmem>> -> memref<1x16xf32, #tpu.memory_space<vmem>>
    %546 = tpu.memref_slice %arg25[%c0_i32_560, %c0_i32_561] : memref<4x8x!tpu.dma_semaphore, #tpu.memory_space<semaphore_mem>> -> memref<1x1x!tpu.dma_semaphore, #tpu.memory_space<semaphore_mem>>
    %547 = tpu.memref_squeeze %546 : memref<1x1x!tpu.dma_semaphore, #tpu.memory_space<semaphore_mem>> -> memref<!tpu.dma_semaphore, #tpu.memory_space<semaphore_mem>>
    tpu.wait_dma2 semaphore(%547 : memref<!tpu.dma_semaphore, #tpu.memory_space<semaphore_mem>>) src(%544 : memref<1x16xf32, #tpu.memory_space<any>>) dst(%545 : memref<1x16xf32, #tpu.memory_space<vmem>>)
    %c0_i32_565 = arith.constant 0 : i32
    %c1_i32_566 = arith.constant 1 : i32
    %c0_i32_567 = arith.constant 0 : i32
    %548 = tpu.memref_slice %arg4[%5, %c0_i32_567] : memref<32x16xf32, #tpu.memory_space<any>> -> memref<1x16xf32, #tpu.memory_space<any>>
    %c1_i32_568 = arith.constant 1 : i32
    %c0_i32_569 = arith.constant 0 : i32
    %549 = tpu.memref_slice %arg20[%c1_i32_568, %c0_i32_569] : memref<8x16xf32, #tpu.memory_space<vmem>> -> memref<1x16xf32, #tpu.memory_space<vmem>>
    %550 = tpu.memref_slice %arg25[%c0_i32_565, %c1_i32_566] : memref<4x8x!tpu.dma_semaphore, #tpu.memory_space<semaphore_mem>> -> memref<1x1x!tpu.dma_semaphore, #tpu.memory_space<semaphore_mem>>
    %551 = tpu.memref_squeeze %550 : memref<1x1x!tpu.dma_semaphore, #tpu.memory_space<semaphore_mem>> -> memref<!tpu.dma_semaphore, #tpu.memory_space<semaphore_mem>>
    tpu.wait_dma2 semaphore(%551 : memref<!tpu.dma_semaphore, #tpu.memory_space<semaphore_mem>>) src(%548 : memref<1x16xf32, #tpu.memory_space<any>>) dst(%549 : memref<1x16xf32, #tpu.memory_space<vmem>>)
    %c0_i32_570 = arith.constant 0 : i32
    %c2_i32_571 = arith.constant 2 : i32
    %c0_i32_572 = arith.constant 0 : i32
    %552 = tpu.memref_slice %arg4[%10, %c0_i32_572] : memref<32x16xf32, #tpu.memory_space<any>> -> memref<1x16xf32, #tpu.memory_space<any>>
    %c2_i32_573 = arith.constant 2 : i32
    %c0_i32_574 = arith.constant 0 : i32
    %553 = tpu.memref_slice %arg20[%c2_i32_573, %c0_i32_574] : memref<8x16xf32, #tpu.memory_space<vmem>> -> memref<1x16xf32, #tpu.memory_space<vmem>>
    %554 = tpu.memref_slice %arg25[%c0_i32_570, %c2_i32_571] : memref<4x8x!tpu.dma_semaphore, #tpu.memory_space<semaphore_mem>> -> memref<1x1x!tpu.dma_semaphore, #tpu.memory_space<semaphore_mem>>
    %555 = tpu.memref_squeeze %554 : memref<1x1x!tpu.dma_semaphore, #tpu.memory_space<semaphore_mem>> -> memref<!tpu.dma_semaphore, #tpu.memory_space<semaphore_mem>>
    tpu.wait_dma2 semaphore(%555 : memref<!tpu.dma_semaphore, #tpu.memory_space<semaphore_mem>>) src(%552 : memref<1x16xf32, #tpu.memory_space<any>>) dst(%553 : memref<1x16xf32, #tpu.memory_space<vmem>>)
    %c0_i32_575 = arith.constant 0 : i32
    %c3_i32_576 = arith.constant 3 : i32
    %c0_i32_577 = arith.constant 0 : i32
    %556 = tpu.memref_slice %arg4[%15, %c0_i32_577] : memref<32x16xf32, #tpu.memory_space<any>> -> memref<1x16xf32, #tpu.memory_space<any>>
    %c3_i32_578 = arith.constant 3 : i32
    %c0_i32_579 = arith.constant 0 : i32
    %557 = tpu.memref_slice %arg20[%c3_i32_578, %c0_i32_579] : memref<8x16xf32, #tpu.memory_space<vmem>> -> memref<1x16xf32, #tpu.memory_space<vmem>>
    %558 = tpu.memref_slice %arg25[%c0_i32_575, %c3_i32_576] : memref<4x8x!tpu.dma_semaphore, #tpu.memory_space<semaphore_mem>> -> memref<1x1x!tpu.dma_semaphore, #tpu.memory_space<semaphore_mem>>
    %559 = tpu.memref_squeeze %558 : memref<1x1x!tpu.dma_semaphore, #tpu.memory_space<semaphore_mem>> -> memref<!tpu.dma_semaphore, #tpu.memory_space<semaphore_mem>>
    tpu.wait_dma2 semaphore(%559 : memref<!tpu.dma_semaphore, #tpu.memory_space<semaphore_mem>>) src(%556 : memref<1x16xf32, #tpu.memory_space<any>>) dst(%557 : memref<1x16xf32, #tpu.memory_space<vmem>>)
    %c0_i32_580 = arith.constant 0 : i32
    %c4_i32_581 = arith.constant 4 : i32
    %c0_i32_582 = arith.constant 0 : i32
    %560 = tpu.memref_slice %arg4[%20, %c0_i32_582] : memref<32x16xf32, #tpu.memory_space<any>> -> memref<1x16xf32, #tpu.memory_space<any>>
    %c4_i32_583 = arith.constant 4 : i32
    %c0_i32_584 = arith.constant 0 : i32
    %561 = tpu.memref_slice %arg20[%c4_i32_583, %c0_i32_584] : memref<8x16xf32, #tpu.memory_space<vmem>> -> memref<1x16xf32, #tpu.memory_space<vmem>>
    %562 = tpu.memref_slice %arg25[%c0_i32_580, %c4_i32_581] : memref<4x8x!tpu.dma_semaphore, #tpu.memory_space<semaphore_mem>> -> memref<1x1x!tpu.dma_semaphore, #tpu.memory_space<semaphore_mem>>
    %563 = tpu.memref_squeeze %562 : memref<1x1x!tpu.dma_semaphore, #tpu.memory_space<semaphore_mem>> -> memref<!tpu.dma_semaphore, #tpu.memory_space<semaphore_mem>>
    tpu.wait_dma2 semaphore(%563 : memref<!tpu.dma_semaphore, #tpu.memory_space<semaphore_mem>>) src(%560 : memref<1x16xf32, #tpu.memory_space<any>>) dst(%561 : memref<1x16xf32, #tpu.memory_space<vmem>>)
    %c0_i32_585 = arith.constant 0 : i32
    %c5_i32_586 = arith.constant 5 : i32
    %c0_i32_587 = arith.constant 0 : i32
    %564 = tpu.memref_slice %arg4[%25, %c0_i32_587] : memref<32x16xf32, #tpu.memory_space<any>> -> memref<1x16xf32, #tpu.memory_space<any>>
    %c5_i32_588 = arith.constant 5 : i32
    %c0_i32_589 = arith.constant 0 : i32
    %565 = tpu.memref_slice %arg20[%c5_i32_588, %c0_i32_589] : memref<8x16xf32, #tpu.memory_space<vmem>> -> memref<1x16xf32, #tpu.memory_space<vmem>>
    %566 = tpu.memref_slice %arg25[%c0_i32_585, %c5_i32_586] : memref<4x8x!tpu.dma_semaphore, #tpu.memory_space<semaphore_mem>> -> memref<1x1x!tpu.dma_semaphore, #tpu.memory_space<semaphore_mem>>
    %567 = tpu.memref_squeeze %566 : memref<1x1x!tpu.dma_semaphore, #tpu.memory_space<semaphore_mem>> -> memref<!tpu.dma_semaphore, #tpu.memory_space<semaphore_mem>>
    tpu.wait_dma2 semaphore(%567 : memref<!tpu.dma_semaphore, #tpu.memory_space<semaphore_mem>>) src(%564 : memref<1x16xf32, #tpu.memory_space<any>>) dst(%565 : memref<1x16xf32, #tpu.memory_space<vmem>>)
    %c0_i32_590 = arith.constant 0 : i32
    %c6_i32_591 = arith.constant 6 : i32
    %c0_i32_592 = arith.constant 0 : i32
    %568 = tpu.memref_slice %arg4[%30, %c0_i32_592] : memref<32x16xf32, #tpu.memory_space<any>> -> memref<1x16xf32, #tpu.memory_space<any>>
    %c6_i32_593 = arith.constant 6 : i32
    %c0_i32_594 = arith.constant 0 : i32
    %569 = tpu.memref_slice %arg20[%c6_i32_593, %c0_i32_594] : memref<8x16xf32, #tpu.memory_space<vmem>> -> memref<1x16xf32, #tpu.memory_space<vmem>>
    %570 = tpu.memref_slice %arg25[%c0_i32_590, %c6_i32_591] : memref<4x8x!tpu.dma_semaphore, #tpu.memory_space<semaphore_mem>> -> memref<1x1x!tpu.dma_semaphore, #tpu.memory_space<semaphore_mem>>
    %571 = tpu.memref_squeeze %570 : memref<1x1x!tpu.dma_semaphore, #tpu.memory_space<semaphore_mem>> -> memref<!tpu.dma_semaphore, #tpu.memory_space<semaphore_mem>>
    tpu.wait_dma2 semaphore(%571 : memref<!tpu.dma_semaphore, #tpu.memory_space<semaphore_mem>>) src(%568 : memref<1x16xf32, #tpu.memory_space<any>>) dst(%569 : memref<1x16xf32, #tpu.memory_space<vmem>>)
    %c0_i32_595 = arith.constant 0 : i32
    %c7_i32_596 = arith.constant 7 : i32
    %c0_i32_597 = arith.constant 0 : i32
    %572 = tpu.memref_slice %arg4[%35, %c0_i32_597] : memref<32x16xf32, #tpu.memory_space<any>> -> memref<1x16xf32, #tpu.memory_space<any>>
    %c7_i32_598 = arith.constant 7 : i32
    %c0_i32_599 = arith.constant 0 : i32
    %573 = tpu.memref_slice %arg20[%c7_i32_598, %c0_i32_599] : memref<8x16xf32, #tpu.memory_space<vmem>> -> memref<1x16xf32, #tpu.memory_space<vmem>>
    %574 = tpu.memref_slice %arg25[%c0_i32_595, %c7_i32_596] : memref<4x8x!tpu.dma_semaphore, #tpu.memory_space<semaphore_mem>> -> memref<1x1x!tpu.dma_semaphore, #tpu.memory_space<semaphore_mem>>
    %575 = tpu.memref_squeeze %574 : memref<1x1x!tpu.dma_semaphore, #tpu.memory_space<semaphore_mem>> -> memref<!tpu.dma_semaphore, #tpu.memory_space<semaphore_mem>>
    tpu.wait_dma2 semaphore(%575 : memref<!tpu.dma_semaphore, #tpu.memory_space<semaphore_mem>>) src(%572 : memref<1x16xf32, #tpu.memory_space<any>>) dst(%573 : memref<1x16xf32, #tpu.memory_space<vmem>>)
    %c1_i32_600 = arith.constant 1 : i32
    %c0_i32_601 = arith.constant 0 : i32
    %c0_i32_602 = arith.constant 0 : i32
    %576 = tpu.memref_slice %arg5[%40, %c0_i32_602] : memref<32x16xf32, #tpu.memory_space<any>> -> memref<1x16xf32, #tpu.memory_space<any>>
    %c0_i32_603 = arith.constant 0 : i32
    %c0_i32_604 = arith.constant 0 : i32
    %577 = tpu.memref_slice %arg21[%c0_i32_603, %c0_i32_604] : memref<8x16xf32, #tpu.memory_space<vmem>> -> memref<1x16xf32, #tpu.memory_space<vmem>>
    %578 = tpu.memref_slice %arg25[%c1_i32_600, %c0_i32_601] : memref<4x8x!tpu.dma_semaphore, #tpu.memory_space<semaphore_mem>> -> memref<1x1x!tpu.dma_semaphore, #tpu.memory_space<semaphore_mem>>
    %579 = tpu.memref_squeeze %578 : memref<1x1x!tpu.dma_semaphore, #tpu.memory_space<semaphore_mem>> -> memref<!tpu.dma_semaphore, #tpu.memory_space<semaphore_mem>>
    tpu.wait_dma2 semaphore(%579 : memref<!tpu.dma_semaphore, #tpu.memory_space<semaphore_mem>>) src(%576 : memref<1x16xf32, #tpu.memory_space<any>>) dst(%577 : memref<1x16xf32, #tpu.memory_space<vmem>>)
    %c1_i32_605 = arith.constant 1 : i32
    %c1_i32_606 = arith.constant 1 : i32
    %c0_i32_607 = arith.constant 0 : i32
    %580 = tpu.memref_slice %arg5[%45, %c0_i32_607] : memref<32x16xf32, #tpu.memory_space<any>> -> memref<1x16xf32, #tpu.memory_space<any>>
    %c1_i32_608 = arith.constant 1 : i32
    %c0_i32_609 = arith.constant 0 : i32
    %581 = tpu.memref_slice %arg21[%c1_i32_608, %c0_i32_609] : memref<8x16xf32, #tpu.memory_space<vmem>> -> memref<1x16xf32, #tpu.memory_space<vmem>>
    %582 = tpu.memref_slice %arg25[%c1_i32_605, %c1_i32_606] : memref<4x8x!tpu.dma_semaphore, #tpu.memory_space<semaphore_mem>> -> memref<1x1x!tpu.dma_semaphore, #tpu.memory_space<semaphore_mem>>
    %583 = tpu.memref_squeeze %582 : memref<1x1x!tpu.dma_semaphore, #tpu.memory_space<semaphore_mem>> -> memref<!tpu.dma_semaphore, #tpu.memory_space<semaphore_mem>>
    tpu.wait_dma2 semaphore(%583 : memref<!tpu.dma_semaphore, #tpu.memory_space<semaphore_mem>>) src(%580 : memref<1x16xf32, #tpu.memory_space<any>>) dst(%581 : memref<1x16xf32, #tpu.memory_space<vmem>>)
    %c1_i32_610 = arith.constant 1 : i32
    %c2_i32_611 = arith.constant 2 : i32
    %c0_i32_612 = arith.constant 0 : i32
    %584 = tpu.memref_slice %arg5[%50, %c0_i32_612] : memref<32x16xf32, #tpu.memory_space<any>> -> memref<1x16xf32, #tpu.memory_space<any>>
    %c2_i32_613 = arith.constant 2 : i32
    %c0_i32_614 = arith.constant 0 : i32
    %585 = tpu.memref_slice %arg21[%c2_i32_613, %c0_i32_614] : memref<8x16xf32, #tpu.memory_space<vmem>> -> memref<1x16xf32, #tpu.memory_space<vmem>>
    %586 = tpu.memref_slice %arg25[%c1_i32_610, %c2_i32_611] : memref<4x8x!tpu.dma_semaphore, #tpu.memory_space<semaphore_mem>> -> memref<1x1x!tpu.dma_semaphore, #tpu.memory_space<semaphore_mem>>
    %587 = tpu.memref_squeeze %586 : memref<1x1x!tpu.dma_semaphore, #tpu.memory_space<semaphore_mem>> -> memref<!tpu.dma_semaphore, #tpu.memory_space<semaphore_mem>>
    tpu.wait_dma2 semaphore(%587 : memref<!tpu.dma_semaphore, #tpu.memory_space<semaphore_mem>>) src(%584 : memref<1x16xf32, #tpu.memory_space<any>>) dst(%585 : memref<1x16xf32, #tpu.memory_space<vmem>>)
    %c1_i32_615 = arith.constant 1 : i32
    %c3_i32_616 = arith.constant 3 : i32
    %c0_i32_617 = arith.constant 0 : i32
    %588 = tpu.memref_slice %arg5[%55, %c0_i32_617] : memref<32x16xf32, #tpu.memory_space<any>> -> memref<1x16xf32, #tpu.memory_space<any>>
    %c3_i32_618 = arith.constant 3 : i32
    %c0_i32_619 = arith.constant 0 : i32
    %589 = tpu.memref_slice %arg21[%c3_i32_618, %c0_i32_619] : memref<8x16xf32, #tpu.memory_space<vmem>> -> memref<1x16xf32, #tpu.memory_space<vmem>>
    %590 = tpu.memref_slice %arg25[%c1_i32_615, %c3_i32_616] : memref<4x8x!tpu.dma_semaphore, #tpu.memory_space<semaphore_mem>> -> memref<1x1x!tpu.dma_semaphore, #tpu.memory_space<semaphore_mem>>
    %591 = tpu.memref_squeeze %590 : memref<1x1x!tpu.dma_semaphore, #tpu.memory_space<semaphore_mem>> -> memref<!tpu.dma_semaphore, #tpu.memory_space<semaphore_mem>>
    tpu.wait_dma2 semaphore(%591 : memref<!tpu.dma_semaphore, #tpu.memory_space<semaphore_mem>>) src(%588 : memref<1x16xf32, #tpu.memory_space<any>>) dst(%589 : memref<1x16xf32, #tpu.memory_space<vmem>>)
    %c1_i32_620 = arith.constant 1 : i32
    %c4_i32_621 = arith.constant 4 : i32
    %c0_i32_622 = arith.constant 0 : i32
    %592 = tpu.memref_slice %arg5[%60, %c0_i32_622] : memref<32x16xf32, #tpu.memory_space<any>> -> memref<1x16xf32, #tpu.memory_space<any>>
    %c4_i32_623 = arith.constant 4 : i32
    %c0_i32_624 = arith.constant 0 : i32
    %593 = tpu.memref_slice %arg21[%c4_i32_623, %c0_i32_624] : memref<8x16xf32, #tpu.memory_space<vmem>> -> memref<1x16xf32, #tpu.memory_space<vmem>>
    %594 = tpu.memref_slice %arg25[%c1_i32_620, %c4_i32_621] : memref<4x8x!tpu.dma_semaphore, #tpu.memory_space<semaphore_mem>> -> memref<1x1x!tpu.dma_semaphore, #tpu.memory_space<semaphore_mem>>
    %595 = tpu.memref_squeeze %594 : memref<1x1x!tpu.dma_semaphore, #tpu.memory_space<semaphore_mem>> -> memref<!tpu.dma_semaphore, #tpu.memory_space<semaphore_mem>>
    tpu.wait_dma2 semaphore(%595 : memref<!tpu.dma_semaphore, #tpu.memory_space<semaphore_mem>>) src(%592 : memref<1x16xf32, #tpu.memory_space<any>>) dst(%593 : memref<1x16xf32, #tpu.memory_space<vmem>>)
    %c1_i32_625 = arith.constant 1 : i32
    %c5_i32_626 = arith.constant 5 : i32
    %c0_i32_627 = arith.constant 0 : i32
    %596 = tpu.memref_slice %arg5[%65, %c0_i32_627] : memref<32x16xf32, #tpu.memory_space<any>> -> memref<1x16xf32, #tpu.memory_space<any>>
    %c5_i32_628 = arith.constant 5 : i32
    %c0_i32_629 = arith.constant 0 : i32
    %597 = tpu.memref_slice %arg21[%c5_i32_628, %c0_i32_629] : memref<8x16xf32, #tpu.memory_space<vmem>> -> memref<1x16xf32, #tpu.memory_space<vmem>>
    %598 = tpu.memref_slice %arg25[%c1_i32_625, %c5_i32_626] : memref<4x8x!tpu.dma_semaphore, #tpu.memory_space<semaphore_mem>> -> memref<1x1x!tpu.dma_semaphore, #tpu.memory_space<semaphore_mem>>
    %599 = tpu.memref_squeeze %598 : memref<1x1x!tpu.dma_semaphore, #tpu.memory_space<semaphore_mem>> -> memref<!tpu.dma_semaphore, #tpu.memory_space<semaphore_mem>>
    tpu.wait_dma2 semaphore(%599 : memref<!tpu.dma_semaphore, #tpu.memory_space<semaphore_mem>>) src(%596 : memref<1x16xf32, #tpu.memory_space<any>>) dst(%597 : memref<1x16xf32, #tpu.memory_space<vmem>>)
    %c1_i32_630 = arith.constant 1 : i32
    %c6_i32_631 = arith.constant 6 : i32
    %c0_i32_632 = arith.constant 0 : i32
    %600 = tpu.memref_slice %arg5[%70, %c0_i32_632] : memref<32x16xf32, #tpu.memory_space<any>> -> memref<1x16xf32, #tpu.memory_space<any>>
    %c6_i32_633 = arith.constant 6 : i32
    %c0_i32_634 = arith.constant 0 : i32
    %601 = tpu.memref_slice %arg21[%c6_i32_633, %c0_i32_634] : memref<8x16xf32, #tpu.memory_space<vmem>> -> memref<1x16xf32, #tpu.memory_space<vmem>>
    %602 = tpu.memref_slice %arg25[%c1_i32_630, %c6_i32_631] : memref<4x8x!tpu.dma_semaphore, #tpu.memory_space<semaphore_mem>> -> memref<1x1x!tpu.dma_semaphore, #tpu.memory_space<semaphore_mem>>
    %603 = tpu.memref_squeeze %602 : memref<1x1x!tpu.dma_semaphore, #tpu.memory_space<semaphore_mem>> -> memref<!tpu.dma_semaphore, #tpu.memory_space<semaphore_mem>>
    tpu.wait_dma2 semaphore(%603 : memref<!tpu.dma_semaphore, #tpu.memory_space<semaphore_mem>>) src(%600 : memref<1x16xf32, #tpu.memory_space<any>>) dst(%601 : memref<1x16xf32, #tpu.memory_space<vmem>>)
    %c1_i32_635 = arith.constant 1 : i32
    %c7_i32_636 = arith.constant 7 : i32
    %c0_i32_637 = arith.constant 0 : i32
    %604 = tpu.memref_slice %arg5[%75, %c0_i32_637] : memref<32x16xf32, #tpu.memory_space<any>> -> memref<1x16xf32, #tpu.memory_space<any>>
    %c7_i32_638 = arith.constant 7 : i32
    %c0_i32_639 = arith.constant 0 : i32
    %605 = tpu.memref_slice %arg21[%c7_i32_638, %c0_i32_639] : memref<8x16xf32, #tpu.memory_space<vmem>> -> memref<1x16xf32, #tpu.memory_space<vmem>>
    %606 = tpu.memref_slice %arg25[%c1_i32_635, %c7_i32_636] : memref<4x8x!tpu.dma_semaphore, #tpu.memory_space<semaphore_mem>> -> memref<1x1x!tpu.dma_semaphore, #tpu.memory_space<semaphore_mem>>
    %607 = tpu.memref_squeeze %606 : memref<1x1x!tpu.dma_semaphore, #tpu.memory_space<semaphore_mem>> -> memref<!tpu.dma_semaphore, #tpu.memory_space<semaphore_mem>>
    tpu.wait_dma2 semaphore(%607 : memref<!tpu.dma_semaphore, #tpu.memory_space<semaphore_mem>>) src(%604 : memref<1x16xf32, #tpu.memory_space<any>>) dst(%605 : memref<1x16xf32, #tpu.memory_space<vmem>>)
    %c2_i32_640 = arith.constant 2 : i32
    %c0_i32_641 = arith.constant 0 : i32
    %c0_i32_642 = arith.constant 0 : i32
    %608 = tpu.memref_slice %arg6[%80, %c0_i32_642] : memref<32x16xf32, #tpu.memory_space<any>> -> memref<1x16xf32, #tpu.memory_space<any>>
    %c0_i32_643 = arith.constant 0 : i32
    %c0_i32_644 = arith.constant 0 : i32
    %609 = tpu.memref_slice %arg22[%c0_i32_643, %c0_i32_644] : memref<8x16xf32, #tpu.memory_space<vmem>> -> memref<1x16xf32, #tpu.memory_space<vmem>>
    %610 = tpu.memref_slice %arg25[%c2_i32_640, %c0_i32_641] : memref<4x8x!tpu.dma_semaphore, #tpu.memory_space<semaphore_mem>> -> memref<1x1x!tpu.dma_semaphore, #tpu.memory_space<semaphore_mem>>
    %611 = tpu.memref_squeeze %610 : memref<1x1x!tpu.dma_semaphore, #tpu.memory_space<semaphore_mem>> -> memref<!tpu.dma_semaphore, #tpu.memory_space<semaphore_mem>>
    tpu.wait_dma2 semaphore(%611 : memref<!tpu.dma_semaphore, #tpu.memory_space<semaphore_mem>>) src(%608 : memref<1x16xf32, #tpu.memory_space<any>>) dst(%609 : memref<1x16xf32, #tpu.memory_space<vmem>>)
    %c2_i32_645 = arith.constant 2 : i32
    %c1_i32_646 = arith.constant 1 : i32
    %c0_i32_647 = arith.constant 0 : i32
    %612 = tpu.memref_slice %arg6[%85, %c0_i32_647] : memref<32x16xf32, #tpu.memory_space<any>> -> memref<1x16xf32, #tpu.memory_space<any>>
    %c1_i32_648 = arith.constant 1 : i32
    %c0_i32_649 = arith.constant 0 : i32
    %613 = tpu.memref_slice %arg22[%c1_i32_648, %c0_i32_649] : memref<8x16xf32, #tpu.memory_space<vmem>> -> memref<1x16xf32, #tpu.memory_space<vmem>>
    %614 = tpu.memref_slice %arg25[%c2_i32_645, %c1_i32_646] : memref<4x8x!tpu.dma_semaphore, #tpu.memory_space<semaphore_mem>> -> memref<1x1x!tpu.dma_semaphore, #tpu.memory_space<semaphore_mem>>
    %615 = tpu.memref_squeeze %614 : memref<1x1x!tpu.dma_semaphore, #tpu.memory_space<semaphore_mem>> -> memref<!tpu.dma_semaphore, #tpu.memory_space<semaphore_mem>>
    tpu.wait_dma2 semaphore(%615 : memref<!tpu.dma_semaphore, #tpu.memory_space<semaphore_mem>>) src(%612 : memref<1x16xf32, #tpu.memory_space<any>>) dst(%613 : memref<1x16xf32, #tpu.memory_space<vmem>>)
    %c2_i32_650 = arith.constant 2 : i32
    %c2_i32_651 = arith.constant 2 : i32
    %c0_i32_652 = arith.constant 0 : i32
    %616 = tpu.memref_slice %arg6[%90, %c0_i32_652] : memref<32x16xf32, #tpu.memory_space<any>> -> memref<1x16xf32, #tpu.memory_space<any>>
    %c2_i32_653 = arith.constant 2 : i32
    %c0_i32_654 = arith.constant 0 : i32
    %617 = tpu.memref_slice %arg22[%c2_i32_653, %c0_i32_654] : memref<8x16xf32, #tpu.memory_space<vmem>> -> memref<1x16xf32, #tpu.memory_space<vmem>>
    %618 = tpu.memref_slice %arg25[%c2_i32_650, %c2_i32_651] : memref<4x8x!tpu.dma_semaphore, #tpu.memory_space<semaphore_mem>> -> memref<1x1x!tpu.dma_semaphore, #tpu.memory_space<semaphore_mem>>
    %619 = tpu.memref_squeeze %618 : memref<1x1x!tpu.dma_semaphore, #tpu.memory_space<semaphore_mem>> -> memref<!tpu.dma_semaphore, #tpu.memory_space<semaphore_mem>>
    tpu.wait_dma2 semaphore(%619 : memref<!tpu.dma_semaphore, #tpu.memory_space<semaphore_mem>>) src(%616 : memref<1x16xf32, #tpu.memory_space<any>>) dst(%617 : memref<1x16xf32, #tpu.memory_space<vmem>>)
    %c2_i32_655 = arith.constant 2 : i32
    %c3_i32_656 = arith.constant 3 : i32
    %c0_i32_657 = arith.constant 0 : i32
    %620 = tpu.memref_slice %arg6[%95, %c0_i32_657] : memref<32x16xf32, #tpu.memory_space<any>> -> memref<1x16xf32, #tpu.memory_space<any>>
    %c3_i32_658 = arith.constant 3 : i32
    %c0_i32_659 = arith.constant 0 : i32
    %621 = tpu.memref_slice %arg22[%c3_i32_658, %c0_i32_659] : memref<8x16xf32, #tpu.memory_space<vmem>> -> memref<1x16xf32, #tpu.memory_space<vmem>>
    %622 = tpu.memref_slice %arg25[%c2_i32_655, %c3_i32_656] : memref<4x8x!tpu.dma_semaphore, #tpu.memory_space<semaphore_mem>> -> memref<1x1x!tpu.dma_semaphore, #tpu.memory_space<semaphore_mem>>
    %623 = tpu.memref_squeeze %622 : memref<1x1x!tpu.dma_semaphore, #tpu.memory_space<semaphore_mem>> -> memref<!tpu.dma_semaphore, #tpu.memory_space<semaphore_mem>>
    tpu.wait_dma2 semaphore(%623 : memref<!tpu.dma_semaphore, #tpu.memory_space<semaphore_mem>>) src(%620 : memref<1x16xf32, #tpu.memory_space<any>>) dst(%621 : memref<1x16xf32, #tpu.memory_space<vmem>>)
    %c2_i32_660 = arith.constant 2 : i32
    %c4_i32_661 = arith.constant 4 : i32
    %c0_i32_662 = arith.constant 0 : i32
    %624 = tpu.memref_slice %arg6[%100, %c0_i32_662] : memref<32x16xf32, #tpu.memory_space<any>> -> memref<1x16xf32, #tpu.memory_space<any>>
    %c4_i32_663 = arith.constant 4 : i32
    %c0_i32_664 = arith.constant 0 : i32
    %625 = tpu.memref_slice %arg22[%c4_i32_663, %c0_i32_664] : memref<8x16xf32, #tpu.memory_space<vmem>> -> memref<1x16xf32, #tpu.memory_space<vmem>>
    %626 = tpu.memref_slice %arg25[%c2_i32_660, %c4_i32_661] : memref<4x8x!tpu.dma_semaphore, #tpu.memory_space<semaphore_mem>> -> memref<1x1x!tpu.dma_semaphore, #tpu.memory_space<semaphore_mem>>
    %627 = tpu.memref_squeeze %626 : memref<1x1x!tpu.dma_semaphore, #tpu.memory_space<semaphore_mem>> -> memref<!tpu.dma_semaphore, #tpu.memory_space<semaphore_mem>>
    tpu.wait_dma2 semaphore(%627 : memref<!tpu.dma_semaphore, #tpu.memory_space<semaphore_mem>>) src(%624 : memref<1x16xf32, #tpu.memory_space<any>>) dst(%625 : memref<1x16xf32, #tpu.memory_space<vmem>>)
    %c2_i32_665 = arith.constant 2 : i32
    %c5_i32_666 = arith.constant 5 : i32
    %c0_i32_667 = arith.constant 0 : i32
    %628 = tpu.memref_slice %arg6[%105, %c0_i32_667] : memref<32x16xf32, #tpu.memory_space<any>> -> memref<1x16xf32, #tpu.memory_space<any>>
    %c5_i32_668 = arith.constant 5 : i32
    %c0_i32_669 = arith.constant 0 : i32
    %629 = tpu.memref_slice %arg22[%c5_i32_668, %c0_i32_669] : memref<8x16xf32, #tpu.memory_space<vmem>> -> memref<1x16xf32, #tpu.memory_space<vmem>>
    %630 = tpu.memref_slice %arg25[%c2_i32_665, %c5_i32_666] : memref<4x8x!tpu.dma_semaphore, #tpu.memory_space<semaphore_mem>> -> memref<1x1x!tpu.dma_semaphore, #tpu.memory_space<semaphore_mem>>
    %631 = tpu.memref_squeeze %630 : memref<1x1x!tpu.dma_semaphore, #tpu.memory_space<semaphore_mem>> -> memref<!tpu.dma_semaphore, #tpu.memory_space<semaphore_mem>>
    tpu.wait_dma2 semaphore(%631 : memref<!tpu.dma_semaphore, #tpu.memory_space<semaphore_mem>>) src(%628 : memref<1x16xf32, #tpu.memory_space<any>>) dst(%629 : memref<1x16xf32, #tpu.memory_space<vmem>>)
    %c2_i32_670 = arith.constant 2 : i32
    %c6_i32_671 = arith.constant 6 : i32
    %c0_i32_672 = arith.constant 0 : i32
    %632 = tpu.memref_slice %arg6[%110, %c0_i32_672] : memref<32x16xf32, #tpu.memory_space<any>> -> memref<1x16xf32, #tpu.memory_space<any>>
    %c6_i32_673 = arith.constant 6 : i32
    %c0_i32_674 = arith.constant 0 : i32
    %633 = tpu.memref_slice %arg22[%c6_i32_673, %c0_i32_674] : memref<8x16xf32, #tpu.memory_space<vmem>> -> memref<1x16xf32, #tpu.memory_space<vmem>>
    %634 = tpu.memref_slice %arg25[%c2_i32_670, %c6_i32_671] : memref<4x8x!tpu.dma_semaphore, #tpu.memory_space<semaphore_mem>> -> memref<1x1x!tpu.dma_semaphore, #tpu.memory_space<semaphore_mem>>
    %635 = tpu.memref_squeeze %634 : memref<1x1x!tpu.dma_semaphore, #tpu.memory_space<semaphore_mem>> -> memref<!tpu.dma_semaphore, #tpu.memory_space<semaphore_mem>>
    tpu.wait_dma2 semaphore(%635 : memref<!tpu.dma_semaphore, #tpu.memory_space<semaphore_mem>>) src(%632 : memref<1x16xf32, #tpu.memory_space<any>>) dst(%633 : memref<1x16xf32, #tpu.memory_space<vmem>>)
    %c2_i32_675 = arith.constant 2 : i32
    %c7_i32_676 = arith.constant 7 : i32
    %c0_i32_677 = arith.constant 0 : i32
    %636 = tpu.memref_slice %arg6[%115, %c0_i32_677] : memref<32x16xf32, #tpu.memory_space<any>> -> memref<1x16xf32, #tpu.memory_space<any>>
    %c7_i32_678 = arith.constant 7 : i32
    %c0_i32_679 = arith.constant 0 : i32
    %637 = tpu.memref_slice %arg22[%c7_i32_678, %c0_i32_679] : memref<8x16xf32, #tpu.memory_space<vmem>> -> memref<1x16xf32, #tpu.memory_space<vmem>>
    %638 = tpu.memref_slice %arg25[%c2_i32_675, %c7_i32_676] : memref<4x8x!tpu.dma_semaphore, #tpu.memory_space<semaphore_mem>> -> memref<1x1x!tpu.dma_semaphore, #tpu.memory_space<semaphore_mem>>
    %639 = tpu.memref_squeeze %638 : memref<1x1x!tpu.dma_semaphore, #tpu.memory_space<semaphore_mem>> -> memref<!tpu.dma_semaphore, #tpu.memory_space<semaphore_mem>>
    tpu.wait_dma2 semaphore(%639 : memref<!tpu.dma_semaphore, #tpu.memory_space<semaphore_mem>>) src(%636 : memref<1x16xf32, #tpu.memory_space<any>>) dst(%637 : memref<1x16xf32, #tpu.memory_space<vmem>>)
    %c3_i32_680 = arith.constant 3 : i32
    %c0_i32_681 = arith.constant 0 : i32
    %c0_i32_682 = arith.constant 0 : i32
    %640 = tpu.memref_slice %arg7[%120, %c0_i32_682] : memref<32x16xf32, #tpu.memory_space<any>> -> memref<1x16xf32, #tpu.memory_space<any>>
    %c0_i32_683 = arith.constant 0 : i32
    %c0_i32_684 = arith.constant 0 : i32
    %641 = tpu.memref_slice %arg23[%c0_i32_683, %c0_i32_684] : memref<8x16xf32, #tpu.memory_space<vmem>> -> memref<1x16xf32, #tpu.memory_space<vmem>>
    %642 = tpu.memref_slice %arg25[%c3_i32_680, %c0_i32_681] : memref<4x8x!tpu.dma_semaphore, #tpu.memory_space<semaphore_mem>> -> memref<1x1x!tpu.dma_semaphore, #tpu.memory_space<semaphore_mem>>
    %643 = tpu.memref_squeeze %642 : memref<1x1x!tpu.dma_semaphore, #tpu.memory_space<semaphore_mem>> -> memref<!tpu.dma_semaphore, #tpu.memory_space<semaphore_mem>>
    tpu.wait_dma2 semaphore(%643 : memref<!tpu.dma_semaphore, #tpu.memory_space<semaphore_mem>>) src(%640 : memref<1x16xf32, #tpu.memory_space<any>>) dst(%641 : memref<1x16xf32, #tpu.memory_space<vmem>>)
    %c3_i32_685 = arith.constant 3 : i32
    %c1_i32_686 = arith.constant 1 : i32
    %c0_i32_687 = arith.constant 0 : i32
    %644 = tpu.memref_slice %arg7[%125, %c0_i32_687] : memref<32x16xf32, #tpu.memory_space<any>> -> memref<1x16xf32, #tpu.memory_space<any>>
    %c1_i32_688 = arith.constant 1 : i32
    %c0_i32_689 = arith.constant 0 : i32
    %645 = tpu.memref_slice %arg23[%c1_i32_688, %c0_i32_689] : memref<8x16xf32, #tpu.memory_space<vmem>> -> memref<1x16xf32, #tpu.memory_space<vmem>>
    %646 = tpu.memref_slice %arg25[%c3_i32_685, %c1_i32_686] : memref<4x8x!tpu.dma_semaphore, #tpu.memory_space<semaphore_mem>> -> memref<1x1x!tpu.dma_semaphore, #tpu.memory_space<semaphore_mem>>
    %647 = tpu.memref_squeeze %646 : memref<1x1x!tpu.dma_semaphore, #tpu.memory_space<semaphore_mem>> -> memref<!tpu.dma_semaphore, #tpu.memory_space<semaphore_mem>>
    tpu.wait_dma2 semaphore(%647 : memref<!tpu.dma_semaphore, #tpu.memory_space<semaphore_mem>>) src(%644 : memref<1x16xf32, #tpu.memory_space<any>>) dst(%645 : memref<1x16xf32, #tpu.memory_space<vmem>>)
    %c3_i32_690 = arith.constant 3 : i32
    %c2_i32_691 = arith.constant 2 : i32
    %c0_i32_692 = arith.constant 0 : i32
    %648 = tpu.memref_slice %arg7[%130, %c0_i32_692] : memref<32x16xf32, #tpu.memory_space<any>> -> memref<1x16xf32, #tpu.memory_space<any>>
    %c2_i32_693 = arith.constant 2 : i32
    %c0_i32_694 = arith.constant 0 : i32
    %649 = tpu.memref_slice %arg23[%c2_i32_693, %c0_i32_694] : memref<8x16xf32, #tpu.memory_space<vmem>> -> memref<1x16xf32, #tpu.memory_space<vmem>>
    %650 = tpu.memref_slice %arg25[%c3_i32_690, %c2_i32_691] : memref<4x8x!tpu.dma_semaphore, #tpu.memory_space<semaphore_mem>> -> memref<1x1x!tpu.dma_semaphore, #tpu.memory_space<semaphore_mem>>
    %651 = tpu.memref_squeeze %650 : memref<1x1x!tpu.dma_semaphore, #tpu.memory_space<semaphore_mem>> -> memref<!tpu.dma_semaphore, #tpu.memory_space<semaphore_mem>>
    tpu.wait_dma2 semaphore(%651 : memref<!tpu.dma_semaphore, #tpu.memory_space<semaphore_mem>>) src(%648 : memref<1x16xf32, #tpu.memory_space<any>>) dst(%649 : memref<1x16xf32, #tpu.memory_space<vmem>>)
    %c3_i32_695 = arith.constant 3 : i32
    %c3_i32_696 = arith.constant 3 : i32
    %c0_i32_697 = arith.constant 0 : i32
    %652 = tpu.memref_slice %arg7[%135, %c0_i32_697] : memref<32x16xf32, #tpu.memory_space<any>> -> memref<1x16xf32, #tpu.memory_space<any>>
    %c3_i32_698 = arith.constant 3 : i32
    %c0_i32_699 = arith.constant 0 : i32
    %653 = tpu.memref_slice %arg23[%c3_i32_698, %c0_i32_699] : memref<8x16xf32, #tpu.memory_space<vmem>> -> memref<1x16xf32, #tpu.memory_space<vmem>>
    %654 = tpu.memref_slice %arg25[%c3_i32_695, %c3_i32_696] : memref<4x8x!tpu.dma_semaphore, #tpu.memory_space<semaphore_mem>> -> memref<1x1x!tpu.dma_semaphore, #tpu.memory_space<semaphore_mem>>
    %655 = tpu.memref_squeeze %654 : memref<1x1x!tpu.dma_semaphore, #tpu.memory_space<semaphore_mem>> -> memref<!tpu.dma_semaphore, #tpu.memory_space<semaphore_mem>>
    tpu.wait_dma2 semaphore(%655 : memref<!tpu.dma_semaphore, #tpu.memory_space<semaphore_mem>>) src(%652 : memref<1x16xf32, #tpu.memory_space<any>>) dst(%653 : memref<1x16xf32, #tpu.memory_space<vmem>>)
    %c3_i32_700 = arith.constant 3 : i32
    %c4_i32_701 = arith.constant 4 : i32
    %c0_i32_702 = arith.constant 0 : i32
    %656 = tpu.memref_slice %arg7[%140, %c0_i32_702] : memref<32x16xf32, #tpu.memory_space<any>> -> memref<1x16xf32, #tpu.memory_space<any>>
    %c4_i32_703 = arith.constant 4 : i32
    %c0_i32_704 = arith.constant 0 : i32
    %657 = tpu.memref_slice %arg23[%c4_i32_703, %c0_i32_704] : memref<8x16xf32, #tpu.memory_space<vmem>> -> memref<1x16xf32, #tpu.memory_space<vmem>>
    %658 = tpu.memref_slice %arg25[%c3_i32_700, %c4_i32_701] : memref<4x8x!tpu.dma_semaphore, #tpu.memory_space<semaphore_mem>> -> memref<1x1x!tpu.dma_semaphore, #tpu.memory_space<semaphore_mem>>
    %659 = tpu.memref_squeeze %658 : memref<1x1x!tpu.dma_semaphore, #tpu.memory_space<semaphore_mem>> -> memref<!tpu.dma_semaphore, #tpu.memory_space<semaphore_mem>>
    tpu.wait_dma2 semaphore(%659 : memref<!tpu.dma_semaphore, #tpu.memory_space<semaphore_mem>>) src(%656 : memref<1x16xf32, #tpu.memory_space<any>>) dst(%657 : memref<1x16xf32, #tpu.memory_space<vmem>>)
    %c3_i32_705 = arith.constant 3 : i32
    %c5_i32_706 = arith.constant 5 : i32
    %c0_i32_707 = arith.constant 0 : i32
    %660 = tpu.memref_slice %arg7[%145, %c0_i32_707] : memref<32x16xf32, #tpu.memory_space<any>> -> memref<1x16xf32, #tpu.memory_space<any>>
    %c5_i32_708 = arith.constant 5 : i32
    %c0_i32_709 = arith.constant 0 : i32
    %661 = tpu.memref_slice %arg23[%c5_i32_708, %c0_i32_709] : memref<8x16xf32, #tpu.memory_space<vmem>> -> memref<1x16xf32, #tpu.memory_space<vmem>>
    %662 = tpu.memref_slice %arg25[%c3_i32_705, %c5_i32_706] : memref<4x8x!tpu.dma_semaphore, #tpu.memory_space<semaphore_mem>> -> memref<1x1x!tpu.dma_semaphore, #tpu.memory_space<semaphore_mem>>
    %663 = tpu.memref_squeeze %662 : memref<1x1x!tpu.dma_semaphore, #tpu.memory_space<semaphore_mem>> -> memref<!tpu.dma_semaphore, #tpu.memory_space<semaphore_mem>>
    tpu.wait_dma2 semaphore(%663 : memref<!tpu.dma_semaphore, #tpu.memory_space<semaphore_mem>>) src(%660 : memref<1x16xf32, #tpu.memory_space<any>>) dst(%661 : memref<1x16xf32, #tpu.memory_space<vmem>>)
    %c3_i32_710 = arith.constant 3 : i32
    %c6_i32_711 = arith.constant 6 : i32
    %c0_i32_712 = arith.constant 0 : i32
    %664 = tpu.memref_slice %arg7[%150, %c0_i32_712] : memref<32x16xf32, #tpu.memory_space<any>> -> memref<1x16xf32, #tpu.memory_space<any>>
    %c6_i32_713 = arith.constant 6 : i32
    %c0_i32_714 = arith.constant 0 : i32
    %665 = tpu.memref_slice %arg23[%c6_i32_713, %c0_i32_714] : memref<8x16xf32, #tpu.memory_space<vmem>> -> memref<1x16xf32, #tpu.memory_space<vmem>>
    %666 = tpu.memref_slice %arg25[%c3_i32_710, %c6_i32_711] : memref<4x8x!tpu.dma_semaphore, #tpu.memory_space<semaphore_mem>> -> memref<1x1x!tpu.dma_semaphore, #tpu.memory_space<semaphore_mem>>
    %667 = tpu.memref_squeeze %666 : memref<1x1x!tpu.dma_semaphore, #tpu.memory_space<semaphore_mem>> -> memref<!tpu.dma_semaphore, #tpu.memory_space<semaphore_mem>>
    tpu.wait_dma2 semaphore(%667 : memref<!tpu.dma_semaphore, #tpu.memory_space<semaphore_mem>>) src(%664 : memref<1x16xf32, #tpu.memory_space<any>>) dst(%665 : memref<1x16xf32, #tpu.memory_space<vmem>>)
    %c3_i32_715 = arith.constant 3 : i32
    %c7_i32_716 = arith.constant 7 : i32
    %c0_i32_717 = arith.constant 0 : i32
    %668 = tpu.memref_slice %arg7[%155, %c0_i32_717] : memref<32x16xf32, #tpu.memory_space<any>> -> memref<1x16xf32, #tpu.memory_space<any>>
    %c7_i32_718 = arith.constant 7 : i32
    %c0_i32_719 = arith.constant 0 : i32
    %669 = tpu.memref_slice %arg23[%c7_i32_718, %c0_i32_719] : memref<8x16xf32, #tpu.memory_space<vmem>> -> memref<1x16xf32, #tpu.memory_space<vmem>>
    %670 = tpu.memref_slice %arg25[%c3_i32_715, %c7_i32_716] : memref<4x8x!tpu.dma_semaphore, #tpu.memory_space<semaphore_mem>> -> memref<1x1x!tpu.dma_semaphore, #tpu.memory_space<semaphore_mem>>
    %671 = tpu.memref_squeeze %670 : memref<1x1x!tpu.dma_semaphore, #tpu.memory_space<semaphore_mem>> -> memref<!tpu.dma_semaphore, #tpu.memory_space<semaphore_mem>>
    tpu.wait_dma2 semaphore(%671 : memref<!tpu.dma_semaphore, #tpu.memory_space<semaphore_mem>>) src(%668 : memref<1x16xf32, #tpu.memory_space<any>>) dst(%669 : memref<1x16xf32, #tpu.memory_space<vmem>>)
    %c0_720 = arith.constant 0 : index
    %c0_721 = arith.constant 0 : index
    %672 = vector.load %arg20[%c0_720, %c0_721] : memref<8x16xf32, #tpu.memory_space<vmem>>, vector<8x16xf32>
    %c0_722 = arith.constant 0 : index
    %c0_723 = arith.constant 0 : index
    %673 = vector.load %arg21[%c0_722, %c0_723] : memref<8x16xf32, #tpu.memory_space<vmem>>, vector<8x16xf32>
    %674 = arith.mulf %672, %673 : vector<8x16xf32>
    %c0_724 = arith.constant 0 : index
    %c0_725 = arith.constant 0 : index
    %675 = vector.load %arg22[%c0_724, %c0_725] : memref<8x16xf32, #tpu.memory_space<vmem>>, vector<8x16xf32>
    %c0_726 = arith.constant 0 : index
    %c0_727 = arith.constant 0 : index
    %676 = vector.load %arg9[%c0_726, %c0_727] : memref<16x32xf32, #tpu.memory_space<vmem>>, vector<16x32xf32>
    %cst = arith.constant dense<0.000000e+00> : vector<8x32xf32>
    %677 = tpu.matmul %675, %676, %cst {dimension_numbers = #tpu.dot_dimension_numbers<[1], [0], [0], [1], [0, 0, 1, 1], [], []>} : vector<8x16xf32>, vector<16x32xf32>, vector<8x32xf32> -> vector<8x32xf32>
    %c0_728 = arith.constant 0 : index
    %c0_729 = arith.constant 0 : index
    %678 = vector.load %arg23[%c0_728, %c0_729] : memref<8x16xf32, #tpu.memory_space<vmem>>, vector<8x16xf32>
    %c0_730 = arith.constant 0 : index
    %c0_731 = arith.constant 0 : index
    %679 = vector.load %arg10[%c0_730, %c0_731] : memref<16x32xf32, #tpu.memory_space<vmem>>, vector<16x32xf32>
    %cst_732 = arith.constant dense<0.000000e+00> : vector<8x32xf32>
    %680 = tpu.matmul %678, %679, %cst_732 {dimension_numbers = #tpu.dot_dimension_numbers<[1], [0], [0], [1], [0, 0, 1, 1], [], []>} : vector<8x16xf32>, vector<16x32xf32>, vector<8x32xf32> -> vector<8x32xf32>
    %681 = arith.addf %677, %680 : vector<8x32xf32>
    %c0_733 = arith.constant 0 : index
    %c0_734 = arith.constant 0 : index
    %682 = vector.load %arg11[%c0_733, %c0_734] : memref<1x32xf32, #tpu.memory_space<vmem>>, vector<1x32xf32>
    %683 = vector.broadcast %682 : vector<1x32xf32> to vector<8x32xf32>
    %684 = arith.addf %681, %683 : vector<8x32xf32>
    %cst_735 = arith.constant 0.000000e+00 : f32
    %685 = vector.broadcast %cst_735 : f32 to vector<8x32xf32>
    %686 = arith.maximumf %684, %685 : vector<8x32xf32>
    %c0_736 = arith.constant 0 : index
    %c0_737 = arith.constant 0 : index
    %687 = vector.load %arg12[%c0_736, %c0_737] : memref<32x16xf32, #tpu.memory_space<vmem>>, vector<32x16xf32>
    %cst_738 = arith.constant dense<0.000000e+00> : vector<8x16xf32>
    %688 = tpu.matmul %686, %687, %cst_738 {dimension_numbers = #tpu.dot_dimension_numbers<[1], [0], [0], [1], [0, 0, 1, 1], [], []>} : vector<8x32xf32>, vector<32x16xf32>, vector<8x16xf32> -> vector<8x16xf32>
    %c0_739 = arith.constant 0 : index
    %c0_740 = arith.constant 0 : index
    %689 = vector.load %arg13[%c0_739, %c0_740] : memref<1x16xf32, #tpu.memory_space<vmem>>, vector<1x16xf32>
    %690 = vector.broadcast %689 : vector<1x16xf32> to vector<8x16xf32>
    %691 = arith.addf %688, %690 : vector<8x16xf32>
    %cst_741 = arith.constant 0.000000e+00 : f32
    %692 = vector.broadcast %cst_741 : f32 to vector<8x16xf32>
    %693 = arith.maximumf %691, %692 : vector<8x16xf32>
    %c0_742 = arith.constant 0 : index
    %c0_743 = arith.constant 0 : index
    %694 = vector.load %arg18[%c0_742, %c0_743] : memref<8x32xf32, #tpu.memory_space<vmem>>, vector<8x16xf32>
    tpu.vector_store %arg18[%c0_742, %c0_743], %674 {strides = array<i32>} : memref<8x32xf32, #tpu.memory_space<vmem>>, vector<8x16xf32>,
    %c0_744 = arith.constant 0 : index
    %c16 = arith.constant 16 : index
    %695 = vector.load %arg18[%c0_744, %c16] : memref<8x32xf32, #tpu.memory_space<vmem>>, vector<8x16xf32>
    tpu.vector_store %arg18[%c0_744, %c16], %693 {strides = array<i32>} : memref<8x32xf32, #tpu.memory_space<vmem>>, vector<8x16xf32>,
    %c0_745 = arith.constant 0 : index
    %c0_746 = arith.constant 0 : index
    %696 = vector.load %arg14[%c0_745, %c0_746] : memref<16x4xf32, #tpu.memory_space<vmem>>, vector<16x4xf32>
    %cst_747 = arith.constant dense<0.000000e+00> : vector<8x4xf32>
    %697 = tpu.matmul %674, %696, %cst_747 {dimension_numbers = #tpu.dot_dimension_numbers<[1], [0], [0], [1], [0, 0, 1, 1], [], []>} : vector<8x16xf32>, vector<16x4xf32>, vector<8x4xf32> -> vector<8x4xf32>
    %c0_748 = arith.constant 0 : index
    %c0_749 = arith.constant 0 : index
    %698 = vector.load %arg15[%c0_748, %c0_749] : memref<16x4xf32, #tpu.memory_space<vmem>>, vector<16x4xf32>
    %cst_750 = arith.constant dense<0.000000e+00> : vector<8x4xf32>
    %699 = tpu.matmul %693, %698, %cst_750 {dimension_numbers = #tpu.dot_dimension_numbers<[1], [0], [0], [1], [0, 0, 1, 1], [], []>} : vector<8x16xf32>, vector<16x4xf32>, vector<8x4xf32> -> vector<8x4xf32>
    %700 = arith.addf %697, %699 : vector<8x4xf32>
    %c0_751 = arith.constant 0 : index
    %c0_752 = arith.constant 0 : index
    %701 = vector.load %arg16[%c0_751, %c0_752] : memref<1x4xf32, #tpu.memory_space<vmem>>, vector<1x4xf32>
    %702 = vector.broadcast %701 : vector<1x4xf32> to vector<8x4xf32>
    %703 = arith.addf %700, %702 : vector<8x4xf32>
    %c0_753 = arith.constant 0 : index
    %c0_754 = arith.constant 0 : index
    %c0_755 = arith.constant 0 : index
    %704 = vector.load %arg24[%c0_753, %c0_754, %c0_755] : memref<8x8x16xf32, #tpu.memory_space<vmem>>, vector<8x8x16xf32>
    %705 = vector.extract_strided_slice %703 {offsets = [0, 0], sizes = [8, 1], strides = [1, 1]} : vector<8x4xf32> to vector<8x1xf32>
    %c0_756 = arith.constant 0 : index
    %c0_757 = arith.constant 0 : index
    %706 = vector.load %arg17[%c0_756, %c0_757] : memref<3x16xf32, #tpu.memory_space<vmem>>, vector<1x16xf32>
    %707 = vector.shape_cast %706 : vector<1x16xf32> to vector<16xf32>
    %708 = vector.shape_cast %707 : vector<16xf32> to vector<1x1x16xf32>
    %709 = vector.broadcast %708 : vector<1x1x16xf32> to vector<8x8x16xf32>
    %710 = arith.mulf %704, %709 : vector<8x8x16xf32>
    %cst_758 = arith.constant dense<0.000000e+00> : vector<8x8xf32>
    %711 = vector.multi_reduction <add>, %710, %cst_758 [2] : vector<8x8x16xf32> to vector<8x8xf32>
    %712 = vector.extract_strided_slice %703 {offsets = [0, 1], sizes = [8, 1], strides = [1, 1]} : vector<8x4xf32> to vector<8x1xf32>
    %713 = vector.broadcast %712 : vector<8x1xf32> to vector<8x8xf32>
    %714 = arith.addf %713, %711 : vector<8x8xf32>
    %715 = arith.negf %714 : vector<8x8xf32>
    %716 = math.exp %715 : vector<8x8xf32>
    %cst_759 = arith.constant 1.000000e+00 : f32
    %717 = vector.broadcast %cst_759 : f32 to vector<8x8xf32>
    %718 = arith.addf %717, %716 : vector<8x8xf32>
    %719 = arith.divf %717, %718 : vector<8x8xf32>
    %c1_760 = arith.constant 1 : index
    %c0_761 = arith.constant 0 : index
    %720 = vector.load %arg17[%c1_760, %c0_761] : memref<3x16xf32, #tpu.memory_space<vmem>>, vector<1x16xf32>
    %721 = vector.shape_cast %720 : vector<1x16xf32> to vector<16xf32>
    %722 = vector.shape_cast %721 : vector<16xf32> to vector<1x1x16xf32>
    %723 = vector.broadcast %722 : vector<1x1x16xf32> to vector<8x8x16xf32>
    %724 = arith.mulf %704, %723 : vector<8x8x16xf32>
    %cst_762 = arith.constant dense<0.000000e+00> : vector<8x8xf32>
    %725 = vector.multi_reduction <add>, %724, %cst_762 [2] : vector<8x8x16xf32> to vector<8x8xf32>
    %726 = vector.extract_strided_slice %703 {offsets = [0, 2], sizes = [8, 1], strides = [1, 1]} : vector<8x4xf32> to vector<8x1xf32>
    %727 = vector.broadcast %726 : vector<8x1xf32> to vector<8x8xf32>
    %728 = arith.addf %727, %725 : vector<8x8xf32>
    %729 = arith.negf %728 : vector<8x8xf32>
    %730 = math.exp %729 : vector<8x8xf32>
    %cst_763 = arith.constant 1.000000e+00 : f32
    %731 = vector.broadcast %cst_763 : f32 to vector<8x8xf32>
    %732 = arith.addf %731, %730 : vector<8x8xf32>
    %733 = arith.divf %731, %732 : vector<8x8xf32>
    %c2_764 = arith.constant 2 : index
    %c0_765 = arith.constant 0 : index
    %734 = vector.load %arg17[%c2_764, %c0_765] : memref<3x16xf32, #tpu.memory_space<vmem>>, vector<1x16xf32>
    %735 = vector.shape_cast %734 : vector<1x16xf32> to vector<16xf32>
    %736 = vector.shape_cast %735 : vector<16xf32> to vector<1x1x16xf32>
    %737 = vector.broadcast %736 : vector<1x1x16xf32> to vector<8x8x16xf32>
    %738 = arith.mulf %704, %737 : vector<8x8x16xf32>
    %cst_766 = arith.constant dense<0.000000e+00> : vector<8x8xf32>
    %739 = vector.multi_reduction <add>, %738, %cst_766 [2] : vector<8x8x16xf32> to vector<8x8xf32>
    %740 = vector.extract_strided_slice %703 {offsets = [0, 3], sizes = [8, 1], strides = [1, 1]} : vector<8x4xf32> to vector<8x1xf32>
    %741 = vector.broadcast %740 : vector<8x1xf32> to vector<8x8xf32>
    %742 = arith.addf %741, %739 : vector<8x8xf32>
    %743 = arith.negf %742 : vector<8x8xf32>
    %744 = math.exp %743 : vector<8x8xf32>
    %cst_767 = arith.constant 1.000000e+00 : f32
    %745 = vector.broadcast %cst_767 : f32 to vector<8x8xf32>
    %746 = arith.addf %745, %744 : vector<8x8xf32>
    %747 = arith.divf %745, %746 : vector<8x8xf32>
    %748 = tpu.concatenate %705, %719, %733, %747 in 1 : vector<8x1xf32>, vector<8x8xf32>, vector<8x8xf32>, vector<8x8xf32> -> vector<8x25xf32>
    %c0_768 = arith.constant 0 : index
    %c0_769 = arith.constant 0 : index
    %749 = vector.load %arg19[%c0_768, %c0_769] : memref<8x25xf32, #tpu.memory_space<vmem>>, vector<8x25xf32>
    tpu.vector_store %arg19[%c0_768, %c0_769], %748 {strides = array<i32>} : memref<8x25xf32, #tpu.memory_space<vmem>>, vector<8x25xf32>,
    return
  }
  func.func @transform_4(%arg0: i32, %arg1: memref<8xi32, #tpu.memory_space<smem>>, %arg2: memref<8xi32, #tpu.memory_space<smem>>, %arg3: memref<8x8xi32, #tpu.memory_space<smem>>) -> (i32, i32) {
    %c0_i32 = arith.constant 0 : i32
    %c0_i32_0 = arith.constant 0 : i32
    %c0_i32_1 = arith.constant 0 : i32
    return %c0_i32, %c0_i32_0 : i32, i32
  }
  func.func @transform_5(%arg0: i32, %arg1: memref<8xi32, #tpu.memory_space<smem>>, %arg2: memref<8xi32, #tpu.memory_space<smem>>, %arg3: memref<8x8xi32, #tpu.memory_space<smem>>) -> (i32, i32) {
    %c0_i32 = arith.constant 0 : i32
    %c0_i32_0 = arith.constant 0 : i32
    %c0_i32_1 = arith.constant 0 : i32
    return %c0_i32, %c0_i32_0 : i32, i32
  }
  func.func @transform_6(%arg0: i32, %arg1: memref<8xi32, #tpu.memory_space<smem>>, %arg2: memref<8xi32, #tpu.memory_space<smem>>, %arg3: memref<8x8xi32, #tpu.memory_space<smem>>) -> (i32, i32) {
    %c0_i32 = arith.constant 0 : i32
    %c0_i32_0 = arith.constant 0 : i32
    %c0_i32_1 = arith.constant 0 : i32
    return %c0_i32, %c0_i32_0 : i32, i32
  }
  func.func @transform_7(%arg0: i32, %arg1: memref<8xi32, #tpu.memory_space<smem>>, %arg2: memref<8xi32, #tpu.memory_space<smem>>, %arg3: memref<8x8xi32, #tpu.memory_space<smem>>) -> (i32, i32) {
    %c0_i32 = arith.constant 0 : i32
    %c0_i32_0 = arith.constant 0 : i32
    %c0_i32_1 = arith.constant 0 : i32
    return %c0_i32, %c0_i32_0 : i32, i32
  }
  func.func @transform_8(%arg0: i32, %arg1: memref<8xi32, #tpu.memory_space<smem>>, %arg2: memref<8xi32, #tpu.memory_space<smem>>, %arg3: memref<8x8xi32, #tpu.memory_space<smem>>) -> (i32, i32) {
    %c0_i32 = arith.constant 0 : i32
    %c0_i32_0 = arith.constant 0 : i32
    %c0_i32_1 = arith.constant 0 : i32
    return %c0_i32, %c0_i32_0 : i32, i32
  }
  func.func @transform_9(%arg0: i32, %arg1: memref<8xi32, #tpu.memory_space<smem>>, %arg2: memref<8xi32, #tpu.memory_space<smem>>, %arg3: memref<8x8xi32, #tpu.memory_space<smem>>) -> (i32, i32) {
    %c0_i32 = arith.constant 0 : i32
    %c0_i32_0 = arith.constant 0 : i32
    %c0_i32_1 = arith.constant 0 : i32
    return %c0_i32, %c0_i32_0 : i32, i32
  }
  func.func @transform_10(%arg0: i32, %arg1: memref<8xi32, #tpu.memory_space<smem>>, %arg2: memref<8xi32, #tpu.memory_space<smem>>, %arg3: memref<8x8xi32, #tpu.memory_space<smem>>) -> (i32, i32) {
    %c0_i32 = arith.constant 0 : i32
    %c0_i32_0 = arith.constant 0 : i32
    %c0_i32_1 = arith.constant 0 : i32
    return %c0_i32, %c0_i32_0 : i32, i32
  }
  func.func @transform_11(%arg0: i32, %arg1: memref<8xi32, #tpu.memory_space<smem>>, %arg2: memref<8xi32, #tpu.memory_space<smem>>, %arg3: memref<8x8xi32, #tpu.memory_space<smem>>) -> (i32, i32) {
    %c0_i32 = arith.constant 0 : i32
    %c0_i32_0 = arith.constant 0 : i32
    %c0_i32_1 = arith.constant 0 : i32
    return %c0_i32, %c0_i32_0 : i32, i32
  }
  func.func @transform_12(%arg0: i32, %arg1: memref<8xi32, #tpu.memory_space<smem>>, %arg2: memref<8xi32, #tpu.memory_space<smem>>, %arg3: memref<8x8xi32, #tpu.memory_space<smem>>) -> (i32, i32) {
    %c0_i32 = arith.constant 0 : i32
    %c0_i32_0 = arith.constant 0 : i32
    %c0_i32_1 = arith.constant 0 : i32
    return %c0_i32, %c0_i32_0 : i32, i32
  }
  func.func @transform_13(%arg0: i32, %arg1: memref<8xi32, #tpu.memory_space<smem>>, %arg2: memref<8xi32, #tpu.memory_space<smem>>, %arg3: memref<8x8xi32, #tpu.memory_space<smem>>) -> (i32, i32) {
    %c0_i32 = arith.constant 0 : i32
    %c0_i32_0 = arith.constant 0 : i32
    %c0_i32_1 = arith.constant 0 : i32
    return %c0_i32, %c0_i32_0 : i32, i32
  }
  func.func @transform_14(%arg0: i32, %arg1: memref<8xi32, #tpu.memory_space<smem>>, %arg2: memref<8xi32, #tpu.memory_space<smem>>, %arg3: memref<8x8xi32, #tpu.memory_space<smem>>) -> (i32, i32) {
    %c0_i32 = arith.constant 0 : i32
    %c0_i32_0 = arith.constant 0 : i32
    %c0_i32_1 = arith.constant 0 : i32
    return %c0_i32, %c0_i32_0 : i32, i32
  }
  func.func @transform_15(%arg0: i32, %arg1: memref<8xi32, #tpu.memory_space<smem>>, %arg2: memref<8xi32, #tpu.memory_space<smem>>, %arg3: memref<8x8xi32, #tpu.memory_space<smem>>) -> (i32, i32) {
    %c0_i32 = arith.constant 0 : i32
    %c0_i32_0 = arith.constant 0 : i32
    %c0_i32_1 = arith.constant 0 : i32
    return %c0_i32, %c0_i32_0 : i32, i32
  }
}

</mosaic_0001>

<bundles_post_ra>
// kernel: tpu_custom_call.1
= control target key start
LH: loop header
LB: loop body
LE: loop exit
PB: predicated region body
PF: predicated region fallthrough
CT: control target
= control target key end

     0   :  { %s4437_s0 = inlined_call_operand.vmem [shape: s32[8], index: 0, kind: input, shape index: {}]   ;;  %s4438_s3 = inlined_call_operand.vmem [shape: f32[32,16], index: 3, kind: input, shape index: {}]   ;;  %s4439_s4 = inlined_call_operand.vmem [shape: f32[32,16], index: 4, kind: input, shape index: {}]   ;;  %s4440_s5 = inlined_call_operand.vmem [shape: f32[32,16], index: 5, kind: input, shape index: {}]   ;;  %s4441_s6 = inlined_call_operand.vmem [shape: f32[32,16], index: 6, kind: input, shape index: {}]   ;;  %s4442_s7 = inlined_call_operand.vmem [shape: f32[16,16], index: 7, kind: input, shape index: {}]   ;;  %s4443_s8 = inlined_call_operand.vmem [shape: f32[16,32], index: 8, kind: input, shape index: {}]   ;;  %s4444_s9 = inlined_call_operand.vmem [shape: f32[16,32], index: 9, kind: input, shape index: {}]   ;;  %s4445_s10 = inlined_call_operand.vmem [shape: f32[1,32], index: 10, kind: input, shape index: {}]   ;;  %s4446_s11 = inlined_call_operand.vmem [shape: f32[32,16], index: 11, kind: input, shape index: {}]   ;;  %s4447_s12 = inlined_call_operand.vmem [shape: f32[1,16], index: 12, kind: input, shape index: {}]   ;;  %s4448_s13 = inlined_call_operand.vmem [shape: f32[16,4], index: 13, kind: input, shape index: {}]   ;;  %s4449_s14 = inlined_call_operand.vmem [shape: f32[16,4], index: 14, kind: input, shape index: {}]   ;;  %s4450_s15 = inlined_call_operand.vmem [shape: f32[1,4], index: 15, kind: input, shape index: {}]   ;;  %s4451_s16 = inlined_call_operand.vmem [shape: f32[3,16], index: 16, kind: input, shape index: {}]   ;;  %s4452_s17 = inlined_call_operand.hbm [shape: f32[8,32], index: 17, kind: output, shape index: {0}]   ;;  %s4453_s18 = inlined_call_operand.hbm [shape: f32[8,25], index: 18, kind: output, shape index: {1}]   ;;  %s4454_s1 = inlined_call_operand.vmem [shape: s32[8], index: 1, kind: input, shape index: {}]   ;;  %s4455_s2 = inlined_call_operand.vmem [shape: s32[8,8], index: 2, kind: input, shape index: {}]  }
   0x1   :  { %4459 = sst [smem:[#allocation83_spill]] %s4437_s0  ;;  %s28_s19 = sshll.u32 %s4454_s1, 4  ;;  %s29_s19 = int_to_ptr.vmem [resolvable:$true] %s28_s19 }
   0x2   :  { %4460 = sst [smem:[#allocation84_spill]] %s4438_s3 }
   0x3   :  { %4461 = sst [smem:[#allocation85_spill]] %s4439_s4 }
   0x4   :  { %4462 = sst [smem:[#allocation86_spill]] %s4448_s13 }
   0x5   :  { %s4463_s29 = sld [smem:[#allocation83_spill]] }
   0xb   :  { %s24_s13 = sshll.u32 %s4463_s29, 4  ;;  %s25_s13 = int_to_ptr.vmem [resolvable:$true] %s24_s13 }
   0xc   :  { %s3643_s3 = scalar_lea.vmem %s25_s13, 16  ;;  %p3648_p1 = scmp.lt.s32.totalorder %s25_s13, %s25_s13 }
   0xd   :  { %p3644_p0 = scmp.ne.s32.totalorder %s25_s13, %s3643_s3  ;;  %p3649_p2 = scmp.lt.s32.totalorder %s3643_s3, %s3643_s3 }
   0xf   :  { %p3650_p3 = por %p3649_p2, %p3648_p1 }
  0x11   :  { %p3651_p4 = pnand %p3650_p3, %p3644_p0 }
  0x13   :  { %3654 = shalt.err (!%p3651_p4)  }
  0x14   :  { %s3789_s20 = smov [#allocation9]   ;;  %s3655_s21 = scalar_lea.vmem %s29_s19, 16 }
  0x15   :  { %27 = dma.vmem_to_smem %s25_s13, 16, %s3789_s20, [#allocation8] }
  0x16   :  { %p3656_p5 = scmp.ne.s32.totalorder %s29_s19, %s3655_s21  ;;  %p3660_p6 = scmp.lt.s32.totalorder %s29_s19, %s29_s19 }
  0x17   :  { %p3661_p7 = scmp.lt.s32.totalorder %s3655_s21, %s3655_s21 }
  0x19   :  { %p3662_p8 = por %p3661_p7, %p3660_p6 }
  0x1b   :  { %p3663_p9 = pnand %p3662_p8, %p3656_p5 }
  0x1d   :  { %3666 = shalt.err (!%p3663_p9)  }
  0x1e   :  { %s3790_s22 = smov [#allocation10]   ;;  %s32_s23 = sshll.u32 %s4455_s2, 4  ;;  %s33_s23 = int_to_ptr.vmem [resolvable:$true] %s32_s23 }
  0x1f   :  { %31 = dma.vmem_to_smem %s29_s19, 16, %s3790_s22, [#allocation8] }
  0x20   :  { %s3667_s24 = scalar_lea.vmem %s33_s23, 128  ;;  %p3672_p11 = scmp.lt.s32.totalorder %s33_s23, %s33_s23 }
  0x21   :  { %p3668_p10 = scmp.ne.s32.totalorder %s33_s23, %s3667_s24  ;;  %p3673_p12 = scmp.lt.s32.totalorder %s3667_s24, %s3667_s24 }
  0x23   :  { %p3674_p13 = por %p3673_p12, %p3672_p11 }
  0x25   :  { %p3675_p0 = pnand %p3674_p13, %p3668_p10 }
  0x27   :  { %3678 = shalt.err (!%p3675_p0)  }
  0x28   :  { %s3791_s13 = smov [#allocation11]  }
  0x29   :  { %35 = dma.vmem_to_smem %s33_s23, 128, %s3791_s13, [#allocation8] }
  0x2a   :  { %3719 = dma.done.wait [#allocation8], 160 }
  0x2b   :  { %3720 = vsyncadd [#allocation8], 4294967136 }
  0x2c   :  { %37 = sfence }
  0x2d   :  { %38 = vsyncpa [#allocation13], 0 }
  0x2e   :  { %39 = vsyncpa [#allocation15], 0  ;;  %s60_s25 = sld [smem:[#allocation9]] }
  0x2f   :  { %s4464_s28 = sld [smem:[#allocation84_spill]] }
  0x35   :  { %s61_s2 = scalar_lea.vmem %s4464_s28, %s60_s25 }
  0x36   :  { %v80_v0 = vld [vmem:[%s61_s2] sm:$0x1] }
  0x37   :  { %81 = vst [vmem:[#allocation2] sm:$0x1] %v80_v0 }
  0x38   :  { %107 = vsyncadd [#allocation7], 16  ;;  %s3420_s29 = sld [smem:[#allocation9 + $0x1]] }
  0x3e   :  { %s109_s19 = scalar_lea.vmem %s4464_s28, %s3420_s29 }
  0x3f   :  { %v130_v1 = vld [vmem:[%s109_s19] sm:$0x1] }
  0x40   :  { %131 = vst [vmem:[#allocation2 + $0x1] sm:$0x1] %v130_v1 }
  0x41   :  { %157 = vsyncadd [#allocation7 + $0x1], 16  ;;  %s3421_s3 = sld [smem:[#allocation9 + $0x2]] }
  0x47   :  { %s159_s22 = scalar_lea.vmem %s4464_s28, %s3421_s3 }
  0x48   :  { %v180_v2 = vld [vmem:[%s159_s22] sm:$0x1] }
  0x49   :  { %181 = vst [vmem:[#allocation2 + $0x2] sm:$0x1] %v180_v2 }
  0x4a   :  { %207 = vsyncadd [#allocation7 + $0x2], 16  ;;  %s3422_s1 = sld [smem:[#allocation9 + $0x3]] }
  0x50   :  { %s209_s24 = scalar_lea.vmem %s4464_s28, %s3422_s1 }
  0x51   :  { %v230_v3 = vld [vmem:[%s209_s24] sm:$0x1] }
  0x52   :  { %231 = vst [vmem:[#allocation2 + $0x3] sm:$0x1] %v230_v3 }
  0x53   :  { %257 = vsyncadd [#allocation7 + $0x3], 16  ;;  %s3423_s13 = sld [smem:[#allocation9 + $0x4]] }
  0x59   :  { %s259_s27 = scalar_lea.vmem %s4464_s28, %s3423_s13 }
  0x5a   :  { %v280_v4 = vld [vmem:[%s259_s27] sm:$0x1] }
  0x5b   :  { %281 = vst [vmem:[#allocation2 + $0x4] sm:$0x1] %v280_v4 }
  0x5c   :  { %307 = vsyncadd [#allocation7 + $0x4], 16  ;;  %s3424_s2 = sld [smem:[#allocation9 + $0x5]] }
  0x62   :  { %s309_s0 = scalar_lea.vmem %s4464_s28, %s3424_s2 }
  0x63   :  { %v330_v5 = vld [vmem:[%s309_s0] sm:$0x1] }
  0x64   :  { %331 = vst [vmem:[#allocation2 + $0x5] sm:$0x1] %v330_v5 }
  0x65   :  { %357 = vsyncadd [#allocation7 + $0x5], 16  ;;  %s3425_s19 = sld [smem:[#allocation9 + $0x6]] }
  0x6b   :  { %s359_s21 = scalar_lea.vmem %s4464_s28, %s3425_s19 }
  0x6c   :  { %v380_v6 = vld [vmem:[%s359_s21] sm:$0x1] }
  0x6d   :  { %381 = vst [vmem:[#allocation2 + $0x6] sm:$0x1] %v380_v6 }
  0x6e   :  { %407 = vsyncadd [#allocation7 + $0x6], 16  ;;  %s3426_s22 = sld [smem:[#allocation9 + $0x7]] }
  0x74   :  { %s409_s23 = scalar_lea.vmem %s4464_s28, %s3426_s22 }
  0x75   :  { %v430_v7 = vld [vmem:[%s409_s23] sm:$0x1] }
  0x76   :  { %431 = vst [vmem:[#allocation2 + $0x7] sm:$0x1] %v430_v7 }
  0x77   :  { %457 = vsyncadd [#allocation7 + $0x7], 16  ;;  %s458_s24 = sld [smem:[#allocation10]] }
  0x78   :  { %s4465_s26 = sld [smem:[#allocation85_spill]] }
  0x7e   :  { %s459_s27 = scalar_lea.vmem %s4465_s26, %s458_s24 }
  0x7f   :  { %v479_v8 = vld [vmem:[%s459_s27] sm:$0x1] }
  0x80   :  { %480 = vst [vmem:[#allocation3] sm:$0x1] %v479_v8 }
  0x81   :  { %506 = vsyncadd [#allocation7 + $0x8], 16  ;;  %s3427_s2 = sld [smem:[#allocation10 + $0x1]] }
  0x87   :  { %s508_s0 = scalar_lea.vmem %s4465_s26, %s3427_s2 }
  0x88   :  { %v529_v9 = vld [vmem:[%s508_s0] sm:$0x1] }
  0x89   :  { %530 = vst [vmem:[#allocation3 + $0x1] sm:$0x1] %v529_v9 }
  0x8a   :  { %556 = vsyncadd [#allocation7 + $0x9], 16  ;;  %s3428_s28 = sld [smem:[#allocation10 + $0x2]] }
  0x90   :  { %s558_s20 = scalar_lea.vmem %s4465_s26, %s3428_s28 }
  0x91   :  { %v579_v10 = vld [vmem:[%s558_s20] sm:$0x1] }
  0x92   :  { %580 = vst [vmem:[#allocation3 + $0x2] sm:$0x1] %v579_v10 }
  0x93   :  { %606 = vsyncadd [#allocation7 + $0xa], 16  ;;  %s3429_s21 = sld [smem:[#allocation10 + $0x3]] }
  0x99   :  { %s608_s4 = scalar_lea.vmem %s4465_s26, %s3429_s21 }
  0x9a   :  { %v629_v11 = vld [vmem:[%s608_s4] sm:$0x1] }
  0x9b   :  { %630 = vst [vmem:[#allocation3 + $0x3] sm:$0x1] %v629_v11 }
  0x9c   :  { %656 = vsyncadd [#allocation7 + $0xb], 16  ;;  %s3430_s23 = sld [smem:[#allocation10 + $0x4]] }
  0xa2   :  { %s658_s25 = scalar_lea.vmem %s4465_s26, %s3430_s23 }
  0xa3   :  { %v679_v12 = vld [vmem:[%s658_s25] sm:$0x1] }
  0xa4   :  { %680 = vst [vmem:[#allocation3 + $0x4] sm:$0x1] %v679_v12 }
  0xa5   :  { %706 = vsyncadd [#allocation7 + $0xc], 16  ;;  %s3431_s27 = sld [smem:[#allocation10 + $0x5]] }
  0xab   :  { %s708_s30 = scalar_lea.vmem %s4465_s26, %s3431_s27 }
  0xac   :  { %v729_v13 = vld [vmem:[%s708_s30] sm:$0x1] }
  0xad   :  { %730 = vst [vmem:[#allocation3 + $0x5] sm:$0x1] %v729_v13 }
  0xae   :  { %756 = vsyncadd [#allocation7 + $0xd], 16  ;;  %s3432_s0 = sld [smem:[#allocation10 + $0x6]] }
  0xb4   :  { %s758_s3 = scalar_lea.vmem %s4465_s26, %s3432_s0 }
  0xb5   :  { %v779_v14 = vld [vmem:[%s758_s3] sm:$0x1] }
  0xb6   :  { %780 = vst [vmem:[#allocation3 + $0x6] sm:$0x1] %v779_v14 }
  0xb7   :  { %806 = vsyncadd [#allocation7 + $0xe], 16  ;;  %s3433_s20 = sld [smem:[#allocation10 + $0x7]] }
  0xbd   :  { %s808_s1 = scalar_lea.vmem %s4465_s26, %s3433_s20 }
  0xbe   :  { %v829_v15 = vld [vmem:[%s808_s1] sm:$0x1] }
  0xbf   :  { %830 = vst [vmem:[#allocation3 + $0x7] sm:$0x1] %v829_v15 }
  0xc0   :  { %856 = vsyncadd [#allocation7 + $0xf], 16  ;;  %s857_s4 = sld [smem:[#allocation9]] }
  0xc6   :  { %s858_s13 = scalar_lea.vmem %s4440_s5, %s857_s4 }
  0xc7   :  { %v878_v16 = vld [vmem:[%s858_s13] sm:$0x1] }
  0xc8   :  { %879 = vst [vmem:[#allocation4] sm:$0x1] %v878_v16 }
  0xc9   :  { %905 = vsyncadd [#allocation7 + $0x10], 16  ;;  %s3434_s25 = sld [smem:[#allocation9 + $0x1]] }
  0xcf   :  { %s907_s29 = scalar_lea.vmem %s4440_s5, %s3434_s25 }
  0xd0   :  { %v928_v17 = vld [vmem:[%s907_s29] sm:$0x1] }
  0xd1   :  { %929 = vst [vmem:[#allocation4 + $0x1] sm:$0x1] %v928_v17 }
  0xd2   :  { %955 = vsyncadd [#allocation7 + $0x11], 16  ;;  %s3435_s26 = sld [smem:[#allocation9 + $0x2]] }
  0xd8   :  { %s957_s28 = scalar_lea.vmem %s4440_s5, %s3435_s26 }
  0xd9   :  { %v978_v18 = vld [vmem:[%s957_s28] sm:$0x1] }
  0xda   :  { %979 = vst [vmem:[#allocation4 + $0x2] sm:$0x1] %v978_v18 }
  0xdb   :  { %1005 = vsyncadd [#allocation7 + $0x12], 16  ;;  %s3436_s19 = sld [smem:[#allocation9 + $0x3]] }
  0xe1   :  { %s1007_s21 = scalar_lea.vmem %s4440_s5, %s3436_s19 }
  0xe2   :  { %v1028_v19 = vld [vmem:[%s1007_s21] sm:$0x1] }
  0xe3   :  { %1029 = vst [vmem:[#allocation4 + $0x3] sm:$0x1] %v1028_v19 }
  0xe4   :  { %1055 = vsyncadd [#allocation7 + $0x13], 16  ;;  %s3437_s22 = sld [smem:[#allocation9 + $0x4]] }
  0xea   :  { %s1057_s23 = scalar_lea.vmem %s4440_s5, %s3437_s22 }
  0xeb   :  { %v1078_v20 = vld [vmem:[%s1057_s23] sm:$0x1] }
  0xec   :  { %1079 = vst [vmem:[#allocation4 + $0x4] sm:$0x1] %v1078_v20 }
  0xed   :  { %1105 = vsyncadd [#allocation7 + $0x14], 16  ;;  %s3438_s24 = sld [smem:[#allocation9 + $0x5]] }
  0xf3   :  { %s1107_s27 = scalar_lea.vmem %s4440_s5, %s3438_s24 }
  0xf4   :  { %v1128_v21 = vld [vmem:[%s1107_s27] sm:$0x1] }
  0xf5   :  { %1129 = vst [vmem:[#allocation4 + $0x5] sm:$0x1] %v1128_v21 }
  0xf6   :  { %1155 = vsyncadd [#allocation7 + $0x15], 16  ;;  %s3439_s2 = sld [smem:[#allocation9 + $0x6]] }
  0xfc   :  { %s1157_s30 = scalar_lea.vmem %s4440_s5, %s3439_s2 }
  0xfd   :  { %v1178_v22 = vld [vmem:[%s1157_s30] sm:$0x1] }
  0xfe   :  { %1179 = vst [vmem:[#allocation4 + $0x6] sm:$0x1] %v1178_v22 }
  0xff   :  { %1205 = vsyncadd [#allocation7 + $0x16], 16  ;;  %s3440_s0 = sld [smem:[#allocation9 + $0x7]] }
 0x105   :  { %s1207_s3 = scalar_lea.vmem %s4440_s5, %s3440_s0 }
 0x106   :  { %v1228_v23 = vld [vmem:[%s1207_s3] sm:$0x1] }
 0x107   :  { %1229 = vst [vmem:[#allocation4 + $0x7] sm:$0x1] %v1228_v23 }
 0x108   :  { %1255 = vsyncadd [#allocation7 + $0x17], 16  ;;  %s1256_s20 = sld [smem:[#allocation10]] }
 0x10e   :  { %s1257_s1 = scalar_lea.vmem %s4441_s6, %s1256_s20 }
 0x10f   :  { %v1277_v24 = vld [vmem:[%s1257_s1] sm:$0x1] }
 0x110   :  { %1278 = vst [vmem:[#allocation5] sm:$0x1] %v1277_v24 }
 0x111   :  { %1304 = vsyncadd [#allocation7 + $0x18], 16  ;;  %s3441_s4 = sld [smem:[#allocation10 + $0x1]] }
 0x117   :  { %s1306_s13 = scalar_lea.vmem %s4441_s6, %s3441_s4 }
 0x118   :  { %v1327_v25 = vld [vmem:[%s1306_s13] sm:$0x1] }
 0x119   :  { %1328 = vst [vmem:[#allocation5 + $0x1] sm:$0x1] %v1327_v25 }
 0x11a   :  { %1354 = vsyncadd [#allocation7 + $0x19], 16  ;;  %s3442_s5 = sld [smem:[#allocation10 + $0x2]] }
 0x120   :  { %s1356_s2 = scalar_lea.vmem %s4441_s6, %s3442_s5 }
 0x121   :  { %v1377_v26 = vld [vmem:[%s1356_s2] sm:$0x1] }
 0x122   :  { %1378 = vst [vmem:[#allocation5 + $0x2] sm:$0x1] %v1377_v26 }
 0x123   :  { %1404 = vsyncadd [#allocation7 + $0x1a], 16  ;;  %s3443_s29 = sld [smem:[#allocation10 + $0x3]] }
 0x129   :  { %s1406_s0 = scalar_lea.vmem %s4441_s6, %s3443_s29 }
 0x12a   :  { %v1427_v27 = vld [vmem:[%s1406_s0] sm:$0x1] }
 0x12b   :  { %1428 = vst [vmem:[#allocation5 + $0x3] sm:$0x1] %v1427_v27 }
 0x12c   :  { %1454 = vsyncadd [#allocation7 + $0x1b], 16  ;;  %s3444_s28 = sld [smem:[#allocation10 + $0x4]] }
 0x132   :  { %s1456_s20 = scalar_lea.vmem %s4441_s6, %s3444_s28 }
 0x133   :  { %v1477_v28 = vld [vmem:[%s1456_s20] sm:$0x1] }
 0x134   :  { %1478 = vst [vmem:[#allocation5 + $0x4] sm:$0x1] %v1477_v28 }
 0x135   :  { %1504 = vsyncadd [#allocation7 + $0x1c], 16  ;;  %s3445_s21 = sld [smem:[#allocation10 + $0x5]] }
 0x13b   :  { %s1506_s4 = scalar_lea.vmem %s4441_s6, %s3445_s21 }
 0x13c   :  { %v1527_v29 = vld [vmem:[%s1506_s4] sm:$0x1] }
 0x13d   :  { %1528 = vst [vmem:[#allocation5 + $0x5] sm:$0x1] %v1527_v29 }
 0x13e   :  { %1554 = vsyncadd [#allocation7 + $0x1d], 16  ;;  %s3446_s23 = sld [smem:[#allocation10 + $0x6]] }
 0x144   :  { %s1556_s5 = scalar_lea.vmem %s4441_s6, %s3446_s23 }
 0x145   :  { %v1577_v30 = vld [vmem:[%s1556_s5] sm:$0x1] }
 0x146   :  { %1578 = vst [vmem:[#allocation5 + $0x6] sm:$0x1] %v1577_v30 }
 0x147   :  { %1604 = vsyncadd [#allocation7 + $0x1e], 16  ;;  %s3447_s25 = sld [smem:[#allocation10 + $0x7]] }
 0x14d   :  { %s1606_s29 = scalar_lea.vmem %s4441_s6, %s3447_s25 }
 0x14e   :  { %v1627_v31 = vld [vmem:[%s1606_s29] sm:$0x1] }
 0x14f   :  { %1628 = vst [vmem:[#allocation5 + $0x7] sm:$0x1] %v1627_v31 }
 0x150   :  { %1654 = vsyncadd [#allocation7 + $0x1f], 16  ;;  %s1655_s26 = sld [smem:[#allocation11]]  ;;  %vm1658_vm0 = vcmask 122880  }
 0x151   :  { %s3448_s30 = sld [smem:[#allocation11 + $0x1]] }
 0x152   :  { %s3449_s0 = sld [smem:[#allocation11 + $0x2]] }
 0x153   :  { %s3450_s28 = sld [smem:[#allocation11 + $0x3]] }
 0x154   :  { %s3451_s19 = sld [smem:[#allocation11 + $0x4]] }
 0x155   :  { %s3452_s3 = sld [smem:[#allocation11 + $0x5]] }
 0x156   :  { %s1656_s22 = scalar_lea.vmem %s4442_s7, %s1655_s26  ;;  %s3453_s1 = sld [smem:[#allocation11 + $0x6]] }
 0x157   :  { %v1657_v32 = vld [vmem:[%s1656_s22] sm:$0x1]  ;;  %s1661_s6 = scalar_lea.vmem %s4442_s7, %s3448_s30  ;;  %s3454_s24 = sld [smem:[#allocation11 + $0x7]] }
 0x158   :  { %1659 = vst.msk [vmem:[#allocation6] sm:$0x1] %vm1658_vm0, %v1657_v32  ;;  %v1662_v33 = vld [vmem:[%s1661_s6] sm:$0x1]  ;;  %s1665_s25 = scalar_lea.vmem %s4442_s7, %s3449_s0  ;;  %s3455_s27 = sld [smem:[#allocation11 + $0x80]] }
 0x159   :  { %1663 = vst.msk [vmem:[#allocation6 + $0x1] sm:$0x1] %vm1658_vm0, %v1662_v33  ;;  %v1666_v34 = vld [vmem:[%s1665_s25] sm:$0x1]  ;;  %s1669_s26 = scalar_lea.vmem %s4442_s7, %s3450_s28  ;;  %s3456_s20 = sld [smem:[#allocation11 + $0x81]] }
 0x15a   :  { %1667 = vst.msk [vmem:[#allocation6 + $0x2] sm:$0x1] %vm1658_vm0, %v1666_v34  ;;  %v1670_v35 = vld [vmem:[%s1669_s26] sm:$0x1]  ;;  %s1673_s22 = scalar_lea.vmem %s4442_s7, %s3451_s19  ;;  %s3457_s4 = sld [smem:[#allocation11 + $0x82]] }
 0x15b   :  { %1671 = vst.msk [vmem:[#allocation6 + $0x3] sm:$0x1] %vm1658_vm0, %v1670_v35  ;;  %v1674_v36 = vld [vmem:[%s1673_s22] sm:$0x1]  ;;  %s1677_s6 = scalar_lea.vmem %s4442_s7, %s3452_s3  ;;  %s3458_s13 = sld [smem:[#allocation11 + $0x83]] }
 0x15c   :  { %1675 = vst.msk [vmem:[#allocation6 + $0x4] sm:$0x1] %vm1658_vm0, %v1674_v36  ;;  %v1678_v37 = vld [vmem:[%s1677_s6] sm:$0x1]  ;;  %s1681_s25 = scalar_lea.vmem %s4442_s7, %s3453_s1  ;;  %s3459_s2 = sld [smem:[#allocation11 + $0x84]] }
 0x15d   :  { %1679 = vst.msk [vmem:[#allocation6 + $0x5] sm:$0x1] %vm1658_vm0, %v1678_v37  ;;  %v1682_v38 = vld [vmem:[%s1681_s25] sm:$0x1]  ;;  %s1685_s26 = scalar_lea.vmem %s4442_s7, %s3454_s24  ;;  %s3460_s30 = sld [smem:[#allocation11 + $0x85]] }
 0x15e   :  { %1683 = vst.msk [vmem:[#allocation6 + $0x6] sm:$0x1] %vm1658_vm0, %v1682_v38  ;;  %v1686_v39 = vld [vmem:[%s1685_s26] sm:$0x1]  ;;  %s1689_s22 = scalar_lea.vmem %s4442_s7, %s3455_s27  ;;  %s3461_s0 = sld [smem:[#allocation11 + $0x86]] }
 0x15f   :  { %1687 = vst.msk [vmem:[#allocation6 + $0x7] sm:$0x1] %vm1658_vm0, %v1686_v39  ;;  %v1690_v40 = vld [vmem:[%s1689_s22] sm:$0x1]  ;;  %s1694_s6 = scalar_lea.vmem %s4442_s7, %s3456_s20  ;;  %s3462_s28 = sld [smem:[#allocation11 + $0x87]] }
 0x160   :  { %1692 = vst.msk [vmem:[#allocation6 + $0x8] sm:$0x1] %vm1658_vm0, %v1690_v40  ;;  %v1695_v41 = vld [vmem:[%s1694_s6] sm:$0x1]  ;;  %s1698_s25 = scalar_lea.vmem %s4442_s7, %s3457_s4  ;;  %s3463_s19 = sld [smem:[#allocation11 + $0x100]] }
 0x161   :  { %1696 = vst.msk [vmem:[#allocation6 + $0x9] sm:$0x1] %vm1658_vm0, %v1695_v41  ;;  %v1699_v42 = vld [vmem:[%s1698_s25] sm:$0x1]  ;;  %s1702_s26 = scalar_lea.vmem %s4442_s7, %s3458_s13  ;;  %s3464_s3 = sld [smem:[#allocation11 + $0x101]] }
 0x162   :  { %1700 = vst.msk [vmem:[#allocation6 + $0xa] sm:$0x1] %vm1658_vm0, %v1699_v42  ;;  %v1703_v43 = vld [vmem:[%s1702_s26] sm:$0x1]  ;;  %s1706_s22 = scalar_lea.vmem %s4442_s7, %s3459_s2  ;;  %s3465_s1 = sld [smem:[#allocation11 + $0x102]] }
 0x163   :  { %1704 = vst.msk [vmem:[#allocation6 + $0xb] sm:$0x1] %vm1658_vm0, %v1703_v43  ;;  %v1707_v44 = vld [vmem:[%s1706_s22] sm:$0x1]  ;;  %s1710_s6 = scalar_lea.vmem %s4442_s7, %s3460_s30  ;;  %s3466_s24 = sld [smem:[#allocation11 + $0x103]] }
 0x164   :  { %1708 = vst.msk [vmem:[#allocation6 + $0xc] sm:$0x1] %vm1658_vm0, %v1707_v44  ;;  %v1711_v45 = vld [vmem:[%s1710_s6] sm:$0x1]  ;;  %s1714_s25 = scalar_lea.vmem %s4442_s7, %s3461_s0  ;;  %s3467_s27 = sld [smem:[#allocation11 + $0x104]] }
 0x165   :  { %1712 = vst.msk [vmem:[#allocation6 + $0xd] sm:$0x1] %vm1658_vm0, %v1711_v45  ;;  %v1715_v46 = vld [vmem:[%s1714_s25] sm:$0x1]  ;;  %s1718_s26 = scalar_lea.vmem %s4442_s7, %s3462_s28  ;;  %s3468_s20 = sld [smem:[#allocation11 + $0x105]] }
 0x166   :  { %1716 = vst.msk [vmem:[#allocation6 + $0xe] sm:$0x1] %vm1658_vm0, %v1715_v46  ;;  %v1719_v47 = vld [vmem:[%s1718_s26] sm:$0x1]  ;;  %s1722_s22 = scalar_lea.vmem %s4442_s7, %s3463_s19  ;;  %s3469_s4 = sld [smem:[#allocation11 + $0x106]] }
 0x167   :  { %1720 = vst.msk [vmem:[#allocation6 + $0xf] sm:$0x1] %vm1658_vm0, %v1719_v47  ;;  %v1723_v48 = vld [vmem:[%s1722_s22] sm:$0x1]  ;;  %s1727_s6 = scalar_lea.vmem %s4442_s7, %s3464_s3  ;;  %s3470_s13 = sld [smem:[#allocation11 + $0x107]] }
 0x168   :  { %1725 = vst.msk [vmem:[#allocation6 + $0x10] sm:$0x1] %vm1658_vm0, %v1723_v48  ;;  %v1728_v49 = vld [vmem:[%s1727_s6] sm:$0x1]  ;;  %s1731_s25 = scalar_lea.vmem %s4442_s7, %s3465_s1  ;;  %s3471_s2 = sld [smem:[#allocation11 + $0x180]] }
 0x169   :  { %1729 = vst.msk [vmem:[#allocation6 + $0x11] sm:$0x1] %vm1658_vm0, %v1728_v49  ;;  %v1732_v50 = vld [vmem:[%s1731_s25] sm:$0x1]  ;;  %s1735_s26 = scalar_lea.vmem %s4442_s7, %s3466_s24  ;;  %s3472_s30 = sld [smem:[#allocation11 + $0x181]] }
 0x16a   :  { %1733 = vst.msk [vmem:[#allocation6 + $0x12] sm:$0x1] %vm1658_vm0, %v1732_v50  ;;  %v1736_v51 = vld [vmem:[%s1735_s26] sm:$0x1]  ;;  %s1739_s22 = scalar_lea.vmem %s4442_s7, %s3467_s27  ;;  %s3473_s0 = sld [smem:[#allocation11 + $0x182]] }
 0x16b   :  { %1737 = vst.msk [vmem:[#allocation6 + $0x13] sm:$0x1] %vm1658_vm0, %v1736_v51  ;;  %v1740_v52 = vld [vmem:[%s1739_s22] sm:$0x1]  ;;  %s1743_s6 = scalar_lea.vmem %s4442_s7, %s3468_s20  ;;  %s3474_s28 = sld [smem:[#allocation11 + $0x183]] }
 0x16c   :  { %1741 = vst.msk [vmem:[#allocation6 + $0x14] sm:$0x1] %vm1658_vm0, %v1740_v52  ;;  %v1744_v53 = vld [vmem:[%s1743_s6] sm:$0x1]  ;;  %s1747_s25 = scalar_lea.vmem %s4442_s7, %s3469_s4  ;;  %s3475_s19 = sld [smem:[#allocation11 + $0x184]] }
 0x16d   :  { %1745 = vst.msk [vmem:[#allocation6 + $0x15] sm:$0x1] %vm1658_vm0, %v1744_v53  ;;  %v1748_v54 = vld [vmem:[%s1747_s25] sm:$0x1]  ;;  %s1751_s26 = scalar_lea.vmem %s4442_s7, %s3470_s13  ;;  %s3476_s3 = sld [smem:[#allocation11 + $0x185]] }
 0x16e   :  { %1749 = vst.msk [vmem:[#allocation6 + $0x16] sm:$0x1] %vm1658_vm0, %v1748_v54  ;;  %v1752_v55 = vld [vmem:[%s1751_s26] sm:$0x1]  ;;  %s1755_s22 = scalar_lea.vmem %s4442_s7, %s3471_s2  ;;  %s3477_s1 = sld [smem:[#allocation11 + $0x186]] }
 0x16f   :  { %1753 = vst.msk [vmem:[#allocation6 + $0x17] sm:$0x1] %vm1658_vm0, %v1752_v55  ;;  %v1756_v56 = vld [vmem:[%s1755_s22] sm:$0x1]  ;;  %s1760_s6 = scalar_lea.vmem %s4442_s7, %s3472_s30  ;;  %s3478_s24 = sld [smem:[#allocation11 + $0x187]] }
 0x170   :  { %1758 = vst.msk [vmem:[#allocation6 + $0x18] sm:$0x1] %vm1658_vm0, %v1756_v56  ;;  %v1761_v57 = vld [vmem:[%s1760_s6] sm:$0x1]  ;;  %s1764_s25 = scalar_lea.vmem %s4442_s7, %s3473_s0  ;;  %s3479_s27 = sld [smem:[#allocation11 + $0x200]] }
 0x171   :  { %1762 = vst.msk [vmem:[#allocation6 + $0x19] sm:$0x1] %vm1658_vm0, %v1761_v57  ;;  %v1765_v58 = vld [vmem:[%s1764_s25] sm:$0x1]  ;;  %s1768_s26 = scalar_lea.vmem %s4442_s7, %s3474_s28  ;;  %s3480_s20 = sld [smem:[#allocation11 + $0x201]] }
 0x172   :  { %1766 = vst.msk [vmem:[#allocation6 + $0x1a] sm:$0x1] %vm1658_vm0, %v1765_v58  ;;  %v1769_v59 = vld [vmem:[%s1768_s26] sm:$0x1]  ;;  %s1772_s22 = scalar_lea.vmem %s4442_s7, %s3475_s19  ;;  %s3481_s4 = sld [smem:[#allocation11 + $0x202]] }
 0x173   :  { %1770 = vst.msk [vmem:[#allocation6 + $0x1b] sm:$0x1] %vm1658_vm0, %v1769_v59  ;;  %v1773_v60 = vld [vmem:[%s1772_s22] sm:$0x1]  ;;  %s1776_s6 = scalar_lea.vmem %s4442_s7, %s3476_s3  ;;  %s3482_s13 = sld [smem:[#allocation11 + $0x203]] }
 0x174   :  { %1774 = vst.msk [vmem:[#allocation6 + $0x1c] sm:$0x1] %vm1658_vm0, %v1773_v60  ;;  %v1777_v61 = vld [vmem:[%s1776_s6] sm:$0x1]  ;;  %s1780_s25 = scalar_lea.vmem %s4442_s7, %s3477_s1  ;;  %s3483_s2 = sld [smem:[#allocation11 + $0x204]] }
 0x175   :  { %1778 = vst.msk [vmem:[#allocation6 + $0x1d] sm:$0x1] %vm1658_vm0, %v1777_v61  ;;  %v1781_v62 = vld [vmem:[%s1780_s25] sm:$0x1]  ;;  %s1784_s26 = scalar_lea.vmem %s4442_s7, %s3478_s24  ;;  %s3484_s30 = sld [smem:[#allocation11 + $0x205]] }
 0x176   :  { %1782 = vst.msk [vmem:[#allocation6 + $0x1e] sm:$0x1] %vm1658_vm0, %v1781_v62  ;;  %v1785_v63 = vld [vmem:[%s1784_s26] sm:$0x1]  ;;  %s1788_s22 = scalar_lea.vmem %s4442_s7, %s3479_s27  ;;  %s3485_s0 = sld [smem:[#allocation11 + $0x206]] }
 0x177   :  { %1786 = vst.msk [vmem:[#allocation6 + $0x1f] sm:$0x1] %vm1658_vm0, %v1785_v63  ;;  %v1789_v0 = vld [vmem:[%s1788_s22] sm:$0x1]  ;;  %s1793_s6 = scalar_lea.vmem %s4442_s7, %s3480_s20  ;;  %s3486_s28 = sld [smem:[#allocation11 + $0x207]] }
 0x178   :  { %1791 = vst.msk [vmem:[#allocation6 + $0x20] sm:$0x1] %vm1658_vm0, %v1789_v0  ;;  %v1794_v1 = vld [vmem:[%s1793_s6] sm:$0x1]  ;;  %s1797_s25 = scalar_lea.vmem %s4442_s7, %s3481_s4  ;;  %s3487_s19 = sld [smem:[#allocation11 + $0x280]] }
 0x179   :  { %1795 = vst.msk [vmem:[#allocation6 + $0x21] sm:$0x1] %vm1658_vm0, %v1794_v1  ;;  %v1798_v2 = vld [vmem:[%s1797_s25] sm:$0x1]  ;;  %s1801_s26 = scalar_lea.vmem %s4442_s7, %s3482_s13  ;;  %s3488_s3 = sld [smem:[#allocation11 + $0x281]] }
 0x17a   :  { %1799 = vst.msk [vmem:[#allocation6 + $0x22] sm:$0x1] %vm1658_vm0, %v1798_v2  ;;  %v1802_v3 = vld [vmem:[%s1801_s26] sm:$0x1]  ;;  %s1805_s22 = scalar_lea.vmem %s4442_s7, %s3483_s2  ;;  %s3489_s1 = sld [smem:[#allocation11 + $0x282]] }
 0x17b   :  { %1803 = vst.msk [vmem:[#allocation6 + $0x23] sm:$0x1] %vm1658_vm0, %v1802_v3  ;;  %v1806_v4 = vld [vmem:[%s1805_s22] sm:$0x1]  ;;  %s1809_s6 = scalar_lea.vmem %s4442_s7, %s3484_s30  ;;  %s3490_s24 = sld [smem:[#allocation11 + $0x283]] }
 0x17c   :  { %1807 = vst.msk [vmem:[#allocation6 + $0x24] sm:$0x1] %vm1658_vm0, %v1806_v4  ;;  %v1810_v5 = vld [vmem:[%s1809_s6] sm:$0x1]  ;;  %s1813_s25 = scalar_lea.vmem %s4442_s7, %s3485_s0  ;;  %s3491_s27 = sld [smem:[#allocation11 + $0x284]] }
 0x17d   :  { %1811 = vst.msk [vmem:[#allocation6 + $0x25] sm:$0x1] %vm1658_vm0, %v1810_v5  ;;  %v1814_v6 = vld [vmem:[%s1813_s25] sm:$0x1]  ;;  %s1817_s26 = scalar_lea.vmem %s4442_s7, %s3486_s28  ;;  %s3492_s20 = sld [smem:[#allocation11 + $0x285]] }
 0x17e   :  { %1815 = vst.msk [vmem:[#allocation6 + $0x26] sm:$0x1] %vm1658_vm0, %v1814_v6  ;;  %v1818_v7 = vld [vmem:[%s1817_s26] sm:$0x1]  ;;  %s1821_s22 = scalar_lea.vmem %s4442_s7, %s3487_s19  ;;  %s3493_s4 = sld [smem:[#allocation11 + $0x286]] }
 0x17f   :  { %1819 = vst.msk [vmem:[#allocation6 + $0x27] sm:$0x1] %vm1658_vm0, %v1818_v7  ;;  %v1822_v8 = vld [vmem:[%s1821_s22] sm:$0x1]  ;;  %s1826_s6 = scalar_lea.vmem %s4442_s7, %s3488_s3  ;;  %s3494_s13 = sld [smem:[#allocation11 + $0x287]] }
 0x180   :  { %1824 = vst.msk [vmem:[#allocation6 + $0x28] sm:$0x1] %vm1658_vm0, %v1822_v8  ;;  %v1827_v9 = vld [vmem:[%s1826_s6] sm:$0x1]  ;;  %s1830_s25 = scalar_lea.vmem %s4442_s7, %s3489_s1  ;;  %s3495_s2 = sld [smem:[#allocation11 + $0x300]] }
 0x181   :  { %1828 = vst.msk [vmem:[#allocation6 + $0x29] sm:$0x1] %vm1658_vm0, %v1827_v9  ;;  %v1831_v10 = vld [vmem:[%s1830_s25] sm:$0x1]  ;;  %s1834_s26 = scalar_lea.vmem %s4442_s7, %s3490_s24  ;;  %s3496_s30 = sld [smem:[#allocation11 + $0x301]] }
 0x182   :  { %1832 = vst.msk [vmem:[#allocation6 + $0x2a] sm:$0x1] %vm1658_vm0, %v1831_v10  ;;  %v1835_v11 = vld [vmem:[%s1834_s26] sm:$0x1]  ;;  %s1838_s22 = scalar_lea.vmem %s4442_s7, %s3491_s27  ;;  %s3497_s0 = sld [smem:[#allocation11 + $0x302]] }
 0x183   :  { %1836 = vst.msk [vmem:[#allocation6 + $0x2b] sm:$0x1] %vm1658_vm0, %v1835_v11  ;;  %v1839_v12 = vld [vmem:[%s1838_s22] sm:$0x1]  ;;  %s1842_s6 = scalar_lea.vmem %s4442_s7, %s3492_s20  ;;  %s3498_s28 = sld [smem:[#allocation11 + $0x303]] }
 0x184   :  { %1840 = vst.msk [vmem:[#allocation6 + $0x2c] sm:$0x1] %vm1658_vm0, %v1839_v12  ;;  %v1843_v13 = vld [vmem:[%s1842_s6] sm:$0x1]  ;;  %s1846_s25 = scalar_lea.vmem %s4442_s7, %s3493_s4  ;;  %s3499_s19 = sld [smem:[#allocation11 + $0x304]] }
 0x185   :  { %1844 = vst.msk [vmem:[#allocation6 + $0x2d] sm:$0x1] %vm1658_vm0, %v1843_v13  ;;  %v1847_v14 = vld [vmem:[%s1846_s25] sm:$0x1]  ;;  %s1850_s26 = scalar_lea.vmem %s4442_s7, %s3494_s13  ;;  %s3500_s3 = sld [smem:[#allocation11 + $0x305]] }
 0x186   :  { %1848 = vst.msk [vmem:[#allocation6 + $0x2e] sm:$0x1] %vm1658_vm0, %v1847_v14  ;;  %v1851_v15 = vld [vmem:[%s1850_s26] sm:$0x1]  ;;  %s1854_s22 = scalar_lea.vmem %s4442_s7, %s3495_s2  ;;  %s3501_s1 = sld [smem:[#allocation11 + $0x306]] }
 0x187   :  { %1852 = vst.msk [vmem:[#allocation6 + $0x2f] sm:$0x1] %vm1658_vm0, %v1851_v15  ;;  %v1855_v16 = vld [vmem:[%s1854_s22] sm:$0x1]  ;;  %s1859_s6 = scalar_lea.vmem %s4442_s7, %s3496_s30  ;;  %s3502_s24 = sld [smem:[#allocation11 + $0x307]] }
 0x188   :  { %1857 = vst.msk [vmem:[#allocation6 + $0x30] sm:$0x1] %vm1658_vm0, %v1855_v16  ;;  %v1860_v17 = vld [vmem:[%s1859_s6] sm:$0x1]  ;;  %s1863_s25 = scalar_lea.vmem %s4442_s7, %s3497_s0  ;;  %s3503_s27 = sld [smem:[#allocation11 + $0x380]] }
 0x189   :  { %1861 = vst.msk [vmem:[#allocation6 + $0x31] sm:$0x1] %vm1658_vm0, %v1860_v17  ;;  %v1864_v18 = vld [vmem:[%s1863_s25] sm:$0x1]  ;;  %s1867_s26 = scalar_lea.vmem %s4442_s7, %s3498_s28  ;;  %s3504_s20 = sld [smem:[#allocation11 + $0x381]] }
 0x18a   :  { %1865 = vst.msk [vmem:[#allocation6 + $0x32] sm:$0x1] %vm1658_vm0, %v1864_v18  ;;  %v1868_v19 = vld [vmem:[%s1867_s26] sm:$0x1]  ;;  %s1871_s22 = scalar_lea.vmem %s4442_s7, %s3499_s19  ;;  %s3505_s4 = sld [smem:[#allocation11 + $0x382]] }
 0x18b   :  { %1869 = vst.msk [vmem:[#allocation6 + $0x33] sm:$0x1] %vm1658_vm0, %v1868_v19  ;;  %v1872_v20 = vld [vmem:[%s1871_s22] sm:$0x1]  ;;  %s1875_s6 = scalar_lea.vmem %s4442_s7, %s3500_s3  ;;  %s3506_s13 = sld [smem:[#allocation11 + $0x383]] }
 0x18c   :  { %1873 = vst.msk [vmem:[#allocation6 + $0x34] sm:$0x1] %vm1658_vm0, %v1872_v20  ;;  %v1876_v21 = vld [vmem:[%s1875_s6] sm:$0x1]  ;;  %s1879_s25 = scalar_lea.vmem %s4442_s7, %s3501_s1  ;;  %s3507_s2 = sld [smem:[#allocation11 + $0x384]] }
 0x18d   :  { %1877 = vst.msk [vmem:[#allocation6 + $0x35] sm:$0x1] %vm1658_vm0, %v1876_v21  ;;  %v1880_v22 = vld [vmem:[%s1879_s25] sm:$0x1]  ;;  %s1883_s26 = scalar_lea.vmem %s4442_s7, %s3502_s24  ;;  %s3508_s30 = sld [smem:[#allocation11 + $0x385]] }
 0x18e   :  { %1881 = vst.msk [vmem:[#allocation6 + $0x36] sm:$0x1] %vm1658_vm0, %v1880_v22  ;;  %v1884_v23 = vld [vmem:[%s1883_s26] sm:$0x1]  ;;  %s1887_s22 = scalar_lea.vmem %s4442_s7, %s3503_s27  ;;  %s3509_s0 = sld [smem:[#allocation11 + $0x386]] }
 0x18f   :  { %1885 = vst.msk [vmem:[#allocation6 + $0x37] sm:$0x1] %vm1658_vm0, %v1884_v23  ;;  %v1888_v24 = vld [vmem:[%s1887_s22] sm:$0x1]  ;;  %s1892_s6 = scalar_lea.vmem %s4442_s7, %s3504_s20  ;;  %s3510_s28 = sld [smem:[#allocation11 + $0x387]] }
 0x190   :  { %1890 = vst.msk [vmem:[#allocation6 + $0x38] sm:$0x1] %vm1658_vm0, %v1888_v24  ;;  %v1893_v25 = vld [vmem:[%s1892_s6] sm:$0x1]  ;;  %s1896_s25 = scalar_lea.vmem %s4442_s7, %s3505_s4 }
 0x191   :  { %1894 = vst.msk [vmem:[#allocation6 + $0x39] sm:$0x1] %vm1658_vm0, %v1893_v25  ;;  %v1897_v26 = vld [vmem:[%s1896_s25] sm:$0x1]  ;;  %s1900_s29 = scalar_lea.vmem %s4442_s7, %s3506_s13 }
 0x192   :  { %1898 = vst.msk [vmem:[#allocation6 + $0x3a] sm:$0x1] %vm1658_vm0, %v1897_v26  ;;  %v1901_v27 = vld [vmem:[%s1900_s29] sm:$0x1]  ;;  %s1904_s3 = scalar_lea.vmem %s4442_s7, %s3507_s2 }
 0x193   :  { %1902 = vst.msk [vmem:[#allocation6 + $0x3b] sm:$0x1] %vm1658_vm0, %v1901_v27  ;;  %v1905_v28 = vld [vmem:[%s1904_s3] sm:$0x1]  ;;  %s1908_s4 = scalar_lea.vmem %s4442_s7, %s3508_s30 }
 0x194   :  { %1906 = vst.msk [vmem:[#allocation6 + $0x3c] sm:$0x1] %vm1658_vm0, %v1905_v28  ;;  %v1909_v29 = vld [vmem:[%s1908_s4] sm:$0x1]  ;;  %s1912_s13 = scalar_lea.vmem %s4442_s7, %s3509_s0 }
 0x195   :  { %1910 = vst.msk [vmem:[#allocation6 + $0x3d] sm:$0x1] %vm1658_vm0, %v1909_v29  ;;  %v1913_v30 = vld [vmem:[%s1912_s13] sm:$0x1]  ;;  %s1916_s2 = scalar_lea.vmem %s4442_s7, %s3510_s28 }
 0x196   :  { %1914 = vst.msk [vmem:[#allocation6 + $0x3e] sm:$0x1] %vm1658_vm0, %v1913_v30  ;;  %v1917_v31 = vld [vmem:[%s1916_s2] sm:$0x1] }
 0x197   :  { %1918 = vst.msk [vmem:[#allocation6 + $0x3f] sm:$0x1] %vm1658_vm0, %v1917_v31 }
 0x198   :  { %3721 = dma.done.wait [#allocation7], 16 }
 0x199   :  { %3722 = vsyncadd [#allocation7], 4294967280 }
 0x19a   :  { %3723 = dma.done.wait [#allocation7 + $0x1], 16 }
 0x19b   :  { %3724 = vsyncadd [#allocation7 + $0x1], 4294967280 }
 0x19c   :  { %3725 = dma.done.wait [#allocation7 + $0x2], 16 }
 0x19d   :  { %3726 = vsyncadd [#allocation7 + $0x2], 4294967280 }
 0x19e   :  { %3727 = dma.done.wait [#allocation7 + $0x3], 16 }
 0x19f   :  { %3728 = vsyncadd [#allocation7 + $0x3], 4294967280 }
 0x1a0   :  { %3729 = dma.done.wait [#allocation7 + $0x4], 16 }
 0x1a1   :  { %3730 = vsyncadd [#allocation7 + $0x4], 4294967280 }
 0x1a2   :  { %3731 = dma.done.wait [#allocation7 + $0x5], 16 }
 0x1a3   :  { %3732 = vsyncadd [#allocation7 + $0x5], 4294967280 }
 0x1a4   :  { %3733 = dma.done.wait [#allocation7 + $0x6], 16 }
 0x1a5   :  { %3734 = vsyncadd [#allocation7 + $0x6], 4294967280 }
 0x1a6   :  { %3735 = dma.done.wait [#allocation7 + $0x7], 16 }
 0x1a7   :  { %3736 = vsyncadd [#allocation7 + $0x7], 4294967280 }
 0x1a8   :  { %3737 = dma.done.wait [#allocation7 + $0x8], 16 }
 0x1a9   :  { %3738 = vsyncadd [#allocation7 + $0x8], 4294967280 }
 0x1aa   :  { %3739 = dma.done.wait [#allocation7 + $0x9], 16 }
 0x1ab   :  { %3740 = vsyncadd [#allocation7 + $0x9], 4294967280 }
 0x1ac   :  { %3741 = dma.done.wait [#allocation7 + $0xa], 16 }
 0x1ad   :  { %3742 = vsyncadd [#allocation7 + $0xa], 4294967280 }
 0x1ae   :  { %3743 = dma.done.wait [#allocation7 + $0xb], 16 }
 0x1af   :  { %3744 = vsyncadd [#allocation7 + $0xb], 4294967280 }
 0x1b0   :  { %3745 = dma.done.wait [#allocation7 + $0xc], 16 }
 0x1b1   :  { %3746 = vsyncadd [#allocation7 + $0xc], 4294967280 }
 0x1b2   :  { %3747 = dma.done.wait [#allocation7 + $0xd], 16 }
 0x1b3   :  { %3748 = vsyncadd [#allocation7 + $0xd], 4294967280 }
 0x1b4   :  { %3749 = dma.done.wait [#allocation7 + $0xe], 16 }
 0x1b5   :  { %3750 = vsyncadd [#allocation7 + $0xe], 4294967280 }
 0x1b6   :  { %3751 = dma.done.wait [#allocation7 + $0xf], 16 }
 0x1b7   :  { %3752 = vsyncadd [#allocation7 + $0xf], 4294967280 }
 0x1b8   :  { %3753 = dma.done.wait [#allocation7 + $0x10], 16 }
 0x1b9   :  { %3754 = vsyncadd [#allocation7 + $0x10], 4294967280 }
 0x1ba   :  { %3755 = dma.done.wait [#allocation7 + $0x11], 16 }
 0x1bb   :  { %3756 = vsyncadd [#allocation7 + $0x11], 4294967280 }
 0x1bc   :  { %3757 = dma.done.wait [#allocation7 + $0x12], 16 }
 0x1bd   :  { %3758 = vsyncadd [#allocation7 + $0x12], 4294967280 }
 0x1be   :  { %3759 = dma.done.wait [#allocation7 + $0x13], 16 }
 0x1bf   :  { %3760 = vsyncadd [#allocation7 + $0x13], 4294967280 }
 0x1c0   :  { %3761 = dma.done.wait [#allocation7 + $0x14], 16 }
 0x1c1   :  { %3762 = vsyncadd [#allocation7 + $0x14], 4294967280 }
 0x1c2   :  { %3763 = dma.done.wait [#allocation7 + $0x15], 16 }
 0x1c3   :  { %3764 = vsyncadd [#allocation7 + $0x15], 4294967280 }
 0x1c4   :  { %3765 = dma.done.wait [#allocation7 + $0x16], 16 }
 0x1c5   :  { %3766 = vsyncadd [#allocation7 + $0x16], 4294967280 }
 0x1c6   :  { %3767 = dma.done.wait [#allocation7 + $0x17], 16 }
 0x1c7   :  { %3768 = vsyncadd [#allocation7 + $0x17], 4294967280 }
 0x1c8   :  { %3769 = dma.done.wait [#allocation7 + $0x18], 16 }
 0x1c9   :  { %3770 = vsyncadd [#allocation7 + $0x18], 4294967280 }
 0x1ca   :  { %3771 = dma.done.wait [#allocation7 + $0x19], 16 }
 0x1cb   :  { %3772 = vsyncadd [#allocation7 + $0x19], 4294967280 }
 0x1cc   :  { %3773 = dma.done.wait [#allocation7 + $0x1a], 16 }
 0x1cd   :  { %3774 = vsyncadd [#allocation7 + $0x1a], 4294967280 }
 0x1ce   :  { %3775 = dma.done.wait [#allocation7 + $0x1b], 16 }
 0x1cf   :  { %3776 = vsyncadd [#allocation7 + $0x1b], 4294967280 }
 0x1d0   :  { %3777 = dma.done.wait [#allocation7 + $0x1c], 16 }
 0x1d1   :  { %3778 = vsyncadd [#allocation7 + $0x1c], 4294967280 }
 0x1d2   :  { %3779 = dma.done.wait [#allocation7 + $0x1d], 16 }
 0x1d3   :  { %3780 = vsyncadd [#allocation7 + $0x1d], 4294967280 }
 0x1d4   :  { %3781 = dma.done.wait [#allocation7 + $0x1e], 16 }
 0x1d5   :  { %3782 = vsyncadd [#allocation7 + $0x1e], 4294967280 }
 0x1d6   :  { %3783 = dma.done.wait [#allocation7 + $0x1f], 16 }
 0x1d7   :  { %3784 = vsyncadd [#allocation7 + $0x1f], 4294967280  ;;  %v3792_v32 = vmov 0.0   ;;  %vm3793_vm1 = vmmov 0   ;;  %v1992_v33 = vld [vmem:[%s4444_s9 + $0x8] sm:$0xff]  ;;  %v1991_v35 = vld [vmem:[%s4444_s9] sm:$0xff] }
 0x1d8   :  { %3574 = vmatprep.subr.mxu0 %v3792_v32  ;;  %3581 = vmatprep.subr.mxu1 %v3792_v32  ;;  %v1989_v34 = vld [vmem:[%s4443_s8 + $0x8] sm:$0xff]  ;;  %v1988_v36 = vld [vmem:[%s4443_s8] sm:$0xff]  ;;  %v1990_v37 = vld [vmem:[#allocation5] sm:$0xff]  ;;  %vm1993_vm2 = vcmask 130048   ;;  %vm2160_vm3 = vcmask 261120   ;;  %s4466_s25 = sld [smem:[#allocation86_spill]] }
 0x1d9   :  { %3578 = vmatprep.mubr.msk.f32.mxu0 %vm3793_vm1, %v3792_v32  ;;  %3585 = vmatprep.mubr.msk.f32.mxu1 %vm3793_vm1, %v3792_v32  ;;  %v1987_v38 = vld [vmem:[#allocation4] sm:$0xff]  ;;  %v2152_v39 = vld [vmem:[%s4446_s11 + $0x18] sm:$0xff]  ;;  %v2150_v41 = vld [vmem:[%s4446_s11 + $0x8] sm:$0xff]  ;;  %s3797_s9 = smov 16   ;;  %vm2491_vm4 = vcmask 1041409   ;;  %vm2493_vm5 = vcmask 1042434  }
 0x1da   :  { %3575 = vmatpush3.msra.mxu0 %v1992_v33  ;;  %3582 = vmatpush3.msra.mxu1 %v1989_v34  ;;  %v2151_v40 = vld [vmem:[%s4446_s11 + $0x10] sm:$0xff]  ;;  %v2149_v42 = vld [vmem:[%s4446_s11] sm:$0xff]  ;;  %v2245_v51 = vld [vmem:[%s4449_s14 + $0x8] sm:$0xff]  ;;  %vm2495_vm6 = vcmask 1043459   ;;  %vm2497_vm7 = vcmask 1044484   ;;  %vm2499_vm8 = vcmask 1045509  }
 0x1db   :  { %3576 = vmatprep.subr.mxu0 %v3792_v32  ;;  %3583 = vmatprep.subr.mxu1 %v3792_v32  ;;  %v3513_v45 = vld [vmem:[%s4445_s10] ss:$0 sm:$0xff]  ;;  %v1985_v54 = vld [vmem:[#allocation3] sm:$0xff]  ;;  %v2401_v58 = vld [vmem:[#allocation6 + $0x10] sm:$0xff]  ;;  %vm2501_vm9 = vcmask 1046534   ;;  %vm2503_vm10 = vcmask 1047559  }
 0x1dc   :  { %3577 = vmatpush3.msra.mxu0 %v1991_v35  ;;  %3584 = vmatpush3.msra.mxu1 %v1988_v36  ;;  %v2244_v52 = vld [vmem:[%s4449_s14] sm:$0xff]  ;;  %v2400_v61 = vld [vmem:[#allocation6 + $0x8] sm:$0xff]  ;;  %v2402_v1 = vld [vmem:[#allocation6 + $0x18] sm:$0xff]  ;;  %vm2240_vm11 = vcmask 261248  }
 0x1dd   :  { %3579 = vmatmul.mubr.msk.f32.vlgmr.msra.gmra.mxu0 %vm1993_vm2, %v1990_v37  ;;  %3586 = vmatmul.mubr.msk.f32.vlgmr.msra.gmra.mxu1 %vm1993_vm2, %v1987_v38  ;;  %v1984_v53 = vld [vmem:[#allocation2] sm:$0xff]  ;;  %v2404_v22 = vld [vmem:[#allocation6 + $0x28] sm:$0xff]  ;;  %v2405_v27 = vld [vmem:[#allocation6 + $0x30] sm:$0xff] }
 0x1de   :  { %3588 = vmatprep.subr.mxu0 %v3792_v32  ;;  %3596 = vmatprep.mubr.msk.f32.mxu0 %vm3793_vm1, %v3792_v32  ;;  %v4313_v55 = vmul.f32 %v1985_v54, %v1984_v53  ;;  %v2399_v56 = vld [vmem:[#allocation6] sm:$0xff]  ;;  %v2406_v37 = vld [vmem:[#allocation6 + $0x38] sm:$0xff] }
 0x1df   :  { %3599 = vmatprep.subr.mxu1 %v3792_v32  ;;  %3603 = vmatprep.mubr.msk.f32.mxu1 %vm3793_vm1, %v3792_v32  ;;  %v3519_v57 = vld [vmem:[%s4451_s16] ss:$0 sm:$0xff]  ;;  %v4323_v62 = vld [vmem:[%s4451_s16 + $0x1] ss:$0 sm:$0xff]  ;;  %v3523_v8 = vld [vmem:[%s4451_s16 + $0x2] ss:$0 sm:$0xff] }
 0x1e0   :  { %3589 = vmatpush3.msra.mxu0 %v2152_v39  ;;  %3600 = vmatpush3.msra.mxu1 %v2245_v51  ;;  %2235 = vst.msk [vmem:[#allocation12] sm:$0xff] %vm1993_vm2, %v4313_v55  ;;  %v2412_v59 = vmul.f32 %v3519_v57, %v2399_v56  ;;  %v2414_v60 = vmul.f32 %v3519_v57, %v2401_v58  ;;  %v2403_v13 = vld [vmem:[#allocation6 + $0x20] sm:$0xff] }
 0x1e1   :  { %3590 = vmatprep.subr.mxu0 %v3792_v32  ;;  %3601 = vmatprep.subr.mxu1 %v3792_v32  ;;  %v2413_v63 = vmul.f32 %v3519_v57, %v2400_v61  ;;  %v2518_v0 = vmul.f32 %v4323_v62, %v2399_v56  ;;  %v2519_v6 = vmul.f32 %v4323_v62, %v2400_v61 }
 0x1e2   :  { %3591 = vmatpush3.msra.mxu0 %v2151_v40  ;;  %3602 = vmatpush3.msra.mxu1 %v2244_v52  ;;  %v2420_v2 = vsel %vm1993_vm2, %v2412_v59, 0.0  ;;  %v2426_v3 = vsel %vm1993_vm2, %v2414_v60, 0.0  ;;  %v2415_v7 = vmul.f32 %v3519_v57, %v2402_v1  ;;  %v2520_v11 = vmul.f32 %v4323_v62, %v2401_v58  ;;  %v3514_v52 = vld [vmem:[%s4447_s12] ss:$0 sm:$0xff] }
 0x1e3   :  { %3592 = vmatprep.subr.mxu0 %v3792_v32  ;;  %3606 = vmatprep.subr.mxu1 %v3792_v32  ;;  %v2423_v4 = vsel %vm1993_vm2, %v2413_v63, 0.0  ;;  %v2526_v5 = vsel %vm1993_vm2, %v2518_v0, 0.0  ;;  %v2529_v9 = vsel %vm1993_vm2, %v2519_v6, 0.0  ;;  %v2614_v12 = vmul.f32 %v3523_v8, %v2399_v56  ;;  %v2242_v59 = vld [vmem:[%s4466_s25] sm:$0xff] }
 0x1e4   :  { %3593 = vmatpush3.msra.mxu0 %v2150_v41  ;;  %2421 = vadd.xlane.f32.xlu0 %v2420_v2  ;;  %v2429_v10 = vsel %vm1993_vm2, %v2415_v7, 0.0  ;;  %v2532_v14 = vsel %vm1993_vm2, %v2520_v11, 0.0  ;;  %v2615_v16 = vmul.f32 %v3523_v8, %v2400_v61  ;;  %v2416_v17 = vmul.f32 %v3519_v57, %v2403_v13 }
 0x1e5   :  { %3594 = vmatprep.subr.mxu0 %v3792_v32  ;;  %2427 = vadd.xlane.f32.xlu1 %v2426_v3  ;;  %v2622_v15 = vsel %vm1993_vm2, %v2614_v12, 0.0  ;;  %v2521_v20 = vmul.f32 %v4323_v62, %v2402_v1  ;;  %v2616_v21 = vmul.f32 %v3523_v8, %v2401_v58  ;;  %v2417_v25 = vmul.f32 %v3519_v57, %v2404_v22  ;;  %v2243_v58 = vld [vmem:[%s4466_s25 + $0x8] sm:$0xff] }
 0x1e6   :  { %3595 = vmatpush3.msra.mxu0 %v2149_v42  ;;  %v2625_v18 = vsel %vm1993_vm2, %v2615_v16, 0.0  ;;  %v2432_v19 = vsel %vm1993_vm2, %v2416_v17, 0.0  ;;  %v2522_v26 = vmul.f32 %v4323_v62, %v2403_v13  ;;  %v2617_v30 = vmul.f32 %v3523_v8, %v2402_v1  ;;  %v3518_v1 = vld [vmem:[%s4450_s15] ss:$0 sm:$0xff]  ;;  %s3798_s15 = smov [#allocation12]  }
 0x1e7   :  { %v2535_v23 = vsel %vm1993_vm2, %v2521_v20, 0.0  ;;  %v2628_v24 = vsel %vm1993_vm2, %v2616_v21, 0.0  ;;  %v2435_v28 = vsel %vm1993_vm2, %v2417_v25, 0.0  ;;  %v2418_v31 = vmul.f32 %v3519_v57, %v2405_v27  ;;  %s2731_s29 = sshll.u32 %s3798_s15, 4  ;;  %s2732_s29 = int_to_ptr.vmem [resolvable:$true] %s2731_s29 }
 0x1e8   :  { %2424 = vadd.xlane.f32.xlu0 %v2423_v4  ;;  %v2538_v29 = vsel %vm1993_vm2, %v2522_v26, 0.0  ;;  %v2631_v33 = vsel %vm1993_vm2, %v2617_v30, 0.0  ;;  %v2523_v35 = vmul.f32 %v4323_v62, %v2404_v22  ;;  %v2618_v36 = vmul.f32 %v3523_v8, %v2403_v13  ;;  %s3679_s26 = scalar_lea.vmem %s2732_s29, 128  ;;  %p3684_p2 = scmp.lt.s32.totalorder %s2732_s29, %s2732_s29 }
 0x1e9   :  { %2527 = vadd.xlane.f32.xlu1 %v2526_v5  ;;  %v2438_v34 = vsel %vm1993_vm2, %v2418_v31, 0.0  ;;  %v2419_v40 = vmul.f32 %v3519_v57, %v2406_v37  ;;  %v2524_v41 = vmul.f32 %v4323_v62, %v2405_v27  ;;  %v3794_v60 = vmov 2   ;;  %p3680_p1 = scmp.ne.s32.totalorder %s2732_s29, %s3679_s26  ;;  %p3685_p3 = scmp.lt.s32.totalorder %s3679_s26, %s3679_s26 }
 0x1ea   :  { %v2541_v38 = vsel %vm1993_vm2, %v2523_v35, 0.0  ;;  %v2634_v39 = vsel %vm1993_vm2, %v2618_v36, 0.0  ;;  %3628 = vset.pattern.permute.xlu1 %v3794_v60  ;;  %v3795_v61 = vmov 1   ;;  %v2457_v16 = vlaneseq }
 0x1eb   :  { %v2441_v42 = vsel %vm1993_vm2, %v2419_v40, 0.0  ;;  %3627 = vset.pattern.permute.xlu0 %v3795_v61  ;;  %p3686_p4 = por %p3685_p3, %p3684_p2 }
 0x1ec   :  { %2530 = vadd.xlane.f32.xlu0 %v2529_v9  ;;  %v2460_v20 = vshrl.u32 %v2457_v16, 7 }
 0x1ed   :  { %2430 = vadd.xlane.f32.xlu1 %v2429_v10  ;;  %p3687_p5 = pnand %p3686_p4, %p3680_p1 }
 0x1f0   :  { %2533 = vadd.xlane.f32.xlu0 %v2532_v14 }
 0x1f1   :  { %2623 = vadd.xlane.f32.xlu1 %v2622_v15 }
 0x1f4   :  { %2626 = vadd.xlane.f32.xlu0 %v2625_v18 }
 0x1f5   :  { %2433 = vadd.xlane.f32.xlu1 %v2432_v19  ;;  %v2458_v19 = vand.u32 127, %v2457_v16 }
 0x1f8   :  { %2536 = vadd.xlane.f32.xlu0 %v2535_v23 }
 0x1f9   :  { %2629 = vadd.xlane.f32.xlu1 %v2628_v24 }
 0x1fc   :  { %2436 = vadd.xlane.f32.xlu0 %v2435_v28 }
 0x1fd   :  { %2539 = vadd.xlane.f32.xlu1 %v2538_v29 }
 0x200   :  { %2632 = vadd.xlane.f32.xlu0 %v2631_v33 }
 0x201   :  { %2439 = vadd.xlane.f32.xlu1 %v2438_v34 }
 0x204   :  { %2542 = vadd.xlane.f32.xlu0 %v2541_v38 }
 0x205   :  { %2635 = vadd.xlane.f32.xlu1 %v2634_v39 }
 0x208   :  { %2442 = vadd.xlane.f32.xlu0 %v2441_v42 }
 0x26e   :  { %v2428_v5 = vpop.xlane.xlu1 %2427 }
 0x272   :  { %v2528_v7 = vpop.xlane.xlu1 %2527 }
 0x276   :  { %v2431_v9 = vpop.xlane.xlu1 %2430 }
 0x27a   :  { %v2624_v11 = vpop.xlane.xlu1 %2623 }
 0x27e   :  { %v2434_v13 = vpop.xlane.xlu1 %2433 }
 0x282   :  { %v2630_v15 = vpop.xlane.xlu1 %2629 }
 0x286   :  { %v2540_v18 = vpop.xlane.xlu1 %2539 }
 0x28a   :  { %v2440_v23 = vpop.xlane.xlu1 %2439 }
 0x28e   :  { %v2636_v29 = vpop.xlane.xlu1 %2635 }
 0x29d   :  { %v2063_v43 = vpop.f32.mrf.mxu0  ;;  %v2136_v44 = vpop.f32.mrf.mxu1 }
 0x29e   :  { %v2137_v46 = vadd.f32 %v2136_v44, %v2063_v43  ;;  %v2544_v43 = vsel %vm1993_vm2, %v2524_v41, 0.0  ;;  %v2525_v44 = vmul.f32 %v4323_v62, %v2406_v37 }
 0x29f   :  { %v3580_v47 = vpop.f32.mrf.mxu0  ;;  %v3587_v48 = vpop.f32.mrf.mxu1  ;;  %2545 = vadd.xlane.f32.xlu1 %v2544_v43 }
 0x2a0   :  { %v2147_v49 = vadd.f32 %v3513_v45, %v2137_v46  ;;  %v2619_v45 = vmul.f32 %v3523_v8, %v2404_v22  ;;  %v2547_v46 = vsel %vm1993_vm2, %v2525_v44, 0.0  ;;  %v2620_v48 = vmul.f32 %v3523_v8, %v2405_v27 }
 0x2a1   :  { %v4383_v22 = vsub.s32 %v2458_v19, %v2460_v20 }
 0x2a2   :  { %v2148_v50 = vmax.f32 %v2147_v49, 0.0  ;;  %v2637_v47 = vsel %vm1993_vm2, %v2619_v45, 0.0  ;;  %v2621_v49 = vmul.f32 %v3523_v8, %v2406_v37 }
 0x2a3   :  { %2548 = vadd.xlane.f32.xlu1 %v2547_v46  ;;  %2638 = vadd.xlane.f32.xlu0 %v2637_v47  ;;  %v2565_v26 = vrot.slane %v2528_v7, %v4383_v22  ;;  %v2470_v30 = vrot.slane %v2428_v5, %v4383_v22  ;;  %v2661_v35 = vrot.slane %v2624_v11, %v4383_v22 }
 0x2a4   :  { %3597 = vmatmul.mubr.msk.f32.vlgmr.msra.gmra.mxu0 %vm2160_vm3, %v2148_v50  ;;  %v2640_v50 = vsel %vm1993_vm2, %v2620_v48, 0.0  ;;  %v2643_v51 = vsel %vm1993_vm2, %v2621_v49, 0.0  ;;  %v2474_v37 = vrot.slane %v2431_v9, %v4383_v22  ;;  %v2669_v42 = vrot.slane %v2630_v15, %v4383_v22 }
 0x2a5   :  { %v2478_v45 = vrot.slane %v2434_v13, %v4383_v22  ;;  %v2581_v46 = vrot.slane %v2540_v18, %v4383_v22  ;;  %v2486_v60 = vrot.slane %v2440_v23, %v4383_v22 }
 0x2a7   :  { %2641 = vadd.xlane.f32.xlu0 %v2640_v50  ;;  %2644 = vadd.xlane.f32.xlu1 %v2643_v51 }
 0x328   :  { %v2546_v43 = vpop.xlane.xlu1 %2545 }
 0x329   :  { %v2589_v61 = vrot.slane %v2546_v43, %v4383_v22 }
 0x364   :  { %v2230_v53 = vpop.f32.mrf.mxu0 }
 0x365   :  { %v2231_v54 = vadd.f32 %v3514_v52, %v2230_v53 }
 0x366   :  { %v3598_v56 = vpop.f32.mrf.mxu0 }
 0x367   :  { %v2234_v57 = vmax.f32 %v2231_v54, 0.0 }
 0x369   :  { %3604 = vmatmul.mubr.msk.f32.vlgmr.msra.gmra.mxu1 %vm1993_vm2, %v2234_v57 }
 0x36a   :  { %3607 = vmatpush3.msra.mxu1 %v2243_v58  ;;  %3610 = vmatprep.mubr.msk.f32.mxu1 %vm3793_vm1, %v3792_v32  ;;  %v2549_v58 = vpop.xlane.xlu1 %2548 }
 0x36b   :  { %3608 = vmatprep.subr.mxu1 %v3792_v32  ;;  %v3796_v32 = vmov 3  }
 0x36c   :  { %3609 = vmatpush3.msra.mxu1 %v2242_v59 }
 0x36d   :  { %3611 = vmatmul.mubr.msk.f32.vlgmr.msra.gmra.mxu1 %vm1993_vm2, %v4313_v55  ;;  %v2422_v55 = vpop.xlane.xlu0 %2421 }
 0x36e   :  { %v2462_v24 = vrot.slane %v2422_v55, %v4383_v22  ;;  %v2645_v55 = vpop.xlane.xlu1 %2644 }
 0x36f   :  { %v2689_v13 = vrot.slane %v2645_v55, %v4383_v22 }
 0x371   :  { %v2425_v6 = vpop.xlane.xlu0 %2424 }
 0x372   :  { %v2466_v25 = vrot.slane %v2425_v6, %v4383_v22 }
 0x374   :  { %v2492_v33 = vsel %vm2491_vm4, %v2466_v25, %v2462_v24 }
 0x375   :  { %v2531_v8 = vpop.xlane.xlu0 %2530  ;;  %v2494_v39 = vsel %vm2493_vm5, %v2470_v30, %v2492_v33 }
 0x376   :  { %v2569_v27 = vrot.slane %v2531_v8, %v4383_v22  ;;  %v2496_v47 = vsel %vm2495_vm6, %v2474_v37, %v2494_v39 }
 0x377   :  { %v2498_v54 = vsel %vm2497_vm7, %v2478_v45, %v2496_v47 }
 0x378   :  { %v2594_v34 = vsel %vm2491_vm4, %v2569_v27, %v2565_v26 }
 0x379   :  { %v2534_v10 = vpop.xlane.xlu0 %2533 }
 0x37a   :  { %v2573_v31 = vrot.slane %v2534_v10, %v4383_v22 }
 0x37c   :  { %v2595_v40 = vsel %vm2493_vm5, %v2573_v31, %v2594_v34 }
 0x37d   :  { %v2627_v12 = vpop.xlane.xlu0 %2626 }
 0x37e   :  { %v2665_v36 = vrot.slane %v2627_v12, %v4383_v22 }
 0x380   :  { %v2690_v44 = vsel %vm2491_vm4, %v2665_v36, %v2661_v35 }
 0x381   :  { %v2537_v14 = vpop.xlane.xlu0 %2536  ;;  %v2691_v51 = vsel %vm2493_vm5, %v2669_v42, %v2690_v44 }
 0x382   :  { %v2577_v38 = vrot.slane %v2537_v14, %v4383_v22 }
 0x384   :  { %v2596_v48 = vsel %vm2495_vm6, %v2577_v38, %v2595_v40 }
 0x385   :  { %v2437_v17 = vpop.xlane.xlu0 %2436  ;;  %v2597_v56 = vsel %vm2497_vm7, %v2581_v46, %v2596_v48 }
 0x386   :  { %v2482_v52 = vrot.slane %v2437_v17, %v4383_v22 }
 0x389   :  { %v2633_v21 = vpop.xlane.xlu0 %2632 }
 0x38a   :  { %v2673_v49 = vrot.slane %v2633_v21, %v4383_v22 }
 0x38c   :  { %v2692_v59 = vsel %vm2495_vm6, %v2673_v49, %v2691_v51 }
 0x38d   :  { %v2543_v28 = vpop.xlane.xlu0 %2542 }
 0x38e   :  { %v2585_v53 = vrot.slane %v2543_v28, %v4383_v22 }
 0x391   :  { %v2443_v41 = vpop.xlane.xlu0 %2442 }
 0x395   :  { %v2639_v50 = vpop.xlane.xlu0 %2638 }
 0x429   :  { %v2314_v62 = vpop.f32.mrf.mxu1 }
 0x42b   :  { %v3605_v63 = vpop.f32.mrf.mxu1 }
 0x42c   :  { %v2598_v63 = vsel %vm2499_vm8, %v2585_v53, %v2597_v56 }
 0x42d   :  { %v2387_v0 = vpop.f32.mrf.mxu1  ;;  %v2599_v5 = vsel %vm2501_vm9, %v2589_v61, %v2598_v63 }
 0x42e   :  { %v2388_v2 = vadd.f32 %v2387_v0, %v2314_v62  ;;  %v2500_v62 = vsel %vm2499_vm8, %v2482_v52, %v2498_v54  ;;  %v2681_v0 = vrot.slane %v2639_v50, %v4383_v22 }
 0x42f   :  { %v3612_v3 = vpop.f32.mrf.mxu1  ;;  %v2502_v6 = vsel %vm2501_vm9, %v2486_v60, %v2500_v62 }
 0x430   :  { %v4378_v4 = vadd.f32 %v3518_v1, %v2388_v2  ;;  %v2642_v1 = vpop.xlane.xlu0 %2641  ;;  %v2490_v3 = vrot.slane %v2443_v41, %v4383_v22 }
 0x431   :  { %v2685_v7 = vrot.slane %v2642_v1, %v4383_v22 }
 0x432   :  { %2551 = vperm.xlu1 %3628, %v4378_v4   ;;  %2446 = vperm.xlu0 %3627, %v4378_v4   ;;  %v2504_v11 = vsel %vm2503_vm10, %v2490_v3, %v2502_v6 }
 0x436   :  { %3629 = vset.pattern.permute.xlu1 %v3796_v32  ;;  %3630 = vset.pattern.permute.xlu0 %v3796_v32  ;;  %v2593_v32 = vrot.slane %v2549_v58, %v4383_v22 }
 0x437   :  { %2647 = vperm.xlu1 %3629, %v4378_v4  }
 0x438   :  { %v2600_v9 = vsel %vm2503_vm10, %v2593_v32, %v2599_v5 }
 0x43b   :  { %2237 = vrot.lane.b32.xlu1 %v2234_v57, %s3797_s9  ;;  %v2677_v57 = vrot.slane %v2636_v29, %v4383_v22 }
 0x43d   :  { %v2693_v2 = vsel %vm2497_vm7, %v2677_v57, %v2692_v59 }
 0x43e   :  { %v2694_v8 = vsel %vm2499_vm8, %v2681_v0, %v2693_v2 }
 0x43f   :  { %v2695_v16 = vsel %vm2501_vm9, %v2685_v7, %v2694_v8 }
 0x440   :  { %v2696_v19 = vsel %vm2503_vm10, %v2689_v13, %v2695_v16 }
 0x4ad   :  { %v2552_v10 = vpop.permute.xlu1 %2551  ;;  %v2447_v12 = vpop.permute.xlu0 %2446 }
 0x4ae   :  { %v2602_v14 = vadd.f32 %v2600_v9, %v2552_v10  ;;  %v2506_v15 = vadd.f32 %v2504_v11, %v2447_v12 }
 0x4b0   :  { %v3522_v17 = vmul.f32 -1.442695, %v2602_v14  ;;  %v3520_v18 = vmul.f32 -1.442695, %v2506_v15 }
 0x4b2   :  { %3631 = vpow2.f32 %v3522_v17  ;;  %v2648_v20 = vpop.permute.xlu1 %2647 }
 0x4b3   :  { %3633 = vpow2.f32 %v3520_v18  ;;  %v2698_v21 = vadd.f32 %v2696_v19, %v2648_v20 }
 0x4b5   :  { %v3524_v23 = vmul.f32 -1.442695, %v2698_v21 }
 0x4b6   :  { %v2238_v24 = vpop.permute.xlu1 %2237 }
 0x4b7   :  { %3635 = vpow2.f32 %v3524_v23  ;;  %2241 = vst.msk [vmem:[#allocation12] sm:$0xff] %vm2240_vm11, %v2238_v24 }
 0x4bf   :  { %v3632_v25 = vpop.eup %3631 }
 0x4c0   :  { %v3634_v26 = vpop.eup %3633  ;;  %v2606_v27 = vadd.f32 1.0, %v3632_v25 }
 0x4c1   :  { %v2510_v22 = vadd.f32 1.0, %v3634_v26 }
 0x4c3   :  { %3637 = vrcp.f32 %v2510_v22 }
 0x4c4   :  { %v3636_v28 = vpop.eup %3635  ;;  %3639 = vrcp.f32 %v2606_v27 }
 0x4c5   :  { %v2702_v29 = vadd.f32 1.0, %v3636_v28 }
 0x4c7   :  { %3641 = vrcp.f32 %v2702_v29 }
 0x4c8   :  { %3690 = shalt.err (!%p3687_p5)
}
 0x4c9   :  { %2734 = dma.vmem_to_hbm [thread:$0]  %s2732_s29, 128, %s4452_s17, [#allocation13]   ;;  %vm2717_vm12 = vcmask 7168   ;;  %vm2719_vm13 = vcmask 72704   ;;  %vm2721_vm14 = vcmask 138240   ;;  %vm2723_vm15 = vcmask 203776  }
 0x4ca   :  { %s3799_s21 = smov 1   ;;  %s3800_s22 = smov 9  }
 0x4cb   :  { %s3801_s4 = smov 17   ;;  %s3802_s1 = smov [#allocation14]  }
 0x4cc   :  { %s2741_s23 = sshll.u32 %s3802_s1, 4  ;;  %s2742_s23 = int_to_ptr.vmem [resolvable:$true] %s2741_s23 }
 0x4cd   :  { %s3699_s17 = scalar_lea.vmem %s2742_s23, 128  ;;  %p3704_p7 = scmp.lt.s32.totalorder %s2742_s23, %s2742_s23 }
 0x4ce   :  { %p3700_p6 = scmp.ne.s32.totalorder %s2742_s23, %s3699_s17  ;;  %p3705_p8 = scmp.lt.s32.totalorder %s3699_s17, %s3699_s17 }
 0x4d0   :  { %v3638_v30 = vpop.eup %3637  ;;  %p3706_p9 = por %p3705_p8, %p3704_p7 }
 0x4d1   :  { %2706 = vrot.lane.b32.xlu1 %v3638_v30, %s3799_s21  ;;  %v3640_v31 = vpop.eup %3639 }
 0x4d2   :  { %p3707_p10 = pnand %p3706_p9, %p3700_p6 }
 0x4d4   :  { %v3642_v33 = vpop.eup %3641 }
 0x4d5   :  { %2710 = vrot.lane.b32.xlu1 %v3640_v31, %s3800_s22 }
 0x4d9   :  { %2714 = vrot.lane.b32.xlu1 %v3642_v33, %s3801_s4 }
 0x543   :  { %v2707_v34 = vpop.permute.xlu1 %2706 }
 0x544   :  { %v2718_v36 = vsel %vm2717_vm12, %v4378_v4, %v2707_v34 }
 0x547   :  { %v2711_v35 = vpop.permute.xlu1 %2710 }
 0x548   :  { %v2720_v37 = vsel %vm2719_vm13, %v2718_v36, %v2711_v35 }
 0x54b   :  { %v2715_v38 = vpop.permute.xlu1 %2714 }
 0x54c   :  { %v2722_v39 = vsel %vm2721_vm14, %v2720_v37, %v2715_v38 }
 0x54d   :  { %2724 = vst.msk [vmem:[#allocation14] sm:$0xff] %vm2723_vm15, %v2722_v39 }
 0x54e   :  { %3710 = shalt.err (!%p3707_p10)
}
 0x54f   :  { %2744 = dma.vmem_to_hbm [thread:$0]  %s2742_s23, 128, %s4453_s18, [#allocation15]  }
 0x550   :  { %3785 = dma.done.wait [#allocation13], 128  }
 0x551   :  { %3786 = vsyncadd [#allocation13], 4294967168 }
 0x552   :  { %3787 = dma.done.wait [#allocation15], 128  }
 0x553   :  { %3788 = vsyncadd [#allocation15], 4294967168 }
 0x554   :  { %2751 = vsyncpa [#allocation13], 1 }
 0x555   :  { %2752 = vsyncpa [#allocation15], 1 }
 0x556   :  { %2753 = vsyncmov [#allocation7] }
 0x559   :  { %s2754_s6 = vpop.sfrf %2753 }
 0x55a   :  { %p3525_p11 = scmp.ne.s32.totalorder %s2754_s6, 0 }
 0x55c   :  { %2758 = shalt.err (%p3525_p11)  }
 0x55d   :  { %2760 = vsyncmov [#allocation7 + $0x1] }
 0x560   :  { %s2761_s10 = vpop.sfrf %2760 }
 0x561   :  { %p3526_p12 = scmp.ne.s32.totalorder %s2761_s10, 0 }
 0x563   :  { %2765 = shalt.err (%p3526_p12)  }
 0x564   :  { %2767 = vsyncmov [#allocation7 + $0x2] }
 0x567   :  { %s2768_s24 = vpop.sfrf %2767 }
 0x568   :  { %p3527_p13 = scmp.ne.s32.totalorder %s2768_s24, 0 }
 0x56a   :  { %2772 = shalt.err (%p3527_p13)  }
 0x56b   :  { %2774 = vsyncmov [#allocation7 + $0x3] }
 0x56e   :  { %s2775_s18 = vpop.sfrf %2774 }
 0x56f   :  { %p3528_p0 = scmp.ne.s32.totalorder %s2775_s18, 0 }
 0x571   :  { %2779 = shalt.err (%p3528_p0)  }
 0x572   :  { %2781 = vsyncmov [#allocation7 + $0x4] }
 0x575   :  { %s2782_s14 = vpop.sfrf %2781 }
 0x576   :  { %p3529_p1 = scmp.ne.s32.totalorder %s2782_s14, 0 }
 0x578   :  { %2786 = shalt.err (%p3529_p1)  }
 0x579   :  { %2788 = vsyncmov [#allocation7 + $0x5] }
 0x57c   :  { %s2789_s2 = vpop.sfrf %2788 }
 0x57d   :  { %p3530_p2 = scmp.ne.s32.totalorder %s2789_s2, 0 }
 0x57f   :  { %2793 = shalt.err (%p3530_p2)  }
 0x580   :  { %2795 = vsyncmov [#allocation7 + $0x6] }
 0x583   :  { %s2796_s7 = vpop.sfrf %2795 }
 0x584   :  { %p3531_p3 = scmp.ne.s32.totalorder %s2796_s7, 0 }
 0x586   :  { %2800 = shalt.err (%p3531_p3)  }
 0x587   :  { %2802 = vsyncmov [#allocation7 + $0x7] }
 0x58a   :  { %s2803_s30 = vpop.sfrf %2802 }
 0x58b   :  { %p3532_p4 = scmp.ne.s32.totalorder %s2803_s30, 0 }
 0x58d   :  { %2807 = shalt.err (%p3532_p4)  }
 0x58e   :  { %2809 = vsyncmov [#allocation7 + $0x8] }
 0x591   :  { %s2810_s16 = vpop.sfrf %2809 }
 0x592   :  { %p3533_p5 = scmp.ne.s32.totalorder %s2810_s16, 0 }
 0x594   :  { %2814 = shalt.err (%p3533_p5)  }
 0x595   :  { %2816 = vsyncmov [#allocation7 + $0x9] }
 0x598   :  { %s2817_s0 = vpop.sfrf %2816 }
 0x599   :  { %p3534_p6 = scmp.ne.s32.totalorder %s2817_s0, 0 }
 0x59b   :  { %2821 = shalt.err (%p3534_p6)  }
 0x59c   :  { %2823 = vsyncmov [#allocation7 + $0xa] }
 0x59f   :  { %s2824_s28 = vpop.sfrf %2823 }
 0x5a0   :  { %p3535_p7 = scmp.ne.s32.totalorder %s2824_s28, 0 }
 0x5a2   :  { %2828 = shalt.err (%p3535_p7)  }
 0x5a3   :  { %2830 = vsyncmov [#allocation7 + $0xb] }
 0x5a6   :  { %s2831_s5 = vpop.sfrf %2830 }
 0x5a7   :  { %p3536_p8 = scmp.ne.s32.totalorder %s2831_s5, 0 }
 0x5a9   :  { %2835 = shalt.err (%p3536_p8)  }
 0x5aa   :  { %2837 = vsyncmov [#allocation7 + $0xc] }
 0x5ad   :  { %s2838_s25 = vpop.sfrf %2837 }
 0x5ae   :  { %p3537_p9 = scmp.ne.s32.totalorder %s2838_s25, 0 }
 0x5b0   :  { %2842 = shalt.err (%p3537_p9)  }
 0x5b1   :  { %2844 = vsyncmov [#allocation7 + $0xd] }
 0x5b4   :  { %s2845_s27 = vpop.sfrf %2844 }
 0x5b5   :  { %p3538_p10 = scmp.ne.s32.totalorder %s2845_s27, 0 }
 0x5b7   :  { %2849 = shalt.err (%p3538_p10)  }
 0x5b8   :  { %2851 = vsyncmov [#allocation7 + $0xe] }
 0x5bb   :  { %s2852_s19 = vpop.sfrf %2851 }
 0x5bc   :  { %p3539_p11 = scmp.ne.s32.totalorder %s2852_s19, 0 }
 0x5be   :  { %2856 = shalt.err (%p3539_p11)  }
 0x5bf   :  { %2858 = vsyncmov [#allocation7 + $0xf] }
 0x5c2   :  { %s2859_s12 = vpop.sfrf %2858 }
 0x5c3   :  { %p3540_p12 = scmp.ne.s32.totalorder %s2859_s12, 0 }
 0x5c5   :  { %2863 = shalt.err (%p3540_p12)  }
 0x5c6   :  { %2865 = vsyncmov [#allocation7 + $0x10] }
 0x5c9   :  { %s2866_s8 = vpop.sfrf %2865 }
 0x5ca   :  { %p3541_p13 = scmp.ne.s32.totalorder %s2866_s8, 0 }
 0x5cc   :  { %2870 = shalt.err (%p3541_p13)  }
 0x5cd   :  { %2872 = vsyncmov [#allocation7 + $0x11] }
 0x5d0   :  { %s2873_s9 = vpop.sfrf %2872 }
 0x5d1   :  { %p3542_p0 = scmp.ne.s32.totalorder %s2873_s9, 0 }
 0x5d3   :  { %2877 = shalt.err (%p3542_p0)  }
 0x5d4   :  { %2879 = vsyncmov [#allocation7 + $0x12] }
 0x5d7   :  { %s2880_s15 = vpop.sfrf %2879 }
 0x5d8   :  { %p3543_p1 = scmp.ne.s32.totalorder %s2880_s15, 0 }
 0x5da   :  { %2884 = shalt.err (%p3543_p1)  }
 0x5db   :  { %2886 = vsyncmov [#allocation7 + $0x13] }
 0x5de   :  { %s2887_s29 = vpop.sfrf %2886 }
 0x5df   :  { %p3544_p2 = scmp.ne.s32.totalorder %s2887_s29, 0 }
 0x5e1   :  { %2891 = shalt.err (%p3544_p2)  }
 0x5e2   :  { %2893 = vsyncmov [#allocation7 + $0x14] }
 0x5e5   :  { %s2894_s26 = vpop.sfrf %2893 }
 0x5e6   :  { %p3545_p3 = scmp.ne.s32.totalorder %s2894_s26, 0 }
 0x5e8   :  { %2898 = shalt.err (%p3545_p3)  }
 0x5e9   :  { %2900 = vsyncmov [#allocation7 + $0x15] }
 0x5ec   :  { %s2901_s20 = vpop.sfrf %2900 }
 0x5ed   :  { %p3546_p4 = scmp.ne.s32.totalorder %s2901_s20, 0 }
 0x5ef   :  { %2905 = shalt.err (%p3546_p4)  }
 0x5f0   :  { %2907 = vsyncmov [#allocation7 + $0x16] }
 0x5f3   :  { %s2908_s3 = vpop.sfrf %2907 }
 0x5f4   :  { %p3547_p5 = scmp.ne.s32.totalorder %s2908_s3, 0 }
 0x5f6   :  { %2912 = shalt.err (%p3547_p5)  }
 0x5f7   :  { %2914 = vsyncmov [#allocation7 + $0x17] }
 0x5fa   :  { %s2915_s21 = vpop.sfrf %2914 }
 0x5fb   :  { %p3548_p6 = scmp.ne.s32.totalorder %s2915_s21, 0 }
 0x5fd   :  { %2919 = shalt.err (%p3548_p6)  }
 0x5fe   :  { %2921 = vsyncmov [#allocation7 + $0x18] }
 0x601   :  { %s2922_s22 = vpop.sfrf %2921 }
 0x602   :  { %p3549_p7 = scmp.ne.s32.totalorder %s2922_s22, 0 }
 0x604   :  { %2926 = shalt.err (%p3549_p7)  }
 0x605   :  { %2928 = vsyncmov [#allocation7 + $0x19] }
 0x608   :  { %s2929_s4 = vpop.sfrf %2928 }
 0x609   :  { %p3550_p8 = scmp.ne.s32.totalorder %s2929_s4, 0 }
 0x60b   :  { %2933 = shalt.err (%p3550_p8)  }
 0x60c   :  { %2935 = vsyncmov [#allocation7 + $0x1a] }
 0x60f   :  { %s2936_s1 = vpop.sfrf %2935 }
 0x610   :  { %p3551_p9 = scmp.ne.s32.totalorder %s2936_s1, 0 }
 0x612   :  { %2940 = shalt.err (%p3551_p9)  }
 0x613   :  { %2942 = vsyncmov [#allocation7 + $0x1b] }
 0x616   :  { %s2943_s23 = vpop.sfrf %2942 }
 0x617   :  { %p3552_p10 = scmp.ne.s32.totalorder %s2943_s23, 0 }
 0x619   :  { %2947 = shalt.err (%p3552_p10)  }
 0x61a   :  { %2949 = vsyncmov [#allocation7 + $0x1c] }
 0x61d   :  { %s2950_s17 = vpop.sfrf %2949 }
 0x61e   :  { %p3553_p11 = scmp.ne.s32.totalorder %s2950_s17, 0 }
 0x620   :  { %2954 = shalt.err (%p3553_p11)  }
 0x621   :  { %2956 = vsyncmov [#allocation7 + $0x1d] }
 0x624   :  { %s2957_s13 = vpop.sfrf %2956 }
 0x625   :  { %p3554_p12 = scmp.ne.s32.totalorder %s2957_s13, 0 }
 0x627   :  { %2961 = shalt.err (%p3554_p12)  }
 0x628   :  { %2963 = vsyncmov [#allocation7 + $0x1e] }
 0x62b   :  { %s2964_s11 = vpop.sfrf %2963 }
 0x62c   :  { %p3555_p13 = scmp.ne.s32.totalorder %s2964_s11, 0 }
 0x62e   :  { %2968 = shalt.err (%p3555_p13)  }
 0x62f   :  { %2970 = vsyncmov [#allocation7 + $0x1f] }
 0x632   :  { %s2971_s6 = vpop.sfrf %2970 }
 0x633   :  { %p3556_p0 = scmp.ne.s32.totalorder %s2971_s6, 0 }
 0x635   :  { %2975 = shalt.err (%p3556_p0)  }

</bundles_post_ra>
